<compile_context>
chip_gen: v7x
topology: tpu7x:2x2x1
jax: 0.10.0
libtpu: 0.0.40
codegen_flags: <defaults>
</compile_context>

<pallas_src>
import jax
import jax.numpy as jnp
import numpy as np
from jax.experimental import pallas as pl
from jax.experimental.pallas import tpu as pltpu


# ----------------------------------------------------------------------------
# helpers
# ----------------------------------------------------------------------------
def _pick_row_block(h, w, c, itemsize, vmem_cap_bytes=4 * 1024 * 1024):
    """Largest divisor of h whose double-buffered output row block fits the cap,
    preferring >=2 row blocks so the pipeline has depth / megacore has work."""
    def fits(rb):
        return 2 * (2 * rb) * (2 * w) * c * itemsize <= vmem_cap_bytes
    divisors = [d for d in range(1, h + 1) if h % d == 0 and fits(d)]
    if not divisors:
        return 1
    if h >= 8:
        halves = [d for d in divisors if d <= h // 2]
        if halves:
            return max(halves)
    return max(divisors)


def _combine_conv_weights(w_oihw):
    """(Cout, Cin, 3, 3) torch conv weight -> (16, Cin, Cout) fused-upsample taps.

    For output parity (pa, pb) and 2x2 tap (r, cc) the effective weight is the
    sum of the original 3x3 taps that land on the same (duplicated) input pixel:
        rows: pa=0 -> ({0}, {1,2});  pa=1 -> ({0,1}, {2})      (same for cols)
    Flat index: k = ((pa*2 + pb)*2 + r)*2 + cc.
    """
    cout, cin, kh, kw = w_oihw.shape
    assert (kh, kw) == (3, 3)
    assert cout == cin, "DDPM Upsample conv assumes Cin == Cout"
    wt = jnp.transpose(w_oihw, (2, 3, 1, 0)).astype(jnp.float32)  # (3,3,Cin,Cout)
    groups = (((0,), (1, 2)), ((0, 1), (2,)))
    taps = []
    for pa in range(2):
        for pb in range(2):
            for r in range(2):
                for cc in range(2):
                    acc = jnp.zeros((cin, cout), jnp.float32)
                    for i in groups[pa][r]:
                        for j in groups[pb][cc]:
                            acc = acc + wt[i, j]
                    taps.append(acc)
    return jnp.stack(taps)                                        # (16, Cin, Cout)


# ----------------------------------------------------------------------------
# Kernel 1: fused 2x nearest upsample + 3x3 conv (padding=1), NHWC, row-tiled.
# ----------------------------------------------------------------------------
def _up2_conv3x3_kernel(x_ref, w_ref, b_ref, o_ref, acc_ref):
    # x_ref  : (1, H+2, W+2, C)   zero-padded NHWC input (resident per sample)
    # w_ref  : (16, C, C)         combined taps
    # b_ref  : (1, C)             bias (f32)
    # o_ref  : (1, RB, 2, W, 2C)  output row block, parity-factored layout
    # acc_ref: (RB*W, C) f32      VMEM accumulator scratch
    rb = o_ref.shape[1]
    w = o_ref.shape[3]
    c = b_ref.shape[1]
    i0 = pl.program_id(1) * rb                            # first input row of block
    bias = jnp.broadcast_to(b_ref[...], (rb * w, c))      # hoisted out of loops

    for pa in range(2):                                   # output row parity
        for pb in range(2):                               # output col parity
            acc_ref[...] = bias
            for r in range(2):                            # 2x2 taps on the input
                for cc in range(2):
                    k = ((pa * 2 + pb) * 2 + r) * 2 + cc
                    patch = x_ref[0, pl.ds(i0 + pa + r, rb),
                                  pb + cc:pb + cc + w, :]             # (rb, W, C)
                    acc_ref[...] += jnp.dot(patch.reshape(rb * w, c), w_ref[k],
                                            preferred_element_type=jnp.float32)
            o_ref[0, :, pa, :, pb * c:(pb + 1) * c] = (
                acc_ref[...].reshape(rb, w, c).astype(o_ref.dtype))


def upsample2x_conv3x3(x_nchw, w_oihw, bias):
    """Fused: conv3x3(pad=1)(nearest_upsample_2x(x)).  x: (N,C,H,W) -> (N,C,2H,2W)."""
    n, c, h, w = x_nchw.shape
    x_nhwc = jnp.transpose(x_nchw, (0, 2, 3, 1))          # transpose the SMALL tensor
    x_pad = jnp.pad(x_nhwc, ((0, 0), (1, 1), (1, 1), (0, 0)))
    w_taps = _combine_conv_weights(w_oihw)                # (16, C, C)
    b2 = bias.reshape(1, c).astype(jnp.float32)

    rb = _pick_row_block(h, w, c, x_nchw.dtype.itemsize)
    grid = (n, h // rb)

    out5 = pl.pallas_call(
        _up2_conv3x3_kernel,
        out_shape=jax.ShapeDtypeStruct((n, h, 2, w, 2 * c), x_nchw.dtype),
        grid=grid,
        in_specs=[
            # whole padded sample stays resident across the row-block axis
            pl.BlockSpec((1, h + 2, w + 2, c), lambda i, r: (i, 0, 0, 0)),
            pl.BlockSpec((16, c, c), lambda i, r: (0, 0, 0)),
            pl.BlockSpec((1, c), lambda i, r: (0, 0)),
        ],
        out_specs=pl.BlockSpec((1, rb, 2, w, 2 * c), lambda i, r: (i, r, 0, 0, 0)),
        scratch_shapes=[pltpu.VMEM((rb * w, c), jnp.float32)],
        compiler_params=pltpu.CompilerParams(
            dimension_semantics=("parallel", "parallel"),
            vmem_limit_bytes=32 * 1024 * 1024),
    )(x_pad, w_taps, b2)

    # (N, H, 2, W, 2C) -> (N, 2H, 2W, C) is a free, metadata-only reshape.
    y_nhwc = out5.reshape(n, 2 * h, 2 * w, c)
    return jnp.transpose(y_nhwc, (0, 3, 1, 2))            # back to NCHW (API)


# ----------------------------------------------------------------------------
# Kernel 2: 2x nearest upsample only (use_conv=False), NHWC, pure copies.
# ----------------------------------------------------------------------------
def _nearest_up2_kernel(x_ref, o_ref):
    # x_ref: (1, RB, W, C)    o_ref: (1, RB, 2, W, 2C)
    x = x_ref[0]
    c = x.shape[-1]
    for pa in range(2):
        for pb in range(2):
            o_ref[0, :, pa, :, pb * c:(pb + 1) * c] = x


def nearest_upsample_2x(x_nchw):
    """x: (N, C, H, W) -> (N, C, 2H, 2W), exact nearest-neighbor duplication."""
    n, c, h, w = x_nchw.shape
    x_nhwc = jnp.transpose(x_nchw, (0, 2, 3, 1))
    rb = _pick_row_block(h, w, c, x_nchw.dtype.itemsize)

    out5 = pl.pallas_call(
        _nearest_up2_kernel,
        out_shape=jax.ShapeDtypeStruct((n, h, 2, w, 2 * c), x_nchw.dtype),
        grid=(n, h // rb),
        in_specs=[pl.BlockSpec((1, rb, w, c), lambda i, r: (i, r, 0, 0))],
        out_specs=pl.BlockSpec((1, rb, 2, w, 2 * c), lambda i, r: (i, r, 0, 0, 0)),
        compiler_params=pltpu.CompilerParams(
            dimension_semantics=("parallel", "parallel"),
            vmem_limit_bytes=32 * 1024 * 1024),
    )(x_nhwc)

    y_nhwc = out5.reshape(n, 2 * h, 2 * w, c)             # free reshape
    return jnp.transpose(y_nhwc, (0, 3, 1, 2))


# ----------------------------------------------------------------------------
# Module wrapper (matches the PyTorch Upsample forward pass)
# ----------------------------------------------------------------------------
class Upsample:
    def __init__(self, channels, use_conv, key):
        self.use_conv = use_conv
        if use_conv:
            kw_, kb_ = jax.random.split(key)
            fan_in = channels * 3 * 3
            bound = 1.0 / np.sqrt(fan_in)          # PyTorch Conv2d default init range
            self.weight = jax.random.uniform(
                kw_, (channels, channels, 3, 3), jnp.float32, -bound, bound)
            self.bias = jax.random.uniform(kb_, (channels,), jnp.float32, -bound, bound)

    def __call__(self, x):
        if self.use_conv:
            return upsample2x_conv3x3(x, self.weight, self.bias)
        return nearest_upsample_2x(x)


# Plain-JAX reference for validation
def upsample_ref(x, use_conv, w=None, b=None):
    y = jnp.repeat(jnp.repeat(x, 2, axis=2), 2, axis=3)
    if use_conv:
        y = jax.lax.conv_general_dilated(
            y, w, window_strides=(1, 1), padding="SAME",
            dimension_numbers=("NCHW", "OIHW", "NCHW")) + b[None, :, None, None]
    return y


if __name__ == "__main__":
    key = jax.random.PRNGKey(0)
    kx, kp = jax.random.split(key)
    x = jax.random.normal(kx, (2, 4, 16, 16), jnp.float32)   # NCHW, like PyTorch

    # use_conv = True (fused upsample + conv kernel)
    mod = Upsample(channels=4, use_conv=True, key=kp)
    out = jax.block_until_ready(mod(x))
    ref = upsample_ref(x, True, mod.weight, mod.bias)
    assert out.shape == (2, 4, 32, 32)
    np.testing.assert_allclose(np.asarray(out), np.asarray(ref), rtol=1e-5, atol=1e-5)

    # use_conv = False (pure duplication kernel, must be bit-exact)
    mod2 = Upsample(channels=4, use_conv=False, key=kp)
    out2 = jax.block_until_ready(mod2(x))
    ref2 = upsample_ref(x, False)
    np.testing.assert_allclose(np.asarray(out2), np.asarray(ref2), rtol=0, atol=0)

    print("KERNEL_OK")
</pallas_src>

<mosaic_0001>
module attributes {stable_mosaic.version = 11 : i64} {
  func.func @_up2_conv3x3_kernel(%arg0: i32, %arg1: i32, %arg2: memref<1x18x18x4xf32, #tpu.memory_space<vmem>>, %arg3: memref<16x4x4xf32, #tpu.memory_space<vmem>>, %arg4: memref<1x4xf32, #tpu.memory_space<vmem>>, %arg5: memref<1x8x2x16x8xf32, #tpu.memory_space<vmem>>, %arg6: memref<128x4xf32, #tpu.memory_space<vmem>>) attributes {dimension_semantics = [#tpu.dimension_semantics<parallel>, #tpu.dimension_semantics<parallel>], iteration_bounds = array<i64: 2, 2>, scalar_prefetch = 0 : i64, scratch_operands = 1 : i64, tpu.core_type = #tpu.core_type<tc>, window_params = [{transform_indices = @transform_0, window_bounds = array<i64: 1, 18, 18, 4>}, {pipeline_mode = #tpu.pipeline_mode<synchronous>, transform_indices = @transform_1, window_bounds = array<i64: 16, 4, 4>}, {pipeline_mode = #tpu.pipeline_mode<synchronous>, transform_indices = @transform_2, window_bounds = array<i64: 1, 4>}, {transform_indices = @transform_3, window_bounds = array<i64: 1, 8, 2, 16, 8>}]} {
    %c8_i32 = arith.constant 8 : i32
    %0 = arith.muli %arg1, %c8_i32 : i32
    %c0 = arith.constant 0 : index
    %c0_0 = arith.constant 0 : index
    %1 = vector.load %arg4[%c0, %c0_0] : memref<1x4xf32, #tpu.memory_space<vmem>>, vector<1x4xf32>
    %2 = vector.shape_cast %1 : vector<1x4xf32> to vector<1x4xf32>
    %3 = vector.broadcast %2 : vector<1x4xf32> to vector<128x4xf32>
    %c0_1 = arith.constant 0 : index
    %c0_2 = arith.constant 0 : index
    %4 = vector.load %arg6[%c0_1, %c0_2] : memref<128x4xf32, #tpu.memory_space<vmem>>, vector<128x4xf32>
    tpu.vector_store %arg6[%c0_1, %c0_2], %3 {strides = array<i32>} : memref<128x4xf32, #tpu.memory_space<vmem>>, vector<128x4xf32>,
    %c0_i32 = arith.constant 0 : i32
    %5 = arith.addi %0, %c0_i32 : i32
    %c0_i32_3 = arith.constant 0 : i32
    %6 = arith.addi %5, %c0_i32_3 : i32
    %c0_4 = arith.constant 0 : index
    %7 = arith.index_cast %6 : i32 to index
    %c0_5 = arith.constant 0 : index
    %c0_6 = arith.constant 0 : index
    %8 = vector.load %arg2[%c0_4, %7, %c0_5, %c0_6] : memref<1x18x18x4xf32, #tpu.memory_space<vmem>>, vector<1x8x16x4xf32>
    %9 = vector.shape_cast %8 : vector<1x8x16x4xf32> to vector<8x16x4xf32>
    %c0_7 = arith.constant 0 : index
    %c0_8 = arith.constant 0 : index
    %10 = vector.load %arg6[%c0_7, %c0_8] : memref<128x4xf32, #tpu.memory_space<vmem>>, vector<128x4xf32>
    %11 = vector.shape_cast %9 : vector<8x16x4xf32> to vector<128x4xf32>
    %c0_9 = arith.constant 0 : index
    %c0_10 = arith.constant 0 : index
    %c0_11 = arith.constant 0 : index
    %12 = vector.load %arg3[%c0_9, %c0_10, %c0_11] : memref<16x4x4xf32, #tpu.memory_space<vmem>>, vector<1x4x4xf32>
    %13 = vector.shape_cast %12 : vector<1x4x4xf32> to vector<4x4xf32>
    %cst = arith.constant dense<0.000000e+00> : vector<128x4xf32>
    %14 = tpu.matmul %11, %13, %cst {dimension_numbers = #tpu.dot_dimension_numbers<[1], [0], [0], [1], [0, 0, 1, 1], [], []>} : vector<128x4xf32>, vector<4x4xf32>, vector<128x4xf32> -> vector<128x4xf32>
    %15 = arith.addf %10, %14 : vector<128x4xf32>
    %c0_12 = arith.constant 0 : index
    %c0_13 = arith.constant 0 : index
    %16 = vector.load %arg6[%c0_12, %c0_13] : memref<128x4xf32, #tpu.memory_space<vmem>>, vector<128x4xf32>
    tpu.vector_store %arg6[%c0_12, %c0_13], %15 {strides = array<i32>} : memref<128x4xf32, #tpu.memory_space<vmem>>, vector<128x4xf32>,
    %c0_i32_14 = arith.constant 0 : i32
    %17 = arith.addi %0, %c0_i32_14 : i32
    %c0_i32_15 = arith.constant 0 : i32
    %18 = arith.addi %17, %c0_i32_15 : i32
    %c0_16 = arith.constant 0 : index
    %19 = arith.index_cast %18 : i32 to index
    %c1 = arith.constant 1 : index
    %c0_17 = arith.constant 0 : index
    %20 = vector.load %arg2[%c0_16, %19, %c1, %c0_17] : memref<1x18x18x4xf32, #tpu.memory_space<vmem>>, vector<1x8x16x4xf32>
    %21 = vector.shape_cast %20 : vector<1x8x16x4xf32> to vector<8x16x4xf32>
    %c0_18 = arith.constant 0 : index
    %c0_19 = arith.constant 0 : index
    %22 = vector.load %arg6[%c0_18, %c0_19] : memref<128x4xf32, #tpu.memory_space<vmem>>, vector<128x4xf32>
    %23 = vector.shape_cast %21 : vector<8x16x4xf32> to vector<128x4xf32>
    %c1_20 = arith.constant 1 : index
    %c0_21 = arith.constant 0 : index
    %c0_22 = arith.constant 0 : index
    %24 = vector.load %arg3[%c1_20, %c0_21, %c0_22] : memref<16x4x4xf32, #tpu.memory_space<vmem>>, vector<1x4x4xf32>
    %25 = vector.shape_cast %24 : vector<1x4x4xf32> to vector<4x4xf32>
    %cst_23 = arith.constant dense<0.000000e+00> : vector<128x4xf32>
    %26 = tpu.matmul %23, %25, %cst_23 {dimension_numbers = #tpu.dot_dimension_numbers<[1], [0], [0], [1], [0, 0, 1, 1], [], []>} : vector<128x4xf32>, vector<4x4xf32>, vector<128x4xf32> -> vector<128x4xf32>
    %27 = arith.addf %22, %26 : vector<128x4xf32>
    %c0_24 = arith.constant 0 : index
    %c0_25 = arith.constant 0 : index
    %28 = vector.load %arg6[%c0_24, %c0_25] : memref<128x4xf32, #tpu.memory_space<vmem>>, vector<128x4xf32>
    tpu.vector_store %arg6[%c0_24, %c0_25], %27 {strides = array<i32>} : memref<128x4xf32, #tpu.memory_space<vmem>>, vector<128x4xf32>,
    %c0_i32_26 = arith.constant 0 : i32
    %29 = arith.addi %0, %c0_i32_26 : i32
    %c1_i32 = arith.constant 1 : i32
    %30 = arith.addi %29, %c1_i32 : i32
    %c0_27 = arith.constant 0 : index
    %31 = arith.index_cast %30 : i32 to index
    %c0_28 = arith.constant 0 : index
    %c0_29 = arith.constant 0 : index
    %32 = vector.load %arg2[%c0_27, %31, %c0_28, %c0_29] : memref<1x18x18x4xf32, #tpu.memory_space<vmem>>, vector<1x8x16x4xf32>
    %33 = vector.shape_cast %32 : vector<1x8x16x4xf32> to vector<8x16x4xf32>
    %c0_30 = arith.constant 0 : index
    %c0_31 = arith.constant 0 : index
    %34 = vector.load %arg6[%c0_30, %c0_31] : memref<128x4xf32, #tpu.memory_space<vmem>>, vector<128x4xf32>
    %35 = vector.shape_cast %33 : vector<8x16x4xf32> to vector<128x4xf32>
    %c2 = arith.constant 2 : index
    %c0_32 = arith.constant 0 : index
    %c0_33 = arith.constant 0 : index
    %36 = vector.load %arg3[%c2, %c0_32, %c0_33] : memref<16x4x4xf32, #tpu.memory_space<vmem>>, vector<1x4x4xf32>
    %37 = vector.shape_cast %36 : vector<1x4x4xf32> to vector<4x4xf32>
    %cst_34 = arith.constant dense<0.000000e+00> : vector<128x4xf32>
    %38 = tpu.matmul %35, %37, %cst_34 {dimension_numbers = #tpu.dot_dimension_numbers<[1], [0], [0], [1], [0, 0, 1, 1], [], []>} : vector<128x4xf32>, vector<4x4xf32>, vector<128x4xf32> -> vector<128x4xf32>
    %39 = arith.addf %34, %38 : vector<128x4xf32>
    %c0_35 = arith.constant 0 : index
    %c0_36 = arith.constant 0 : index
    %40 = vector.load %arg6[%c0_35, %c0_36] : memref<128x4xf32, #tpu.memory_space<vmem>>, vector<128x4xf32>
    tpu.vector_store %arg6[%c0_35, %c0_36], %39 {strides = array<i32>} : memref<128x4xf32, #tpu.memory_space<vmem>>, vector<128x4xf32>,
    %c0_i32_37 = arith.constant 0 : i32
    %41 = arith.addi %0, %c0_i32_37 : i32
    %c1_i32_38 = arith.constant 1 : i32
    %42 = arith.addi %41, %c1_i32_38 : i32
    %c0_39 = arith.constant 0 : index
    %43 = arith.index_cast %42 : i32 to index
    %c1_40 = arith.constant 1 : index
    %c0_41 = arith.constant 0 : index
    %44 = vector.load %arg2[%c0_39, %43, %c1_40, %c0_41] : memref<1x18x18x4xf32, #tpu.memory_space<vmem>>, vector<1x8x16x4xf32>
    %45 = vector.shape_cast %44 : vector<1x8x16x4xf32> to vector<8x16x4xf32>
    %c0_42 = arith.constant 0 : index
    %c0_43 = arith.constant 0 : index
    %46 = vector.load %arg6[%c0_42, %c0_43] : memref<128x4xf32, #tpu.memory_space<vmem>>, vector<128x4xf32>
    %47 = vector.shape_cast %45 : vector<8x16x4xf32> to vector<128x4xf32>
    %c3 = arith.constant 3 : index
    %c0_44 = arith.constant 0 : index
    %c0_45 = arith.constant 0 : index
    %48 = vector.load %arg3[%c3, %c0_44, %c0_45] : memref<16x4x4xf32, #tpu.memory_space<vmem>>, vector<1x4x4xf32>
    %49 = vector.shape_cast %48 : vector<1x4x4xf32> to vector<4x4xf32>
    %cst_46 = arith.constant dense<0.000000e+00> : vector<128x4xf32>
    %50 = tpu.matmul %47, %49, %cst_46 {dimension_numbers = #tpu.dot_dimension_numbers<[1], [0], [0], [1], [0, 0, 1, 1], [], []>} : vector<128x4xf32>, vector<4x4xf32>, vector<128x4xf32> -> vector<128x4xf32>
    %51 = arith.addf %46, %50 : vector<128x4xf32>
    %c0_47 = arith.constant 0 : index
    %c0_48 = arith.constant 0 : index
    %52 = vector.load %arg6[%c0_47, %c0_48] : memref<128x4xf32, #tpu.memory_space<vmem>>, vector<128x4xf32>
    tpu.vector_store %arg6[%c0_47, %c0_48], %51 {strides = array<i32>} : memref<128x4xf32, #tpu.memory_space<vmem>>, vector<128x4xf32>,
    %c0_49 = arith.constant 0 : index
    %c0_50 = arith.constant 0 : index
    %53 = vector.load %arg6[%c0_49, %c0_50] : memref<128x4xf32, #tpu.memory_space<vmem>>, vector<128x4xf32>
    %54 = vector.shape_cast %53 : vector<128x4xf32> to vector<8x16x4xf32>
    %c0_51 = arith.constant 0 : index
    %c0_52 = arith.constant 0 : index
    %c0_53 = arith.constant 0 : index
    %c0_54 = arith.constant 0 : index
    %c0_55 = arith.constant 0 : index
    %55 = vector.load %arg5[%c0_51, %c0_52, %c0_53, %c0_54, %c0_55] : memref<1x8x2x16x8xf32, #tpu.memory_space<vmem>>, vector<1x8x1x16x4xf32>
    %56 = vector.shape_cast %55 : vector<1x8x1x16x4xf32> to vector<8x16x4xf32>
    %57 = vector.shape_cast %54 : vector<8x16x4xf32> to vector<1x8x1x16x4xf32>
    tpu.vector_store %arg5[%c0_51, %c0_52, %c0_53, %c0_54, %c0_55], %57 {strides = array<i32>} : memref<1x8x2x16x8xf32, #tpu.memory_space<vmem>>, vector<1x8x1x16x4xf32>,
    %c0_56 = arith.constant 0 : index
    %c0_57 = arith.constant 0 : index
    %58 = vector.load %arg6[%c0_56, %c0_57] : memref<128x4xf32, #tpu.memory_space<vmem>>, vector<128x4xf32>
    tpu.vector_store %arg6[%c0_56, %c0_57], %3 {strides = array<i32>} : memref<128x4xf32, #tpu.memory_space<vmem>>, vector<128x4xf32>,
    %c0_i32_58 = arith.constant 0 : i32
    %59 = arith.addi %0, %c0_i32_58 : i32
    %c0_i32_59 = arith.constant 0 : i32
    %60 = arith.addi %59, %c0_i32_59 : i32
    %c0_60 = arith.constant 0 : index
    %61 = arith.index_cast %60 : i32 to index
    %c1_61 = arith.constant 1 : index
    %c0_62 = arith.constant 0 : index
    %62 = vector.load %arg2[%c0_60, %61, %c1_61, %c0_62] : memref<1x18x18x4xf32, #tpu.memory_space<vmem>>, vector<1x8x16x4xf32>
    %63 = vector.shape_cast %62 : vector<1x8x16x4xf32> to vector<8x16x4xf32>
    %c0_63 = arith.constant 0 : index
    %c0_64 = arith.constant 0 : index
    %64 = vector.load %arg6[%c0_63, %c0_64] : memref<128x4xf32, #tpu.memory_space<vmem>>, vector<128x4xf32>
    %65 = vector.shape_cast %63 : vector<8x16x4xf32> to vector<128x4xf32>
    %c4 = arith.constant 4 : index
    %c0_65 = arith.constant 0 : index
    %c0_66 = arith.constant 0 : index
    %66 = vector.load %arg3[%c4, %c0_65, %c0_66] : memref<16x4x4xf32, #tpu.memory_space<vmem>>, vector<1x4x4xf32>
    %67 = vector.shape_cast %66 : vector<1x4x4xf32> to vector<4x4xf32>
    %cst_67 = arith.constant dense<0.000000e+00> : vector<128x4xf32>
    %68 = tpu.matmul %65, %67, %cst_67 {dimension_numbers = #tpu.dot_dimension_numbers<[1], [0], [0], [1], [0, 0, 1, 1], [], []>} : vector<128x4xf32>, vector<4x4xf32>, vector<128x4xf32> -> vector<128x4xf32>
    %69 = arith.addf %64, %68 : vector<128x4xf32>
    %c0_68 = arith.constant 0 : index
    %c0_69 = arith.constant 0 : index
    %70 = vector.load %arg6[%c0_68, %c0_69] : memref<128x4xf32, #tpu.memory_space<vmem>>, vector<128x4xf32>
    tpu.vector_store %arg6[%c0_68, %c0_69], %69 {strides = array<i32>} : memref<128x4xf32, #tpu.memory_space<vmem>>, vector<128x4xf32>,
    %c0_i32_70 = arith.constant 0 : i32
    %71 = arith.addi %0, %c0_i32_70 : i32
    %c0_i32_71 = arith.constant 0 : i32
    %72 = arith.addi %71, %c0_i32_71 : i32
    %c0_72 = arith.constant 0 : index
    %73 = arith.index_cast %72 : i32 to index
    %c2_73 = arith.constant 2 : index
    %c0_74 = arith.constant 0 : index
    %74 = vector.load %arg2[%c0_72, %73, %c2_73, %c0_74] : memref<1x18x18x4xf32, #tpu.memory_space<vmem>>, vector<1x8x16x4xf32>
    %75 = vector.shape_cast %74 : vector<1x8x16x4xf32> to vector<8x16x4xf32>
    %c0_75 = arith.constant 0 : index
    %c0_76 = arith.constant 0 : index
    %76 = vector.load %arg6[%c0_75, %c0_76] : memref<128x4xf32, #tpu.memory_space<vmem>>, vector<128x4xf32>
    %77 = vector.shape_cast %75 : vector<8x16x4xf32> to vector<128x4xf32>
    %c5 = arith.constant 5 : index
    %c0_77 = arith.constant 0 : index
    %c0_78 = arith.constant 0 : index
    %78 = vector.load %arg3[%c5, %c0_77, %c0_78] : memref<16x4x4xf32, #tpu.memory_space<vmem>>, vector<1x4x4xf32>
    %79 = vector.shape_cast %78 : vector<1x4x4xf32> to vector<4x4xf32>
    %cst_79 = arith.constant dense<0.000000e+00> : vector<128x4xf32>
    %80 = tpu.matmul %77, %79, %cst_79 {dimension_numbers = #tpu.dot_dimension_numbers<[1], [0], [0], [1], [0, 0, 1, 1], [], []>} : vector<128x4xf32>, vector<4x4xf32>, vector<128x4xf32> -> vector<128x4xf32>
    %81 = arith.addf %76, %80 : vector<128x4xf32>
    %c0_80 = arith.constant 0 : index
    %c0_81 = arith.constant 0 : index
    %82 = vector.load %arg6[%c0_80, %c0_81] : memref<128x4xf32, #tpu.memory_space<vmem>>, vector<128x4xf32>
    tpu.vector_store %arg6[%c0_80, %c0_81], %81 {strides = array<i32>} : memref<128x4xf32, #tpu.memory_space<vmem>>, vector<128x4xf32>,
    %c0_i32_82 = arith.constant 0 : i32
    %83 = arith.addi %0, %c0_i32_82 : i32
    %c1_i32_83 = arith.constant 1 : i32
    %84 = arith.addi %83, %c1_i32_83 : i32
    %c0_84 = arith.constant 0 : index
    %85 = arith.index_cast %84 : i32 to index
    %c1_85 = arith.constant 1 : index
    %c0_86 = arith.constant 0 : index
    %86 = vector.load %arg2[%c0_84, %85, %c1_85, %c0_86] : memref<1x18x18x4xf32, #tpu.memory_space<vmem>>, vector<1x8x16x4xf32>
    %87 = vector.shape_cast %86 : vector<1x8x16x4xf32> to vector<8x16x4xf32>
    %c0_87 = arith.constant 0 : index
    %c0_88 = arith.constant 0 : index
    %88 = vector.load %arg6[%c0_87, %c0_88] : memref<128x4xf32, #tpu.memory_space<vmem>>, vector<128x4xf32>
    %89 = vector.shape_cast %87 : vector<8x16x4xf32> to vector<128x4xf32>
    %c6 = arith.constant 6 : index
    %c0_89 = arith.constant 0 : index
    %c0_90 = arith.constant 0 : index
    %90 = vector.load %arg3[%c6, %c0_89, %c0_90] : memref<16x4x4xf32, #tpu.memory_space<vmem>>, vector<1x4x4xf32>
    %91 = vector.shape_cast %90 : vector<1x4x4xf32> to vector<4x4xf32>
    %cst_91 = arith.constant dense<0.000000e+00> : vector<128x4xf32>
    %92 = tpu.matmul %89, %91, %cst_91 {dimension_numbers = #tpu.dot_dimension_numbers<[1], [0], [0], [1], [0, 0, 1, 1], [], []>} : vector<128x4xf32>, vector<4x4xf32>, vector<128x4xf32> -> vector<128x4xf32>
    %93 = arith.addf %88, %92 : vector<128x4xf32>
    %c0_92 = arith.constant 0 : index
    %c0_93 = arith.constant 0 : index
    %94 = vector.load %arg6[%c0_92, %c0_93] : memref<128x4xf32, #tpu.memory_space<vmem>>, vector<128x4xf32>
    tpu.vector_store %arg6[%c0_92, %c0_93], %93 {strides = array<i32>} : memref<128x4xf32, #tpu.memory_space<vmem>>, vector<128x4xf32>,
    %c0_i32_94 = arith.constant 0 : i32
    %95 = arith.addi %0, %c0_i32_94 : i32
    %c1_i32_95 = arith.constant 1 : i32
    %96 = arith.addi %95, %c1_i32_95 : i32
    %c0_96 = arith.constant 0 : index
    %97 = arith.index_cast %96 : i32 to index
    %c2_97 = arith.constant 2 : index
    %c0_98 = arith.constant 0 : index
    %98 = vector.load %arg2[%c0_96, %97, %c2_97, %c0_98] : memref<1x18x18x4xf32, #tpu.memory_space<vmem>>, vector<1x8x16x4xf32>
    %99 = vector.shape_cast %98 : vector<1x8x16x4xf32> to vector<8x16x4xf32>
    %c0_99 = arith.constant 0 : index
    %c0_100 = arith.constant 0 : index
    %100 = vector.load %arg6[%c0_99, %c0_100] : memref<128x4xf32, #tpu.memory_space<vmem>>, vector<128x4xf32>
    %101 = vector.shape_cast %99 : vector<8x16x4xf32> to vector<128x4xf32>
    %c7 = arith.constant 7 : index
    %c0_101 = arith.constant 0 : index
    %c0_102 = arith.constant 0 : index
    %102 = vector.load %arg3[%c7, %c0_101, %c0_102] : memref<16x4x4xf32, #tpu.memory_space<vmem>>, vector<1x4x4xf32>
    %103 = vector.shape_cast %102 : vector<1x4x4xf32> to vector<4x4xf32>
    %cst_103 = arith.constant dense<0.000000e+00> : vector<128x4xf32>
    %104 = tpu.matmul %101, %103, %cst_103 {dimension_numbers = #tpu.dot_dimension_numbers<[1], [0], [0], [1], [0, 0, 1, 1], [], []>} : vector<128x4xf32>, vector<4x4xf32>, vector<128x4xf32> -> vector<128x4xf32>
    %105 = arith.addf %100, %104 : vector<128x4xf32>
    %c0_104 = arith.constant 0 : index
    %c0_105 = arith.constant 0 : index
    %106 = vector.load %arg6[%c0_104, %c0_105] : memref<128x4xf32, #tpu.memory_space<vmem>>, vector<128x4xf32>
    tpu.vector_store %arg6[%c0_104, %c0_105], %105 {strides = array<i32>} : memref<128x4xf32, #tpu.memory_space<vmem>>, vector<128x4xf32>,
    %c0_106 = arith.constant 0 : index
    %c0_107 = arith.constant 0 : index
    %107 = vector.load %arg6[%c0_106, %c0_107] : memref<128x4xf32, #tpu.memory_space<vmem>>, vector<128x4xf32>
    %108 = vector.shape_cast %107 : vector<128x4xf32> to vector<8x16x4xf32>
    %c0_108 = arith.constant 0 : index
    %c0_109 = arith.constant 0 : index
    %c0_110 = arith.constant 0 : index
    %c0_111 = arith.constant 0 : index
    %c4_112 = arith.constant 4 : index
    %109 = vector.load %arg5[%c0_108, %c0_109, %c0_110, %c0_111, %c4_112] : memref<1x8x2x16x8xf32, #tpu.memory_space<vmem>>, vector<1x8x1x16x4xf32>
    %110 = vector.shape_cast %109 : vector<1x8x1x16x4xf32> to vector<8x16x4xf32>
    %111 = vector.shape_cast %108 : vector<8x16x4xf32> to vector<1x8x1x16x4xf32>
    tpu.vector_store %arg5[%c0_108, %c0_109, %c0_110, %c0_111, %c4_112], %111 {strides = array<i32>} : memref<1x8x2x16x8xf32, #tpu.memory_space<vmem>>, vector<1x8x1x16x4xf32>,
    %c0_113 = arith.constant 0 : index
    %c0_114 = arith.constant 0 : index
    %112 = vector.load %arg6[%c0_113, %c0_114] : memref<128x4xf32, #tpu.memory_space<vmem>>, vector<128x4xf32>
    tpu.vector_store %arg6[%c0_113, %c0_114], %3 {strides = array<i32>} : memref<128x4xf32, #tpu.memory_space<vmem>>, vector<128x4xf32>,
    %c1_i32_115 = arith.constant 1 : i32
    %113 = arith.addi %0, %c1_i32_115 : i32
    %c0_i32_116 = arith.constant 0 : i32
    %114 = arith.addi %113, %c0_i32_116 : i32
    %c0_117 = arith.constant 0 : index
    %115 = arith.index_cast %114 : i32 to index
    %c0_118 = arith.constant 0 : index
    %c0_119 = arith.constant 0 : index
    %116 = vector.load %arg2[%c0_117, %115, %c0_118, %c0_119] : memref<1x18x18x4xf32, #tpu.memory_space<vmem>>, vector<1x8x16x4xf32>
    %117 = vector.shape_cast %116 : vector<1x8x16x4xf32> to vector<8x16x4xf32>
    %c0_120 = arith.constant 0 : index
    %c0_121 = arith.constant 0 : index
    %118 = vector.load %arg6[%c0_120, %c0_121] : memref<128x4xf32, #tpu.memory_space<vmem>>, vector<128x4xf32>
    %119 = vector.shape_cast %117 : vector<8x16x4xf32> to vector<128x4xf32>
    %c8 = arith.constant 8 : index
    %c0_122 = arith.constant 0 : index
    %c0_123 = arith.constant 0 : index
    %120 = vector.load %arg3[%c8, %c0_122, %c0_123] : memref<16x4x4xf32, #tpu.memory_space<vmem>>, vector<1x4x4xf32>
    %121 = vector.shape_cast %120 : vector<1x4x4xf32> to vector<4x4xf32>
    %cst_124 = arith.constant dense<0.000000e+00> : vector<128x4xf32>
    %122 = tpu.matmul %119, %121, %cst_124 {dimension_numbers = #tpu.dot_dimension_numbers<[1], [0], [0], [1], [0, 0, 1, 1], [], []>} : vector<128x4xf32>, vector<4x4xf32>, vector<128x4xf32> -> vector<128x4xf32>
    %123 = arith.addf %118, %122 : vector<128x4xf32>
    %c0_125 = arith.constant 0 : index
    %c0_126 = arith.constant 0 : index
    %124 = vector.load %arg6[%c0_125, %c0_126] : memref<128x4xf32, #tpu.memory_space<vmem>>, vector<128x4xf32>
    tpu.vector_store %arg6[%c0_125, %c0_126], %123 {strides = array<i32>} : memref<128x4xf32, #tpu.memory_space<vmem>>, vector<128x4xf32>,
    %c1_i32_127 = arith.constant 1 : i32
    %125 = arith.addi %0, %c1_i32_127 : i32
    %c0_i32_128 = arith.constant 0 : i32
    %126 = arith.addi %125, %c0_i32_128 : i32
    %c0_129 = arith.constant 0 : index
    %127 = arith.index_cast %126 : i32 to index
    %c1_130 = arith.constant 1 : index
    %c0_131 = arith.constant 0 : index
    %128 = vector.load %arg2[%c0_129, %127, %c1_130, %c0_131] : memref<1x18x18x4xf32, #tpu.memory_space<vmem>>, vector<1x8x16x4xf32>
    %129 = vector.shape_cast %128 : vector<1x8x16x4xf32> to vector<8x16x4xf32>
    %c0_132 = arith.constant 0 : index
    %c0_133 = arith.constant 0 : index
    %130 = vector.load %arg6[%c0_132, %c0_133] : memref<128x4xf32, #tpu.memory_space<vmem>>, vector<128x4xf32>
    %131 = vector.shape_cast %129 : vector<8x16x4xf32> to vector<128x4xf32>
    %c9 = arith.constant 9 : index
    %c0_134 = arith.constant 0 : index
    %c0_135 = arith.constant 0 : index
    %132 = vector.load %arg3[%c9, %c0_134, %c0_135] : memref<16x4x4xf32, #tpu.memory_space<vmem>>, vector<1x4x4xf32>
    %133 = vector.shape_cast %132 : vector<1x4x4xf32> to vector<4x4xf32>
    %cst_136 = arith.constant dense<0.000000e+00> : vector<128x4xf32>
    %134 = tpu.matmul %131, %133, %cst_136 {dimension_numbers = #tpu.dot_dimension_numbers<[1], [0], [0], [1], [0, 0, 1, 1], [], []>} : vector<128x4xf32>, vector<4x4xf32>, vector<128x4xf32> -> vector<128x4xf32>
    %135 = arith.addf %130, %134 : vector<128x4xf32>
    %c0_137 = arith.constant 0 : index
    %c0_138 = arith.constant 0 : index
    %136 = vector.load %arg6[%c0_137, %c0_138] : memref<128x4xf32, #tpu.memory_space<vmem>>, vector<128x4xf32>
    tpu.vector_store %arg6[%c0_137, %c0_138], %135 {strides = array<i32>} : memref<128x4xf32, #tpu.memory_space<vmem>>, vector<128x4xf32>,
    %c1_i32_139 = arith.constant 1 : i32
    %137 = arith.addi %0, %c1_i32_139 : i32
    %c1_i32_140 = arith.constant 1 : i32
    %138 = arith.addi %137, %c1_i32_140 : i32
    %c0_141 = arith.constant 0 : index
    %139 = arith.index_cast %138 : i32 to index
    %c0_142 = arith.constant 0 : index
    %c0_143 = arith.constant 0 : index
    %140 = vector.load %arg2[%c0_141, %139, %c0_142, %c0_143] : memref<1x18x18x4xf32, #tpu.memory_space<vmem>>, vector<1x8x16x4xf32>
    %141 = vector.shape_cast %140 : vector<1x8x16x4xf32> to vector<8x16x4xf32>
    %c0_144 = arith.constant 0 : index
    %c0_145 = arith.constant 0 : index
    %142 = vector.load %arg6[%c0_144, %c0_145] : memref<128x4xf32, #tpu.memory_space<vmem>>, vector<128x4xf32>
    %143 = vector.shape_cast %141 : vector<8x16x4xf32> to vector<128x4xf32>
    %c10 = arith.constant 10 : index
    %c0_146 = arith.constant 0 : index
    %c0_147 = arith.constant 0 : index
    %144 = vector.load %arg3[%c10, %c0_146, %c0_147] : memref<16x4x4xf32, #tpu.memory_space<vmem>>, vector<1x4x4xf32>
    %145 = vector.shape_cast %144 : vector<1x4x4xf32> to vector<4x4xf32>
    %cst_148 = arith.constant dense<0.000000e+00> : vector<128x4xf32>
    %146 = tpu.matmul %143, %145, %cst_148 {dimension_numbers = #tpu.dot_dimension_numbers<[1], [0], [0], [1], [0, 0, 1, 1], [], []>} : vector<128x4xf32>, vector<4x4xf32>, vector<128x4xf32> -> vector<128x4xf32>
    %147 = arith.addf %142, %146 : vector<128x4xf32>
    %c0_149 = arith.constant 0 : index
    %c0_150 = arith.constant 0 : index
    %148 = vector.load %arg6[%c0_149, %c0_150] : memref<128x4xf32, #tpu.memory_space<vmem>>, vector<128x4xf32>
    tpu.vector_store %arg6[%c0_149, %c0_150], %147 {strides = array<i32>} : memref<128x4xf32, #tpu.memory_space<vmem>>, vector<128x4xf32>,
    %c1_i32_151 = arith.constant 1 : i32
    %149 = arith.addi %0, %c1_i32_151 : i32
    %c1_i32_152 = arith.constant 1 : i32
    %150 = arith.addi %149, %c1_i32_152 : i32
    %c0_153 = arith.constant 0 : index
    %151 = arith.index_cast %150 : i32 to index
    %c1_154 = arith.constant 1 : index
    %c0_155 = arith.constant 0 : index
    %152 = vector.load %arg2[%c0_153, %151, %c1_154, %c0_155] : memref<1x18x18x4xf32, #tpu.memory_space<vmem>>, vector<1x8x16x4xf32>
    %153 = vector.shape_cast %152 : vector<1x8x16x4xf32> to vector<8x16x4xf32>
    %c0_156 = arith.constant 0 : index
    %c0_157 = arith.constant 0 : index
    %154 = vector.load %arg6[%c0_156, %c0_157] : memref<128x4xf32, #tpu.memory_space<vmem>>, vector<128x4xf32>
    %155 = vector.shape_cast %153 : vector<8x16x4xf32> to vector<128x4xf32>
    %c11 = arith.constant 11 : index
    %c0_158 = arith.constant 0 : index
    %c0_159 = arith.constant 0 : index
    %156 = vector.load %arg3[%c11, %c0_158, %c0_159] : memref<16x4x4xf32, #tpu.memory_space<vmem>>, vector<1x4x4xf32>
    %157 = vector.shape_cast %156 : vector<1x4x4xf32> to vector<4x4xf32>
    %cst_160 = arith.constant dense<0.000000e+00> : vector<128x4xf32>
    %158 = tpu.matmul %155, %157, %cst_160 {dimension_numbers = #tpu.dot_dimension_numbers<[1], [0], [0], [1], [0, 0, 1, 1], [], []>} : vector<128x4xf32>, vector<4x4xf32>, vector<128x4xf32> -> vector<128x4xf32>
    %159 = arith.addf %154, %158 : vector<128x4xf32>
    %c0_161 = arith.constant 0 : index
    %c0_162 = arith.constant 0 : index
    %160 = vector.load %arg6[%c0_161, %c0_162] : memref<128x4xf32, #tpu.memory_space<vmem>>, vector<128x4xf32>
    tpu.vector_store %arg6[%c0_161, %c0_162], %159 {strides = array<i32>} : memref<128x4xf32, #tpu.memory_space<vmem>>, vector<128x4xf32>,
    %c0_163 = arith.constant 0 : index
    %c0_164 = arith.constant 0 : index
    %161 = vector.load %arg6[%c0_163, %c0_164] : memref<128x4xf32, #tpu.memory_space<vmem>>, vector<128x4xf32>
    %162 = vector.shape_cast %161 : vector<128x4xf32> to vector<8x16x4xf32>
    %c0_165 = arith.constant 0 : index
    %c0_166 = arith.constant 0 : index
    %c1_167 = arith.constant 1 : index
    %c0_168 = arith.constant 0 : index
    %c0_169 = arith.constant 0 : index
    %163 = vector.load %arg5[%c0_165, %c0_166, %c1_167, %c0_168, %c0_169] : memref<1x8x2x16x8xf32, #tpu.memory_space<vmem>>, vector<1x8x1x16x4xf32>
    %164 = vector.shape_cast %163 : vector<1x8x1x16x4xf32> to vector<8x16x4xf32>
    %165 = vector.shape_cast %162 : vector<8x16x4xf32> to vector<1x8x1x16x4xf32>
    tpu.vector_store %arg5[%c0_165, %c0_166, %c1_167, %c0_168, %c0_169], %165 {strides = array<i32>} : memref<1x8x2x16x8xf32, #tpu.memory_space<vmem>>, vector<1x8x1x16x4xf32>,
    %c0_170 = arith.constant 0 : index
    %c0_171 = arith.constant 0 : index
    %166 = vector.load %arg6[%c0_170, %c0_171] : memref<128x4xf32, #tpu.memory_space<vmem>>, vector<128x4xf32>
    tpu.vector_store %arg6[%c0_170, %c0_171], %3 {strides = array<i32>} : memref<128x4xf32, #tpu.memory_space<vmem>>, vector<128x4xf32>,
    %c1_i32_172 = arith.constant 1 : i32
    %167 = arith.addi %0, %c1_i32_172 : i32
    %c0_i32_173 = arith.constant 0 : i32
    %168 = arith.addi %167, %c0_i32_173 : i32
    %c0_174 = arith.constant 0 : index
    %169 = arith.index_cast %168 : i32 to index
    %c1_175 = arith.constant 1 : index
    %c0_176 = arith.constant 0 : index
    %170 = vector.load %arg2[%c0_174, %169, %c1_175, %c0_176] : memref<1x18x18x4xf32, #tpu.memory_space<vmem>>, vector<1x8x16x4xf32>
    %171 = vector.shape_cast %170 : vector<1x8x16x4xf32> to vector<8x16x4xf32>
    %c0_177 = arith.constant 0 : index
    %c0_178 = arith.constant 0 : index
    %172 = vector.load %arg6[%c0_177, %c0_178] : memref<128x4xf32, #tpu.memory_space<vmem>>, vector<128x4xf32>
    %173 = vector.shape_cast %171 : vector<8x16x4xf32> to vector<128x4xf32>
    %c12 = arith.constant 12 : index
    %c0_179 = arith.constant 0 : index
    %c0_180 = arith.constant 0 : index
    %174 = vector.load %arg3[%c12, %c0_179, %c0_180] : memref<16x4x4xf32, #tpu.memory_space<vmem>>, vector<1x4x4xf32>
    %175 = vector.shape_cast %174 : vector<1x4x4xf32> to vector<4x4xf32>
    %cst_181 = arith.constant dense<0.000000e+00> : vector<128x4xf32>
    %176 = tpu.matmul %173, %175, %cst_181 {dimension_numbers = #tpu.dot_dimension_numbers<[1], [0], [0], [1], [0, 0, 1, 1], [], []>} : vector<128x4xf32>, vector<4x4xf32>, vector<128x4xf32> -> vector<128x4xf32>
    %177 = arith.addf %172, %176 : vector<128x4xf32>
    %c0_182 = arith.constant 0 : index
    %c0_183 = arith.constant 0 : index
    %178 = vector.load %arg6[%c0_182, %c0_183] : memref<128x4xf32, #tpu.memory_space<vmem>>, vector<128x4xf32>
    tpu.vector_store %arg6[%c0_182, %c0_183], %177 {strides = array<i32>} : memref<128x4xf32, #tpu.memory_space<vmem>>, vector<128x4xf32>,
    %c1_i32_184 = arith.constant 1 : i32
    %179 = arith.addi %0, %c1_i32_184 : i32
    %c0_i32_185 = arith.constant 0 : i32
    %180 = arith.addi %179, %c0_i32_185 : i32
    %c0_186 = arith.constant 0 : index
    %181 = arith.index_cast %180 : i32 to index
    %c2_187 = arith.constant 2 : index
    %c0_188 = arith.constant 0 : index
    %182 = vector.load %arg2[%c0_186, %181, %c2_187, %c0_188] : memref<1x18x18x4xf32, #tpu.memory_space<vmem>>, vector<1x8x16x4xf32>
    %183 = vector.shape_cast %182 : vector<1x8x16x4xf32> to vector<8x16x4xf32>
    %c0_189 = arith.constant 0 : index
    %c0_190 = arith.constant 0 : index
    %184 = vector.load %arg6[%c0_189, %c0_190] : memref<128x4xf32, #tpu.memory_space<vmem>>, vector<128x4xf32>
    %185 = vector.shape_cast %183 : vector<8x16x4xf32> to vector<128x4xf32>
    %c13 = arith.constant 13 : index
    %c0_191 = arith.constant 0 : index
    %c0_192 = arith.constant 0 : index
    %186 = vector.load %arg3[%c13, %c0_191, %c0_192] : memref<16x4x4xf32, #tpu.memory_space<vmem>>, vector<1x4x4xf32>
    %187 = vector.shape_cast %186 : vector<1x4x4xf32> to vector<4x4xf32>
    %cst_193 = arith.constant dense<0.000000e+00> : vector<128x4xf32>
    %188 = tpu.matmul %185, %187, %cst_193 {dimension_numbers = #tpu.dot_dimension_numbers<[1], [0], [0], [1], [0, 0, 1, 1], [], []>} : vector<128x4xf32>, vector<4x4xf32>, vector<128x4xf32> -> vector<128x4xf32>
    %189 = arith.addf %184, %188 : vector<128x4xf32>
    %c0_194 = arith.constant 0 : index
    %c0_195 = arith.constant 0 : index
    %190 = vector.load %arg6[%c0_194, %c0_195] : memref<128x4xf32, #tpu.memory_space<vmem>>, vector<128x4xf32>
    tpu.vector_store %arg6[%c0_194, %c0_195], %189 {strides = array<i32>} : memref<128x4xf32, #tpu.memory_space<vmem>>, vector<128x4xf32>,
    %c1_i32_196 = arith.constant 1 : i32
    %191 = arith.addi %0, %c1_i32_196 : i32
    %c1_i32_197 = arith.constant 1 : i32
    %192 = arith.addi %191, %c1_i32_197 : i32
    %c0_198 = arith.constant 0 : index
    %193 = arith.index_cast %192 : i32 to index
    %c1_199 = arith.constant 1 : index
    %c0_200 = arith.constant 0 : index
    %194 = vector.load %arg2[%c0_198, %193, %c1_199, %c0_200] : memref<1x18x18x4xf32, #tpu.memory_space<vmem>>, vector<1x8x16x4xf32>
    %195 = vector.shape_cast %194 : vector<1x8x16x4xf32> to vector<8x16x4xf32>
    %c0_201 = arith.constant 0 : index
    %c0_202 = arith.constant 0 : index
    %196 = vector.load %arg6[%c0_201, %c0_202] : memref<128x4xf32, #tpu.memory_space<vmem>>, vector<128x4xf32>
    %197 = vector.shape_cast %195 : vector<8x16x4xf32> to vector<128x4xf32>
    %c14 = arith.constant 14 : index
    %c0_203 = arith.constant 0 : index
    %c0_204 = arith.constant 0 : index
    %198 = vector.load %arg3[%c14, %c0_203, %c0_204] : memref<16x4x4xf32, #tpu.memory_space<vmem>>, vector<1x4x4xf32>
    %199 = vector.shape_cast %198 : vector<1x4x4xf32> to vector<4x4xf32>
    %cst_205 = arith.constant dense<0.000000e+00> : vector<128x4xf32>
    %200 = tpu.matmul %197, %199, %cst_205 {dimension_numbers = #tpu.dot_dimension_numbers<[1], [0], [0], [1], [0, 0, 1, 1], [], []>} : vector<128x4xf32>, vector<4x4xf32>, vector<128x4xf32> -> vector<128x4xf32>
    %201 = arith.addf %196, %200 : vector<128x4xf32>
    %c0_206 = arith.constant 0 : index
    %c0_207 = arith.constant 0 : index
    %202 = vector.load %arg6[%c0_206, %c0_207] : memref<128x4xf32, #tpu.memory_space<vmem>>, vector<128x4xf32>
    tpu.vector_store %arg6[%c0_206, %c0_207], %201 {strides = array<i32>} : memref<128x4xf32, #tpu.memory_space<vmem>>, vector<128x4xf32>,
    %c1_i32_208 = arith.constant 1 : i32
    %203 = arith.addi %0, %c1_i32_208 : i32
    %c1_i32_209 = arith.constant 1 : i32
    %204 = arith.addi %203, %c1_i32_209 : i32
    %c0_210 = arith.constant 0 : index
    %205 = arith.index_cast %204 : i32 to index
    %c2_211 = arith.constant 2 : index
    %c0_212 = arith.constant 0 : index
    %206 = vector.load %arg2[%c0_210, %205, %c2_211, %c0_212] : memref<1x18x18x4xf32, #tpu.memory_space<vmem>>, vector<1x8x16x4xf32>
    %207 = vector.shape_cast %206 : vector<1x8x16x4xf32> to vector<8x16x4xf32>
    %c0_213 = arith.constant 0 : index
    %c0_214 = arith.constant 0 : index
    %208 = vector.load %arg6[%c0_213, %c0_214] : memref<128x4xf32, #tpu.memory_space<vmem>>, vector<128x4xf32>
    %209 = vector.shape_cast %207 : vector<8x16x4xf32> to vector<128x4xf32>
    %c15 = arith.constant 15 : index
    %c0_215 = arith.constant 0 : index
    %c0_216 = arith.constant 0 : index
    %210 = vector.load %arg3[%c15, %c0_215, %c0_216] : memref<16x4x4xf32, #tpu.memory_space<vmem>>, vector<1x4x4xf32>
    %211 = vector.shape_cast %210 : vector<1x4x4xf32> to vector<4x4xf32>
    %cst_217 = arith.constant dense<0.000000e+00> : vector<128x4xf32>
    %212 = tpu.matmul %209, %211, %cst_217 {dimension_numbers = #tpu.dot_dimension_numbers<[1], [0], [0], [1], [0, 0, 1, 1], [], []>} : vector<128x4xf32>, vector<4x4xf32>, vector<128x4xf32> -> vector<128x4xf32>
    %213 = arith.addf %208, %212 : vector<128x4xf32>
    %c0_218 = arith.constant 0 : index
    %c0_219 = arith.constant 0 : index
    %214 = vector.load %arg6[%c0_218, %c0_219] : memref<128x4xf32, #tpu.memory_space<vmem>>, vector<128x4xf32>
    tpu.vector_store %arg6[%c0_218, %c0_219], %213 {strides = array<i32>} : memref<128x4xf32, #tpu.memory_space<vmem>>, vector<128x4xf32>,
    %c0_220 = arith.constant 0 : index
    %c0_221 = arith.constant 0 : index
    %215 = vector.load %arg6[%c0_220, %c0_221] : memref<128x4xf32, #tpu.memory_space<vmem>>, vector<128x4xf32>
    %216 = vector.shape_cast %215 : vector<128x4xf32> to vector<8x16x4xf32>
    %c0_222 = arith.constant 0 : index
    %c0_223 = arith.constant 0 : index
    %c1_224 = arith.constant 1 : index
    %c0_225 = arith.constant 0 : index
    %c4_226 = arith.constant 4 : index
    %217 = vector.load %arg5[%c0_222, %c0_223, %c1_224, %c0_225, %c4_226] : memref<1x8x2x16x8xf32, #tpu.memory_space<vmem>>, vector<1x8x1x16x4xf32>
    %218 = vector.shape_cast %217 : vector<1x8x1x16x4xf32> to vector<8x16x4xf32>
    %219 = vector.shape_cast %216 : vector<8x16x4xf32> to vector<1x8x1x16x4xf32>
    tpu.vector_store %arg5[%c0_222, %c0_223, %c1_224, %c0_225, %c4_226], %219 {strides = array<i32>} : memref<1x8x2x16x8xf32, #tpu.memory_space<vmem>>, vector<1x8x1x16x4xf32>,
    return
  }
  func.func @transform_0(%arg0: i32, %arg1: i32) -> (i32, i32, i32, i32) {
    %c0_i32 = arith.constant 0 : i32
    %c0_i32_0 = arith.constant 0 : i32
    %c0_i32_1 = arith.constant 0 : i32
    %c0_i32_2 = arith.constant 0 : i32
    return %arg0, %c0_i32, %c0_i32_0, %c0_i32_1 : i32, i32, i32, i32
  }
  func.func @transform_1(%arg0: i32, %arg1: i32) -> (i32, i32, i32) {
    %c0_i32 = arith.constant 0 : i32
    %c0_i32_0 = arith.constant 0 : i32
    %c0_i32_1 = arith.constant 0 : i32
    %c0_i32_2 = arith.constant 0 : i32
    return %c0_i32, %c0_i32_0, %c0_i32_1 : i32, i32, i32
  }
  func.func @transform_2(%arg0: i32, %arg1: i32) -> (i32, i32) {
    %c0_i32 = arith.constant 0 : i32
    %c0_i32_0 = arith.constant 0 : i32
    %c0_i32_1 = arith.constant 0 : i32
    return %c0_i32, %c0_i32_0 : i32, i32
  }
  func.func @transform_3(%arg0: i32, %arg1: i32) -> (i32, i32, i32, i32, i32) {
    %c0_i32 = arith.constant 0 : i32
    %c0_i32_0 = arith.constant 0 : i32
    %c0_i32_1 = arith.constant 0 : i32
    %c0_i32_2 = arith.constant 0 : i32
    return %arg0, %arg1, %c0_i32, %c0_i32_0, %c0_i32_1 : i32, i32, i32, i32, i32
  }
}

</mosaic_0001>

<bundles_post_ra>
// kernel: tpu_custom_call.1
= control target key start
LH: loop header
LB: loop body
LE: loop exit
PB: predicated region body
PF: predicated region fallthrough
CT: control target
= control target key end

     0   :  { %s6148_s12 = smov 0   ;;  %s6150_s13 = smov 0   ;;  %s7537_s0 = inlined_call_operand.vmem [shape: f32[2,18,18,4], index: 0, kind: input, shape index: {}]   ;;  %s7538_s1 = inlined_call_operand.vmem [shape: f32[16,4,4], index: 1, kind: input, shape index: {}]   ;;  %s7539_s2 = inlined_call_operand.vmem [shape: f32[1,4], index: 2, kind: input, shape index: {}]   ;;  %s7540_s3 = inlined_call_operand.vmem [shape: f32[2,16,2,16,8], index: 3, kind: output, shape index: {}]  }
   0x1   :  { %s6152_s14 = smov 0   ;;  %s6154_s15 = smov 0  }
   0x2   :  { %s6156_s16 = smov 0  }
   0x3 LB: > { %s22_s17 = sadd.s32 1, %s6117_s14  ;;  %s25_s18 = sadd.s32 1, %s6121_s15  ;;  %s6125_s16 = sphi %s6156_s16, %s13_s16   ;;  %s6121_s15 = sphi %s6154_s15, %s7545_s15   ;;  %s6117_s14 = sphi %s6152_s14, %s7544_s14   ;;  %s6113_s13 = sphi %s6150_s13, %s7543_s13   ;;  %s6109_s12 = sphi %s6148_s12, %s7542_s12  }
   0x4   : > { %p23_p0 = scmp.ge.s32.totalorder %s22_s17, 2  ;;  %p4831_p1 = scmp.ge.s32.totalorder %s6125_s16, 1 }
   0x5   : > { %p151_p2 = scmp.lt.s32.totalorder %s6125_s16, 5 }
   0x6   : > { %s7547_s17 = smov (%p23_p0, %s22_s17), 0  ;;  %s7549_s18 = smov (!%p23_p0, %s25_s18), %s6121_s15 }
   0x7   : > { %p152_p3 = pnand %p4831_p1, %p151_p2  ;;  %p27_p4 = scmp.ge.s32.totalorder %s7549_s18, 2 }
   0x8   : > { %v255_v0 = vld [vmem:[%s7538_s1] sm:$0xf] (!%p152_p3)  ;;  %vm304_vm0 = vcmask (!%p152_p3), 1043456   ;;  %p180_p5 = scmp.lt.s32.totalorder (!%p152_p3), %s6113_s13, 1  ;;  %v4893_v1 = vld [vmem:[%s7538_s1 + $0x8] sm:$0xf] (!%p152_p3) }
   0x9   : > { %s7551_s18 = smov (%p27_p4, %s7549_s18), 0  ;;  %155 = sbr.rel (%p152_p3) target bundleno = 625 (0x271), region = 32 }
   0xa   : > { %5629 = vmatprep.subr.msk.mxu0 (!%p152_p3), %vm304_vm0, %v255_v0  ;;  %v4857_v2 = vld [vmem:[%s7538_s1 + $0x4] sm:$0xf] (!%p152_p3)  ;;  %v4927_v3 = vld [vmem:[%s7538_s1 + $0xc] sm:$0xf] (!%p152_p3)  ;;  %s4839_s27 = smul.u32 (!%p152_p3), 192, %s6109_s12  ;;  %vm204_vm1 = vcmask (!%p152_p3), 31744  }
   0xb   : > { %5630 = vmatpush3.msk.msra.mxu0 (!%p152_p3), %vm304_vm0, %v255_v0  ;;  %5655 = vmatprep.subr.msk.mxu1 (!%p152_p3), %vm304_vm0, %v4857_v2  ;;  %v6216_v7 = vld [vmem:[%s7538_s1 + $0x10] sm:$0xf] (!%p152_p3)  ;;  %v6246_v13 = vld [vmem:[%s7538_s1 + $0x14] sm:$0xf] (!%p152_p3)  ;;  %v4997_v38 = vld [vmem:[%s7538_s1 + $0x18] sm:$0xf] (!%p152_p3) }
   0xc   : > { %5681 = vmatprep.subr.msk.mxu0 (!%p152_p3), %vm304_vm0, %v4893_v1  ;;  %5656 = vmatpush3.msk.msra.mxu1 (!%p152_p3), %vm304_vm0, %v4857_v2  ;;  %v5031_v39 = vld [vmem:[%s7538_s1 + $0x1c] sm:$0xf] (!%p152_p3)  ;;  %v6471_v45 = vld [vmem:[%s7538_s1 + $0x20] sm:$0xf] (!%p152_p3)  ;;  %v6489_v48 = vld [vmem:[%s7538_s1 + $0x24] sm:$0xf] (!%p152_p3) }
   0xd   : > { %5707 = vmatprep.subr.msk.mxu1 (!%p152_p3), %vm304_vm0, %v4927_v3  ;;  %v6525_v53 = vld [vmem:[%s7539_s2] ss:$0 sm:$0xff] (!%p152_p3)  ;;  %v5135_v63 = vld [vmem:[%s7538_s1 + $0x28] sm:$0xf] (!%p152_p3)  ;;  %v5169_v0 = vld [vmem:[%s7538_s1 + $0x2c] sm:$0xf] (!%p152_p3) }
   0xe   : > { %206 = vst.msk [vmem:[#allocation2 + $0x8] sm:$0xff] (!%p152_p3), %vm204_vm1, %v6525_v53  ;;  %205 = vst.msk [vmem:[#allocation2] sm:$0xff] (!%p152_p3), %vm204_vm1, %v6525_v53  ;;  %s4833_s20 = sshll.u32 (!%p152_p3), %s6109_s12, 3  ;;  %s6127_s26 = smov (!%p152_p3), 4   ;;  %vm2450_vm2 = vcmask (!%p152_p3), 64544  }
   0xf   : > { %207 = vst.msk [vmem:[#allocation2 + $0x10] sm:$0xff] (!%p152_p3), %vm204_vm1, %v6525_v53  ;;  %208 = vst.msk [vmem:[#allocation2 + $0x18] sm:$0xff] (!%p152_p3), %vm204_vm1, %v6525_v53  ;;  %p7003_p6 = scmp.lt.s32.totalorder (!%p152_p3), %s4833_s20, 15 }
  0x10   : > { %s7553_s13 = smov (!%p180_p5, %s6113_s13), 1  ;;  %209 = vst.msk [vmem:[#allocation2 + $0x20] sm:$0xff] %vm204_vm1, %v6525_v53  ;;  %210 = vst.msk [vmem:[#allocation2 + $0x28] sm:$0xff] %vm204_vm1, %v6525_v53 }
  0x11   : > { %s6045_s28 = smul.u32 432, %s7553_s13  ;;  %211 = vst.msk [vmem:[#allocation2 + $0x30] sm:$0xff] %vm204_vm1, %v6525_v53  ;;  %212 = vst.msk [vmem:[#allocation2 + $0x38] sm:$0xff] %vm204_vm1, %v6525_v53  ;;  %s7555_s20 = smov (!%p7003_p6, %s4833_s20), 15 }
  0x12   : > { %213 = vst.msk [vmem:[#allocation2 + $0x40] sm:$0xff] %vm204_vm1, %v6525_v53  ;;  %214 = vst.msk [vmem:[#allocation2 + $0x48] sm:$0xff] %vm204_vm1, %v6525_v53  ;;  %s4834_s12 = sshll.u32 %s7555_s20, 2  ;;  %s4835_s22 = sshll.u32 %s7553_s13, 6 }
  0x13   : > { %s184_s4 = scalar_lea.vmem %s7537_s0, %s6045_s28  ;;  %215 = vst.msk [vmem:[#allocation2 + $0x50] sm:$0xff] %vm204_vm1, %v6525_v53  ;;  %216 = vst.msk [vmem:[#allocation2 + $0x58] sm:$0xff] %vm204_vm1, %v6525_v53 }
  0x14   : > { %s6205_s5 = scalar_lea.vmem %s184_s4, %s4839_s27  ;;  %217 = vst.msk [vmem:[#allocation2 + $0x60] sm:$0xff] %vm204_vm1, %v6525_v53  ;;  %218 = vst.msk [vmem:[#allocation2 + $0x68] sm:$0xff] %vm204_vm1, %v6525_v53 }
  0x15   : > { %v223_v4 = vld [vmem:[%s6205_s5] sm:$0xff]  ;;  %v224_v5 = vld [vmem:[%s6205_s5 + $0x8] sm:$0xff]  ;;  %v6210_v6 = vld [vmem:[%s6205_s5 + $0x18] sm:$0xff]  ;;  %219 = vst.msk [vmem:[#allocation2 + $0x70] sm:$0xff] %vm204_vm1, %v6525_v53 }
  0x16   : > { %5631 = vmatprep.mubr.msk.f32.mxu0 %vm204_vm1, %v223_v4  ;;  %v6220_v8 = vld [vmem:[%s6205_s5 + $0x1] sm:$0xff]  ;;  %v6223_v9 = vld [vmem:[%s6205_s5 + $0x9] sm:$0xff]  ;;  %v6237_v12 = vld [vmem:[%s6205_s5 + $0x19] sm:$0xff]  ;;  %220 = vst.msk [vmem:[#allocation2 + $0x78] sm:$0xff] %vm204_vm1, %v6525_v53 }
  0x17   : > { %5632 = vmatmul.mubr.msk.f32.vlgmr.msra.gmra.mrb[0].mxu0 %vm204_vm1, %v224_v5  ;;  %v6229_v10 = vld [vmem:[%s6205_s5 + $0x20] sm:$0xff]  ;;  %v6232_v11 = vld [vmem:[%s6205_s5 + $0x30] sm:$0xff]  ;;  %5657 = vmatprep.mubr.msk.f32.mxu1 %vm204_vm1, %v6220_v8  ;;  %v6257_v15 = vld [vmem:[%s6205_s5 + $0x38] sm:$0xff] }
  0x18   : > { %5682 = vmatpush3.msk.msra.mxu0 %vm304_vm0, %v4893_v1  ;;  %5634 = vmatprep.mubr.msk.f32.mxu0 %vm204_vm1, %v6210_v6  ;;  %v6252_v14 = vld [vmem:[%s6205_s5 + $0x21] sm:$0xff]  ;;  %v6262_v16 = vld [vmem:[%s6205_s5 + $0x31] sm:$0xff]  ;;  %v6276_v18 = vld [vmem:[%s6205_s5 + $0x39] sm:$0xff] }
  0x19   : > { %5733 = vmatprep.subr.msk.mxu0 %vm304_vm0, %v6216_v7  ;;  %5658 = vmatmul.mubr.msk.f32.vlgmr.msra.gmra.mrb[0].mxu1 %vm204_vm1, %v6223_v9  ;;  %v6265_v17 = vld [vmem:[%s6205_s5 + $0x48] sm:$0xff]  ;;  %v6281_v19 = vld [vmem:[%s6205_s5 + $0x50] sm:$0xff]  ;;  %v6287_v21 = vld [vmem:[%s6205_s5 + $0x60] sm:$0xff] }
  0x1a   : > { %5708 = vmatpush3.msk.msra.mxu1 %vm304_vm0, %v4927_v3  ;;  %5660 = vmatprep.mubr.msk.f32.mxu1 %vm204_vm1, %v6237_v12  ;;  %v6284_v20 = vld [vmem:[%s6205_s5 + $0x49] sm:$0xff]  ;;  %v6296_v22 = vld [vmem:[%s6205_s5 + $0x51] sm:$0xff]  ;;  %v6304_v24 = vld [vmem:[%s6205_s5 + $0x61] sm:$0xff] }
  0x1b   : > { %5635 = vmatmul.mubr.msk.f32.gmra.mrb[2].mxu0 %vm204_vm1, %v6229_v10  ;;  %5759 = vmatprep.subr.msk.mxu1 %vm304_vm0, %v6246_v13  ;;  %v6301_v23 = vld [vmem:[%s6205_s5 + $0x68] sm:$0xff]  ;;  %v6307_v25 = vld [vmem:[%s6205_s5 + $0x78] sm:$0xff]  ;;  %v6321_v27 = vld [vmem:[%s6205_s5 + $0x80] sm:$0xff] }
  0x1c   : > { %5637 = vmatprep.mubr.msk.f32.mxu0 %vm204_vm1, %v6232_v11  ;;  %v6316_v26 = vld [vmem:[%s6205_s5 + $0x69] sm:$0xff]  ;;  %v6324_v28 = vld [vmem:[%s6205_s5 + $0x79] sm:$0xff]  ;;  %v6336_v30 = vld [vmem:[%s6205_s5 + $0x81] sm:$0xff] }
  0x1d   : > { %5661 = vmatmul.mubr.msk.f32.gmra.mrb[2].mxu1 %vm204_vm1, %v6252_v14  ;;  %v6327_v29 = vld [vmem:[%s6205_s5 + $0x90] sm:$0xff]  ;;  %v6341_v31 = vld [vmem:[%s6205_s5 + $0x98] sm:$0xff]  ;;  %v6347_v33 = vld [vmem:[%s6205_s5 + $0xa8] sm:$0xff] }
  0x1e   : > { %5663 = vmatprep.mubr.msk.f32.mxu1 %vm204_vm1, %v6262_v16  ;;  %v6344_v32 = vld [vmem:[%s6205_s5 + $0x91] sm:$0xff]  ;;  %v6356_v34 = vld [vmem:[%s6205_s5 + $0x99] sm:$0xff]  ;;  %v6364_v36 = vld [vmem:[%s6205_s5 + $0xa9] sm:$0xff] }
  0x1f   : > { %5638 = vmatmul.mubr.msk.f32.gmra.mrb[4].mxu0 %vm204_vm1, %v6257_v15  ;;  %v6361_v35 = vld [vmem:[%s6205_s5 + $0xb0] sm:$0xff]  ;;  %v6438_v40 = vld [vmem:[%s6205_s5 + $0xc0] sm:$0xff]  ;;  %v6449_v41 = vld [vmem:[%s6205_s5 + $0xc8] sm:$0xff] }
  0x20   : > { %5640 = vmatprep.mubr.msk.f32.mxu0 %vm204_vm1, %v6265_v17  ;;  %v6373_v37 = vld [vmem:[%s6205_s5 + $0xb1] sm:$0xff]  ;;  %v6452_v42 = vld [vmem:[%s6205_s5 + $0xc1] sm:$0xff]  ;;  %v6461_v43 = vld [vmem:[%s6205_s5 + $0xc9] sm:$0xff] }
  0x21   : > { %5664 = vmatmul.mubr.msk.f32.gmra.mrb[4].mxu1 %vm204_vm1, %v6276_v18  ;;  %v1584_v44 = vld [vmem:[%s6205_s5 + $0x2] sm:$0xff]  ;;  %v1585_v46 = vld [vmem:[%s6205_s5 + $0xa] sm:$0xff]  ;;  %v6481_v47 = vld [vmem:[%s6205_s5 + $0x1a] sm:$0xff] }
  0x22   : > { %5666 = vmatprep.mubr.msk.f32.mxu1 %vm204_vm1, %v6284_v20  ;;  %v6495_v49 = vld [vmem:[%s6205_s5 + $0x22] sm:$0xff]  ;;  %v6502_v50 = vld [vmem:[%s6205_s5 + $0x32] sm:$0xff]  ;;  %v6513_v51 = vld [vmem:[%s6205_s5 + $0x3a] sm:$0xff] }
  0x23   : > { %5641 = vmatmul.mubr.msk.f32.gmra.mrb[6].mxu0 %vm204_vm1, %v6281_v19  ;;  %v6518_v52 = vld [vmem:[%s6205_s5 + $0x4a] sm:$0xff]  ;;  %v6532_v54 = vld [vmem:[%s6205_s5 + $0x52] sm:$0xff]  ;;  %v6569_v55 = vld [vmem:[%s6205_s5 + $0x62] sm:$0xff] }
  0x24   : > { %5643 = vmatprep.mubr.msk.f32.mxu0 %vm204_vm1, %v6287_v21  ;;  %v6578_v56 = vld [vmem:[%s6205_s5 + $0x6a] sm:$0xff]  ;;  %v6583_v57 = vld [vmem:[%s6205_s5 + $0x7a] sm:$0xff]  ;;  %v6592_v58 = vld [vmem:[%s6205_s5 + $0x82] sm:$0xff] }
  0x25   : > { %5667 = vmatmul.mubr.msk.f32.gmra.mrb[6].mxu1 %vm204_vm1, %v6296_v22  ;;  %v6597_v59 = vld [vmem:[%s6205_s5 + $0x92] sm:$0xff]  ;;  %v6606_v60 = vld [vmem:[%s6205_s5 + $0x9a] sm:$0xff]  ;;  %v6611_v61 = vld [vmem:[%s6205_s5 + $0xaa] sm:$0xff] }
  0x26   : > { %5669 = vmatprep.mubr.msk.f32.mxu1 %vm204_vm1, %v6304_v24  ;;  %v6620_v62 = vld [vmem:[%s6205_s5 + $0xb2] sm:$0xff]  ;;  %v6693_v1 = vld [vmem:[%s6205_s5 + $0xc2] sm:$0xff]  ;;  %v6702_v2 = vld [vmem:[%s6205_s5 + $0xca] sm:$0xff] }
  0x27   : > { %5644 = vmatmul.mubr.msk.f32.gmra.mrb[8].mxu0 %vm204_vm1, %v6301_v23  ;;  %v5219_v3 = vld [vmem:[%s7538_s1 + $0x30] sm:$0xf]  ;;  %v5253_v4 = vld [vmem:[%s7538_s1 + $0x34] sm:$0xf]  ;;  %v5287_v5 = vld [vmem:[%s7538_s1 + $0x38] sm:$0xf] }
  0x28   : > { %5646 = vmatprep.mubr.msk.f32.mxu0 %vm204_vm1, %v6307_v25 }
  0x29   : > { %5670 = vmatmul.mubr.msk.f32.gmra.mrb[8].mxu1 %vm204_vm1, %v6316_v26 }
  0x2a   : > { %5672 = vmatprep.mubr.msk.f32.mxu1 %vm204_vm1, %v6324_v28 }
  0x2b   : > { %5647 = vmatmul.mubr.msk.f32.gmra.mrb[10].mxu0 %vm204_vm1, %v6321_v27 }
  0x2c   : > { %5649 = vmatprep.mubr.msk.f32.mxu0 %vm204_vm1, %v6327_v29 }
  0x2d   : > { %5673 = vmatmul.mubr.msk.f32.gmra.mrb[10].mxu1 %vm204_vm1, %v6336_v30 }
  0x2e   : > { %5675 = vmatprep.mubr.msk.f32.mxu1 %vm204_vm1, %v6344_v32 }
  0x2f   : > { %5650 = vmatmul.mubr.msk.f32.gmra.mrb[12].mxu0 %vm204_vm1, %v6341_v31 }
  0x30   : > { %5652 = vmatprep.mubr.msk.f32.mxu0 %vm204_vm1, %v6347_v33 }
  0x31   : > { %5676 = vmatmul.mubr.msk.f32.gmra.mrb[12].mxu1 %vm204_vm1, %v6356_v34 }
  0x32   : > { %5678 = vmatprep.mubr.msk.f32.mxu1 %vm204_vm1, %v6364_v36 }
  0x33   : > { %5653 = vmatmul.mubr.msk.f32.gmra.mrb[14].mxu0 %vm204_vm1, %v6361_v35 }
  0x34   : > { %5683 = vmatprep.mubr.msk.f32.mxu0 %vm204_vm1, %v6210_v6 }
  0x35   : > { %5679 = vmatmul.mubr.msk.f32.gmra.mrb[14].mxu1 %vm204_vm1, %v6373_v37 }
  0x36   : > { %5709 = vmatprep.mubr.msk.f32.mxu1 %vm204_vm1, %v6237_v12 }
  0x37   : > { %5684 = vmatmul.mubr.msk.f32.vlgmr.msra.gmra.mrb[16].mxu0 %vm204_vm1, %v6229_v10 }
  0x38   : > { %5734 = vmatpush3.msk.msra.mxu0 %vm304_vm0, %v6216_v7  ;;  %5686 = vmatprep.mubr.msk.f32.mxu0 %vm204_vm1, %v6232_v11  ;;  %v5133_v7 = vld [vmem:[%s6205_s5 + $0xd8] sm:$0xff] }
  0x39   : > { %5785 = vmatprep.subr.msk.mxu0 %vm304_vm0, %v4997_v38  ;;  %5710 = vmatmul.mubr.msk.f32.vlgmr.msra.gmra.mrb[16].mxu1 %vm204_vm1, %v6252_v14 }
  0x3a   : > { %5760 = vmatpush3.msk.msra.mxu1 %vm304_vm0, %v6246_v13  ;;  %5712 = vmatprep.mubr.msk.f32.mxu1 %vm204_vm1, %v6262_v16 }
  0x3b   : > { %5687 = vmatmul.mubr.msk.f32.gmra.mrb[18].mxu0 %vm204_vm1, %v6257_v15  ;;  %5811 = vmatprep.subr.msk.mxu1 %vm304_vm0, %v5031_v39 }
  0x3c   : > { %5689 = vmatprep.mubr.msk.f32.mxu0 %vm204_vm1, %v6265_v17 }
  0x3d   : > { %5713 = vmatmul.mubr.msk.f32.gmra.mrb[18].mxu1 %vm204_vm1, %v6276_v18 }
  0x3e   : > { %5715 = vmatprep.mubr.msk.f32.mxu1 %vm204_vm1, %v6284_v20 }
  0x3f   : > { %5690 = vmatmul.mubr.msk.f32.gmra.mrb[20].mxu0 %vm204_vm1, %v6281_v19 }
  0x40   : > { %5692 = vmatprep.mubr.msk.f32.mxu0 %vm204_vm1, %v6287_v21 }
  0x41   : > { %5716 = vmatmul.mubr.msk.f32.gmra.mrb[20].mxu1 %vm204_vm1, %v6296_v22 }
  0x42   : > { %5718 = vmatprep.mubr.msk.f32.mxu1 %vm204_vm1, %v6304_v24 }
  0x43   : > { %5693 = vmatmul.mubr.msk.f32.gmra.mrb[22].mxu0 %vm204_vm1, %v6301_v23 }
  0x44   : > { %5695 = vmatprep.mubr.msk.f32.mxu0 %vm204_vm1, %v6307_v25 }
  0x45   : > { %5719 = vmatmul.mubr.msk.f32.gmra.mrb[22].mxu1 %vm204_vm1, %v6316_v26 }
  0x46   : > { %5721 = vmatprep.mubr.msk.f32.mxu1 %vm204_vm1, %v6324_v28 }
  0x47   : > { %5696 = vmatmul.mubr.msk.f32.gmra.mrb[24].mxu0 %vm204_vm1, %v6321_v27 }
  0x48   : > { %5698 = vmatprep.mubr.msk.f32.mxu0 %vm204_vm1, %v6327_v29 }
  0x49   : > { %5722 = vmatmul.mubr.msk.f32.gmra.mrb[24].mxu1 %vm204_vm1, %v6336_v30 }
  0x4a   : > { %5724 = vmatprep.mubr.msk.f32.mxu1 %vm204_vm1, %v6344_v32 }
  0x4b   : > { %5699 = vmatmul.mubr.msk.f32.gmra.mrb[26].mxu0 %vm204_vm1, %v6341_v31 }
  0x4c   : > { %5701 = vmatprep.mubr.msk.f32.mxu0 %vm204_vm1, %v6347_v33 }
  0x4d   : > { %5725 = vmatmul.mubr.msk.f32.gmra.mrb[26].mxu1 %vm204_vm1, %v6356_v34 }
  0x4e   : > { %5727 = vmatprep.mubr.msk.f32.mxu1 %vm204_vm1, %v6364_v36 }
  0x4f   : > { %5702 = vmatmul.mubr.msk.f32.gmra.mrb[28].mxu0 %vm204_vm1, %v6361_v35 }
  0x50   : > { %5704 = vmatprep.mubr.msk.f32.mxu0 %vm204_vm1, %v6438_v40 }
  0x51   : > { %5728 = vmatmul.mubr.msk.f32.gmra.mrb[28].mxu1 %vm204_vm1, %v6373_v37 }
  0x52   : > { %5730 = vmatprep.mubr.msk.f32.mxu1 %vm204_vm1, %v6452_v42 }
  0x53   : > { %5705 = vmatmul.mubr.msk.f32.gmra.mrb[30].mxu0 %vm204_vm1, %v6449_v41 }
  0x54   : > { %5735 = vmatprep.mubr.msk.f32.mxu0 %vm204_vm1, %v6220_v8  ;;  %v5134_v8 = vld [vmem:[%s6205_s5 + $0xe0] sm:$0xff] }
  0x55   : > { %5731 = vmatmul.mubr.msk.f32.gmra.mrb[30].mxu1 %vm204_vm1, %v6461_v43 }
  0x56   : > { %5761 = vmatprep.mubr.msk.f32.mxu1 %vm204_vm1, %v1584_v44 }
  0x57   : > { %5736 = vmatmul.mubr.msk.f32.vlgmr.msra.gmra.mrb[32].mxu0 %vm204_vm1, %v6223_v9  ;;  %v6848_v9 = vld [vmem:[%s6205_s5 + $0xd9] sm:$0xff] }
  0x58   : > { %5786 = vmatpush3.msk.msra.mxu0 %vm304_vm0, %v4997_v38  ;;  %5738 = vmatprep.mubr.msk.f32.mxu0 %vm204_vm1, %v6237_v12 }
  0x59   : > { %5837 = vmatprep.subr.msk.mxu0 %vm304_vm0, %v6471_v45  ;;  %5762 = vmatmul.mubr.msk.f32.vlgmr.msra.gmra.mrb[32].mxu1 %vm204_vm1, %v1585_v46 }
  0x5a   : > { %5812 = vmatpush3.msk.msra.mxu1 %vm304_vm0, %v5031_v39  ;;  %5764 = vmatprep.mubr.msk.f32.mxu1 %vm204_vm1, %v6481_v47  ;;  %v245_v39 = vld [vmem:[#allocation2 + $0x30] sm:$0xff] }
  0x5b   : > { %5739 = vmatmul.mubr.msk.f32.gmra.mrb[34].mxu0 %vm204_vm1, %v6252_v14  ;;  %5863 = vmatprep.subr.msk.mxu1 %vm304_vm0, %v6489_v48 }
  0x5c   : > { %5741 = vmatprep.mubr.msk.f32.mxu0 %vm204_vm1, %v6262_v16 }
  0x5d   : > { %5765 = vmatmul.mubr.msk.f32.gmra.mrb[34].mxu1 %vm204_vm1, %v6495_v49 }
  0x5e   : > { %5767 = vmatprep.mubr.msk.f32.mxu1 %vm204_vm1, %v6502_v50 }
  0x5f   : > { %5742 = vmatmul.mubr.msk.f32.gmra.mrb[36].mxu0 %vm204_vm1, %v6276_v18 }
  0x60   : > { %5744 = vmatprep.mubr.msk.f32.mxu0 %vm204_vm1, %v6284_v20 }
  0x61   : > { %5768 = vmatmul.mubr.msk.f32.gmra.mrb[36].mxu1 %vm204_vm1, %v6513_v51 }
  0x62   : > { %5770 = vmatprep.mubr.msk.f32.mxu1 %vm204_vm1, %v6518_v52 }
  0x63   : > { %5745 = vmatmul.mubr.msk.f32.gmra.mrb[38].mxu0 %vm204_vm1, %v6296_v22 }
  0x64   : > { %5747 = vmatprep.mubr.msk.f32.mxu0 %vm204_vm1, %v6304_v24 }
  0x65   : > { %5771 = vmatmul.mubr.msk.f32.gmra.mrb[38].mxu1 %vm204_vm1, %v6532_v54 }
  0x66   : > { %5773 = vmatprep.mubr.msk.f32.mxu1 %vm204_vm1, %v6569_v55 }
  0x67   : > { %5748 = vmatmul.mubr.msk.f32.gmra.mrb[40].mxu0 %vm204_vm1, %v6316_v26 }
  0x68   : > { %5750 = vmatprep.mubr.msk.f32.mxu0 %vm204_vm1, %v6324_v28 }
  0x69   : > { %5774 = vmatmul.mubr.msk.f32.gmra.mrb[40].mxu1 %vm204_vm1, %v6578_v56 }
  0x6a   : > { %5776 = vmatprep.mubr.msk.f32.mxu1 %vm204_vm1, %v6583_v57 }
  0x6b   : > { %5751 = vmatmul.mubr.msk.f32.gmra.mrb[42].mxu0 %vm204_vm1, %v6336_v30 }
  0x6c   : > { %5753 = vmatprep.mubr.msk.f32.mxu0 %vm204_vm1, %v6344_v32 }
  0x6d   : > { %5777 = vmatmul.mubr.msk.f32.gmra.mrb[42].mxu1 %vm204_vm1, %v6592_v58 }
  0x6e   : > { %5779 = vmatprep.mubr.msk.f32.mxu1 %vm204_vm1, %v6597_v59 }
  0x6f   : > { %5754 = vmatmul.mubr.msk.f32.gmra.mrb[44].mxu0 %vm204_vm1, %v6356_v34 }
  0x70   : > { %5756 = vmatprep.mubr.msk.f32.mxu0 %vm204_vm1, %v6364_v36 }
  0x71   : > { %5780 = vmatmul.mubr.msk.f32.gmra.mrb[44].mxu1 %vm204_vm1, %v6606_v60 }
  0x72   : > { %5782 = vmatprep.mubr.msk.f32.mxu1 %vm204_vm1, %v6611_v61 }
  0x73   : > { %5757 = vmatmul.mubr.msk.f32.gmra.mrb[46].mxu0 %vm204_vm1, %v6373_v37 }
  0x74   : > { %5787 = vmatprep.mubr.msk.f32.mxu0 %vm204_vm1, %v6237_v12 }
  0x75   : > { %5783 = vmatmul.mubr.msk.f32.gmra.mrb[46].mxu1 %vm204_vm1, %v6620_v62 }
  0x76   : > { %5813 = vmatprep.mubr.msk.f32.mxu1 %vm204_vm1, %v6481_v47 }
  0x77   : > { %5788 = vmatmul.mubr.msk.f32.vlgmr.msra.gmra.mrb[48].mxu0 %vm204_vm1, %v6252_v14 }
  0x78   : > { %5838 = vmatpush3.msk.msra.mxu0 %vm304_vm0, %v6471_v45  ;;  %5790 = vmatprep.mubr.msk.f32.mxu0 %vm204_vm1, %v6262_v16 }
  0x79   : > { %5889 = vmatprep.subr.msk.mxu0 %vm304_vm0, %v5135_v63  ;;  %5814 = vmatmul.mubr.msk.f32.vlgmr.msra.gmra.mrb[48].mxu1 %vm204_vm1, %v6495_v49 }
  0x7a   : > { %5864 = vmatpush3.msk.msra.mxu1 %vm304_vm0, %v6489_v48  ;;  %5816 = vmatprep.mubr.msk.f32.mxu1 %vm204_vm1, %v6502_v50  ;;  %v248_v48 = vld [vmem:[#allocation2 + $0x48] sm:$0xff] }
  0x7b   : > { %5791 = vmatmul.mubr.msk.f32.gmra.mrb[50].mxu0 %vm204_vm1, %v6276_v18  ;;  %5915 = vmatprep.subr.msk.mxu1 %vm304_vm0, %v5169_v0 }
  0x7c   : > { %5793 = vmatprep.mubr.msk.f32.mxu0 %vm204_vm1, %v6284_v20 }
  0x7d   : > { %5817 = vmatmul.mubr.msk.f32.gmra.mrb[50].mxu1 %vm204_vm1, %v6513_v51 }
  0x7e   : > { %5819 = vmatprep.mubr.msk.f32.mxu1 %vm204_vm1, %v6518_v52 }
  0x7f   : > { %5794 = vmatmul.mubr.msk.f32.gmra.mrb[52].mxu0 %vm204_vm1, %v6296_v22 }
  0x80   : > { %5796 = vmatprep.mubr.msk.f32.mxu0 %vm204_vm1, %v6304_v24 }
  0x81   : > { %5820 = vmatmul.mubr.msk.f32.gmra.mrb[52].mxu1 %vm204_vm1, %v6532_v54 }
  0x82   : > { %5822 = vmatprep.mubr.msk.f32.mxu1 %vm204_vm1, %v6569_v55 }
  0x83   : > { %5797 = vmatmul.mubr.msk.f32.gmra.mrb[54].mxu0 %vm204_vm1, %v6316_v26 }
  0x84   : > { %5799 = vmatprep.mubr.msk.f32.mxu0 %vm204_vm1, %v6324_v28 }
  0x85   : > { %5823 = vmatmul.mubr.msk.f32.gmra.mrb[54].mxu1 %vm204_vm1, %v6578_v56 }
  0x86   : > { %5825 = vmatprep.mubr.msk.f32.mxu1 %vm204_vm1, %v6583_v57 }
  0x87   : > { %5800 = vmatmul.mubr.msk.f32.gmra.mrb[56].mxu0 %vm204_vm1, %v6336_v30 }
  0x88   : > { %5802 = vmatprep.mubr.msk.f32.mxu0 %vm204_vm1, %v6344_v32 }
  0x89   : > { %5826 = vmatmul.mubr.msk.f32.gmra.mrb[56].mxu1 %vm204_vm1, %v6592_v58 }
  0x8a   : > { %5828 = vmatprep.mubr.msk.f32.mxu1 %vm204_vm1, %v6597_v59 }
  0x8b   : > { %5803 = vmatmul.mubr.msk.f32.gmra.mrb[58].mxu0 %vm204_vm1, %v6356_v34 }
  0x8c   : > { %5805 = vmatprep.mubr.msk.f32.mxu0 %vm204_vm1, %v6364_v36 }
  0x8d   : > { %5829 = vmatmul.mubr.msk.f32.gmra.mrb[58].mxu1 %vm204_vm1, %v6606_v60 }
  0x8e   : > { %5831 = vmatprep.mubr.msk.f32.mxu1 %vm204_vm1, %v6611_v61 }
  0x8f   : > { %5806 = vmatmul.mubr.msk.f32.gmra.mrb[60].mxu0 %vm204_vm1, %v6373_v37 }
  0x90   : > { %5808 = vmatprep.mubr.msk.f32.mxu0 %vm204_vm1, %v6452_v42 }
  0x91   : > { %5832 = vmatmul.mubr.msk.f32.gmra.mrb[60].mxu1 %vm204_vm1, %v6620_v62 }
  0x92   : > { %5834 = vmatprep.mubr.msk.f32.mxu1 %vm204_vm1, %v6693_v1 }
  0x93   : > { %5809 = vmatmul.mubr.msk.f32.gmra.mrb[62].mxu0 %vm204_vm1, %v6461_v43 }
  0x94   : > { %5839 = vmatprep.mubr.msk.f32.mxu0 %vm204_vm1, %v6210_v6  ;;  %v5321_v6 = vld [vmem:[%s7538_s1 + $0x3c] sm:$0xf] }
  0x95   : > { %5835 = vmatmul.mubr.msk.f32.gmra.mrb[62].mxu1 %vm204_vm1, %v6702_v2 }
  0x96   : > { %5865 = vmatprep.mubr.msk.f32.mxu1 %vm204_vm1, %v6237_v12 }
  0x97   : > { %5840 = vmatmul.mubr.msk.f32.vlgmr.msra.gmra.mrb[64].mxu0 %vm204_vm1, %v6229_v10  ;;  %v6856_v10 = vld [vmem:[%s6205_s5 + $0xe1] sm:$0xff] }
  0x98   : > { %5890 = vmatpush3.msk.msra.mxu0 %vm304_vm0, %v5135_v63  ;;  %5842 = vmatprep.mubr.msk.f32.mxu0 %vm204_vm1, %v6232_v11 }
  0x99   : > { %5941 = vmatprep.subr.msk.mxu0 %vm304_vm0, %v5219_v3  ;;  %5866 = vmatmul.mubr.msk.f32.vlgmr.msra.gmra.mrb[64].mxu1 %vm204_vm1, %v6252_v14 }
  0x9a   : > { %5916 = vmatpush3.msk.msra.mxu1 %vm304_vm0, %v5169_v0  ;;  %5868 = vmatprep.mubr.msk.f32.mxu1 %vm204_vm1, %v6262_v16 }
  0x9b   : > { %5843 = vmatmul.mubr.msk.f32.gmra.mrb[66].mxu0 %vm204_vm1, %v6257_v15  ;;  %5967 = vmatprep.subr.msk.mxu1 %vm304_vm0, %v5253_v4 }
  0x9c   : > { %5845 = vmatprep.mubr.msk.f32.mxu0 %vm204_vm1, %v6265_v17 }
  0x9d   : > { %5869 = vmatmul.mubr.msk.f32.gmra.mrb[66].mxu1 %vm204_vm1, %v6276_v18 }
  0x9e   : > { %5871 = vmatprep.mubr.msk.f32.mxu1 %vm204_vm1, %v6284_v20 }
  0x9f   : > { %5846 = vmatmul.mubr.msk.f32.gmra.mrb[68].mxu0 %vm204_vm1, %v6281_v19 }
  0xa0   : > { %5848 = vmatprep.mubr.msk.f32.mxu0 %vm204_vm1, %v6287_v21 }
  0xa1   : > { %5872 = vmatmul.mubr.msk.f32.gmra.mrb[68].mxu1 %vm204_vm1, %v6296_v22 }
  0xa2   : > { %5874 = vmatprep.mubr.msk.f32.mxu1 %vm204_vm1, %v6304_v24 }
  0xa3   : > { %5849 = vmatmul.mubr.msk.f32.gmra.mrb[70].mxu0 %vm204_vm1, %v6301_v23 }
  0xa4   : > { %5851 = vmatprep.mubr.msk.f32.mxu0 %vm204_vm1, %v6307_v25 }
  0xa5   : > { %5875 = vmatmul.mubr.msk.f32.gmra.mrb[70].mxu1 %vm204_vm1, %v6316_v26 }
  0xa6   : > { %5877 = vmatprep.mubr.msk.f32.mxu1 %vm204_vm1, %v6324_v28 }
  0xa7   : > { %5852 = vmatmul.mubr.msk.f32.gmra.mrb[72].mxu0 %vm204_vm1, %v6321_v27 }
  0xa8   : > { %5854 = vmatprep.mubr.msk.f32.mxu0 %vm204_vm1, %v6327_v29 }
  0xa9   : > { %5878 = vmatmul.mubr.msk.f32.gmra.mrb[72].mxu1 %vm204_vm1, %v6336_v30 }
  0xaa   : > { %5880 = vmatprep.mubr.msk.f32.mxu1 %vm204_vm1, %v6344_v32 }
  0xab   : > { %5855 = vmatmul.mubr.msk.f32.gmra.mrb[74].mxu0 %vm204_vm1, %v6341_v31 }
  0xac   : > { %5857 = vmatprep.mubr.msk.f32.mxu0 %vm204_vm1, %v6347_v33 }
  0xad   : > { %5881 = vmatmul.mubr.msk.f32.gmra.mrb[74].mxu1 %vm204_vm1, %v6356_v34 }
  0xae   : > { %5883 = vmatprep.mubr.msk.f32.mxu1 %vm204_vm1, %v6364_v36 }
  0xaf   : > { %5858 = vmatmul.mubr.msk.f32.gmra.mrb[76].mxu0 %vm204_vm1, %v6361_v35 }
  0xb0   : > { %5860 = vmatprep.mubr.msk.f32.mxu0 %vm204_vm1, %v6438_v40 }
  0xb1   : > { %5884 = vmatmul.mubr.msk.f32.gmra.mrb[76].mxu1 %vm204_vm1, %v6373_v37 }
  0xb2   : > { %5886 = vmatprep.mubr.msk.f32.mxu1 %vm204_vm1, %v6452_v42 }
  0xb3   : > { %5861 = vmatmul.mubr.msk.f32.gmra.mrb[78].mxu0 %vm204_vm1, %v6449_v41 }
  0xb4   : > { %5891 = vmatprep.mubr.msk.f32.mxu0 %vm204_vm1, %v6232_v11  ;;  %v240_v11 = vld [vmem:[#allocation2 + $0x8] sm:$0xff] }
  0xb5   : > { %5887 = vmatmul.mubr.msk.f32.gmra.mrb[78].mxu1 %vm204_vm1, %v6461_v43 }
  0xb6   : > { %5917 = vmatprep.mubr.msk.f32.mxu1 %vm204_vm1, %v6262_v16 }
  0xb7   : > { %5892 = vmatmul.mubr.msk.f32.vlgmr.msra.gmra.mrb[80].mxu0 %vm204_vm1, %v6257_v15 }
  0xb8   : > { %5942 = vmatpush3.msk.msra.mxu0 %vm304_vm0, %v5219_v3  ;;  %5894 = vmatprep.mubr.msk.f32.mxu0 %vm204_vm1, %v6265_v17  ;;  %v247_v3 = vld [vmem:[#allocation2 + $0x40] sm:$0xff] }
  0xb9   : > { %5993 = vmatprep.subr.msk.mxu0 %vm304_vm0, %v5287_v5  ;;  %5918 = vmatmul.mubr.msk.f32.vlgmr.msra.gmra.mrb[80].mxu1 %vm204_vm1, %v6276_v18 }
  0xba   : > { %5968 = vmatpush3.msk.msra.mxu1 %vm304_vm0, %v5253_v4  ;;  %5920 = vmatprep.mubr.msk.f32.mxu1 %vm204_vm1, %v6284_v20  ;;  %v5275_v4 = vld [vmem:[%s6205_s5 + $0x61] sm:$0xff] }
  0xbb   : > { %5895 = vmatmul.mubr.msk.f32.gmra.mrb[82].mxu0 %vm204_vm1, %v6281_v19  ;;  %6019 = vmatprep.subr.msk.mxu1 %vm304_vm0, %v5321_v6  ;;  %v242_v19 = vld [vmem:[#allocation2 + $0x18] sm:$0xff] }
  0xbc   : > { %5897 = vmatprep.mubr.msk.f32.mxu0 %vm204_vm1, %v6287_v21 }
  0xbd   : > { %5921 = vmatmul.mubr.msk.f32.gmra.mrb[82].mxu1 %vm204_vm1, %v6296_v22 }
  0xbe   : > { %5923 = vmatprep.mubr.msk.f32.mxu1 %vm204_vm1, %v6304_v24 }
  0xbf   : > { %5898 = vmatmul.mubr.msk.f32.gmra.mrb[84].mxu0 %vm204_vm1, %v6301_v23 }
  0xc0   : > { %5900 = vmatprep.mubr.msk.f32.mxu0 %vm204_vm1, %v6307_v25 }
  0xc1   : > { %5924 = vmatmul.mubr.msk.f32.gmra.mrb[84].mxu1 %vm204_vm1, %v6316_v26 }
  0xc2   : > { %5926 = vmatprep.mubr.msk.f32.mxu1 %vm204_vm1, %v6324_v28 }
  0xc3   : > { %5901 = vmatmul.mubr.msk.f32.gmra.mrb[86].mxu0 %vm204_vm1, %v6321_v27  ;;  %v244_v27 = vld [vmem:[#allocation2 + $0x28] sm:$0xff] }
  0xc4   : > { %5903 = vmatprep.mubr.msk.f32.mxu0 %vm204_vm1, %v6327_v29 }
  0xc5   : > { %5927 = vmatmul.mubr.msk.f32.gmra.mrb[86].mxu1 %vm204_vm1, %v6336_v30 }
  0xc6   : > { %5929 = vmatprep.mubr.msk.f32.mxu1 %vm204_vm1, %v6344_v32 }
  0xc7   : > { %5904 = vmatmul.mubr.msk.f32.gmra.mrb[88].mxu0 %vm204_vm1, %v6341_v31 }
  0xc8   : > { %5906 = vmatprep.mubr.msk.f32.mxu0 %vm204_vm1, %v6347_v33 }
  0xc9   : > { %5930 = vmatmul.mubr.msk.f32.gmra.mrb[88].mxu1 %vm204_vm1, %v6356_v34 }
  0xca   : > { %5932 = vmatprep.mubr.msk.f32.mxu1 %vm204_vm1, %v6364_v36 }
  0xcb   : > { %5907 = vmatmul.mubr.msk.f32.gmra.mrb[90].mxu0 %vm204_vm1, %v6361_v35 }
  0xcc   : > { %5909 = vmatprep.mubr.msk.f32.mxu0 %vm204_vm1, %v6438_v40  ;;  %v5273_v40 = vld [vmem:[%s6205_s5 + $0x49] sm:$0xff] }
  0xcd   : > { %5933 = vmatmul.mubr.msk.f32.gmra.mrb[90].mxu1 %vm204_vm1, %v6373_v37 }
  0xce   : > { %5935 = vmatprep.mubr.msk.f32.mxu1 %vm204_vm1, %v6452_v42 }
  0xcf   : > { %5910 = vmatmul.mubr.msk.f32.gmra.mrb[92].mxu0 %vm204_vm1, %v6449_v41 }
  0xd0   : > { %5912 = vmatprep.mubr.msk.f32.mxu0 %vm204_vm1, %v5133_v7 }
  0xd1   : > { %5936 = vmatmul.mubr.msk.f32.gmra.mrb[92].mxu1 %vm204_vm1, %v6461_v43 }
  0xd2   : > { %5938 = vmatprep.mubr.msk.f32.mxu1 %vm204_vm1, %v6848_v9 }
  0xd3   : > { %5913 = vmatmul.mubr.msk.f32.gmra.mrb[94].mxu0 %vm204_vm1, %v5134_v8 }
  0xd4   : > { %5943 = vmatprep.mubr.msk.f32.mxu0 %vm204_vm1, %v6237_v12  ;;  %v239_v12 = vld [vmem:[#allocation2] sm:$0xff] }
  0xd5   : > { %5939 = vmatmul.mubr.msk.f32.gmra.mrb[94].mxu1 %vm204_vm1, %v6856_v10 }
  0xd6   : > { %5969 = vmatprep.mubr.msk.f32.mxu1 %vm204_vm1, %v6481_v47 }
  0xd7   : > { %5944 = vmatmul.mubr.msk.f32.vlgmr.msra.gmra.mrb[96].mxu0 %vm204_vm1, %v6252_v14 }
  0xd8   : > { %5994 = vmatpush3.msk.msra.mxu0 %vm304_vm0, %v5287_v5  ;;  %5946 = vmatprep.mubr.msk.f32.mxu0 %vm204_vm1, %v6262_v16 }
  0xd9   : > { %5970 = vmatmul.mubr.msk.f32.vlgmr.msra.gmra.mrb[96].mxu1 %vm204_vm1, %v6495_v49  ;;  %v5274_v49 = vld [vmem:[%s6205_s5 + $0x51] sm:$0xff] }
  0xda   : > { %6020 = vmatpush3.msk.msra.mxu1 %vm304_vm0, %v5321_v6  ;;  %5972 = vmatprep.mubr.msk.f32.mxu1 %vm204_vm1, %v6502_v50 }
  0xdb   : > { %5947 = vmatmul.mubr.msk.f32.gmra.mrb[98].mxu0 %vm204_vm1, %v6276_v18 }
  0xdc   : > { %5949 = vmatprep.mubr.msk.f32.mxu0 %vm204_vm1, %v6284_v20  ;;  %v241_v20 = vld [vmem:[#allocation2 + $0x10] sm:$0xff] }
  0xdd   : > { %5973 = vmatmul.mubr.msk.f32.gmra.mrb[98].mxu1 %vm204_vm1, %v6513_v51 }
  0xde   : > { %5975 = vmatprep.mubr.msk.f32.mxu1 %vm204_vm1, %v6518_v52 }
  0xdf   : > { %5950 = vmatmul.mubr.msk.f32.gmra.mrb[100].mxu0 %vm204_vm1, %v6296_v22 }
  0xe0   : > { %5952 = vmatprep.mubr.msk.f32.mxu0 %vm204_vm1, %v6304_v24 }
  0xe1   : > { %5976 = vmatmul.mubr.msk.f32.gmra.mrb[100].mxu1 %vm204_vm1, %v6532_v54 }
  0xe2   : > { %5978 = vmatprep.mubr.msk.f32.mxu1 %vm204_vm1, %v6569_v55 }
  0xe3   : > { %5953 = vmatmul.mubr.msk.f32.gmra.mrb[102].mxu0 %vm204_vm1, %v6316_v26 }
  0xe4   : > { %5955 = vmatprep.mubr.msk.f32.mxu0 %vm204_vm1, %v6324_v28  ;;  %v243_v28 = vld [vmem:[#allocation2 + $0x20] sm:$0xff] }
  0xe5   : > { %5979 = vmatmul.mubr.msk.f32.gmra.mrb[102].mxu1 %vm204_vm1, %v6578_v56 }
  0xe6   : > { %5981 = vmatprep.mubr.msk.f32.mxu1 %vm204_vm1, %v6583_v57 }
  0xe7   : > { %5956 = vmatmul.mubr.msk.f32.gmra.mrb[104].mxu0 %vm204_vm1, %v6336_v30 }
  0xe8   : > { %5958 = vmatprep.mubr.msk.f32.mxu0 %vm204_vm1, %v6344_v32 }
  0xe9   : > { %5982 = vmatmul.mubr.msk.f32.gmra.mrb[104].mxu1 %vm204_vm1, %v6592_v58 }
  0xea   : > { %v5633_v13 = vpop.f32.mrb[0].mxu0  ;;  %5984 = vmatprep.mubr.msk.f32.mxu1 %vm204_vm1, %v6597_v59 }
  0xeb   : > { %v454_v14 = vadd.f32 %v5633_v13, %v240_v11  ;;  %v374_v15 = vpop.f32.mrb[1].mxu0  ;;  %5959 = vmatmul.mubr.msk.f32.gmra.mrb[106].mxu0 %vm204_vm1, %v6356_v34  ;;  %v250_v13 = vld [vmem:[#allocation2 + $0x58] sm:$0xff] }
  0xec   : > { %v453_v17 = vadd.f32 %v374_v15, %v239_v12  ;;  %5961 = vmatprep.mubr.msk.f32.mxu0 %vm204_vm1, %v6364_v36  ;;  %v5659_v21 = vpop.f32.mrb[0].mxu1  ;;  %v246_v36 = vld [vmem:[#allocation2 + $0x38] sm:$0xff] }
  0xed   : > { %470 = vst.msk [vmem:[#allocation2 + $0x8] sm:$0xff] %vm204_vm1, %v454_v14  ;;  %v636_v23 = vpop.f32.mrb[1].mxu1  ;;  %5985 = vmatmul.mubr.msk.f32.gmra.mrb[106].mxu1 %vm204_vm1, %v6606_v60  ;;  %v5276_v14 = vld [vmem:[%s6205_s5 + $0x69] sm:$0xff] }
  0xee   : > { %469 = vst.msk [vmem:[#allocation2] sm:$0xff] %vm204_vm1, %v453_v17  ;;  %v5636_v22 = vpop.f32.mrb[2].mxu0  ;;  %5987 = vmatprep.mubr.msk.f32.mxu1 %vm204_vm1, %v6611_v61  ;;  %v249_v17 = vld [vmem:[#allocation2 + $0x50] sm:$0xff] }
  0xef   : > { %v456_v24 = vadd.f32 %v5636_v22, %v242_v19  ;;  %v384_v25 = vpop.f32.mrb[3].mxu0  ;;  %5962 = vmatmul.mubr.msk.f32.gmra.mrb[108].mxu0 %vm204_vm1, %v6373_v37  ;;  %v5277_v19 = vld [vmem:[%s6205_s5 + $0x79] sm:$0xff] }
  0xf0   : > { %v455_v26 = vadd.f32 %v384_v25, %v241_v20  ;;  %5964 = vmatprep.mubr.msk.f32.mxu0 %vm204_vm1, %v6452_v42  ;;  %v5662_v29 = vpop.f32.mrb[2].mxu1 }
  0xf1   : > { %472 = vst.msk [vmem:[#allocation2 + $0x18] sm:$0xff] %vm204_vm1, %v456_v24  ;;  %v646_v31 = vpop.f32.mrb[3].mxu1  ;;  %5988 = vmatmul.mubr.msk.f32.gmra.mrb[108].mxu1 %vm204_vm1, %v6620_v62 }
  0xf2   : > { %471 = vst.msk [vmem:[#allocation2 + $0x10] sm:$0xff] %vm204_vm1, %v455_v26  ;;  %v5639_v30 = vpop.f32.mrb[4].mxu0  ;;  %5990 = vmatprep.mubr.msk.f32.mxu1 %vm204_vm1, %v6693_v1 }
  0xf3   : > { %v458_v32 = vadd.f32 %v5639_v30, %v244_v27  ;;  %v394_v33 = vpop.f32.mrb[5].mxu0  ;;  %5965 = vmatmul.mubr.msk.f32.gmra.mrb[110].mxu0 %vm204_vm1, %v6461_v43  ;;  %v252_v27 = vld [vmem:[#allocation2 + $0x68] sm:$0xff]  ;;  %v251_v30 = vld [vmem:[#allocation2 + $0x60] sm:$0xff] }
  0xf4   : > { %v457_v34 = vadd.f32 %v394_v33, %v243_v28  ;;  %v502_v35 = vld [vmem:[#allocation2 + $0x8] sm:$0xff]  ;;  %5995 = vmatprep.mubr.msk.f32.mxu0 %vm204_vm1, %v6262_v16  ;;  %v5665_v41 = vpop.f32.mrb[4].mxu1 }
  0xf5   : > { %474 = vst.msk [vmem:[#allocation2 + $0x28] sm:$0xff] %vm204_vm1, %v458_v32  ;;  %v716_v37 = vadd.f32 %v5659_v21, %v502_v35  ;;  %v501_v38 = vld [vmem:[#allocation2] sm:$0xff]  ;;  %v656_v44 = vpop.f32.mrb[5].mxu1  ;;  %5991 = vmatmul.mubr.msk.f32.gmra.mrb[110].mxu1 %vm204_vm1, %v6702_v2 }
  0xf6   : > { %473 = vst.msk [vmem:[#allocation2 + $0x20] sm:$0xff] %vm204_vm1, %v457_v34  ;;  %v715_v42 = vadd.f32 %v636_v23, %v501_v38  ;;  %v5642_v43 = vpop.f32.mrb[6].mxu0  ;;  %6021 = vmatprep.mubr.msk.f32.mxu1 %vm204_vm1, %v6502_v50  ;;  %v5278_v28 = vld [vmem:[%s6205_s5 + $0x81] sm:$0xff] }
  0xf7   : > { %732 = vst.msk [vmem:[#allocation2 + $0x8] sm:$0xff] %vm204_vm1, %v716_v37  ;;  %v460_v16 = vadd.f32 %v5642_v43, %v246_v36  ;;  %v404_v45 = vpop.f32.mrb[7].mxu0  ;;  %5996 = vmatmul.mubr.msk.f32.vlgmr.msra.gmra.mrb[112].mxu0 %vm204_vm1, %v6276_v18  ;;  %v5281_v43 = vld [vmem:[%s6205_s5 + $0xa9] sm:$0xff] }
  0xf8   : > { %731 = vst.msk [vmem:[#allocation2] sm:$0xff] %vm204_vm1, %v715_v42  ;;  %v459_v46 = vadd.f32 %v404_v45, %v245_v39  ;;  %v504_v47 = vld [vmem:[#allocation2 + $0x18] sm:$0xff]  ;;  %5998 = vmatprep.mubr.msk.f32.mxu0 %vm204_vm1, %v5273_v40  ;;  %v5668_v5 = vpop.f32.mrb[6].mxu1  ;;  %v253_v42 = vld [vmem:[#allocation2 + $0x70] sm:$0xff] }
  0xf9   : > { %476 = vst.msk [vmem:[#allocation2 + $0x38] sm:$0xff] %vm204_vm1, %v460_v16  ;;  %v718_v63 = vadd.f32 %v5662_v29, %v504_v47  ;;  %v503_v0 = vld [vmem:[#allocation2 + $0x10] sm:$0xff]  ;;  %v666_v6 = vpop.f32.mrb[7].mxu1  ;;  %6022 = vmatmul.mubr.msk.f32.vlgmr.msra.gmra.mrb[112].mxu1 %vm204_vm1, %v6513_v51  ;;  %v254_v39 = vld [vmem:[#allocation2 + $0x78] sm:$0xff] }
  0xfa   : > { %475 = vst.msk [vmem:[#allocation2 + $0x30] sm:$0xff] %vm204_vm1, %v459_v46  ;;  %v717_v18 = vadd.f32 %v646_v31, %v503_v0  ;;  %v5645_v50 = vpop.f32.mrb[8].mxu0  ;;  %6024 = vmatprep.mubr.msk.f32.mxu1 %vm204_vm1, %v6518_v52  ;;  %v5279_v31 = vld [vmem:[%s6205_s5 + $0x91] sm:$0xff]  ;;  %v5280_v40 = vld [vmem:[%s6205_s5 + $0x99] sm:$0xff] }
  0xfb   : > { %734 = vst.msk [vmem:[#allocation2 + $0x18] sm:$0xff] %vm204_vm1, %v718_v63  ;;  %v462_v7 = vadd.f32 %v5645_v50, %v248_v48  ;;  %v414_v8 = vpop.f32.mrb[9].mxu0  ;;  %5999 = vmatmul.mubr.msk.f32.gmra.mrb[114].mxu0 %vm204_vm1, %v5274_v49  ;;  %v5282_v63 = vld [vmem:[%s6205_s5 + $0xb1] sm:$0xff] }
  0xfc   : > { %733 = vst.msk [vmem:[#allocation2 + $0x10] sm:$0xff] %vm204_vm1, %v717_v18  ;;  %v461_v11 = vadd.f32 %v414_v8, %v247_v3  ;;  %v506_v12 = vld [vmem:[#allocation2 + $0x28] sm:$0xff]  ;;  %6001 = vmatprep.mubr.msk.f32.mxu0 %vm204_vm1, %v5275_v4  ;;  %v5671_v20 = vpop.f32.mrb[8].mxu1 }
  0xfd   : > { %478 = vst.msk [vmem:[#allocation2 + $0x48] sm:$0xff] %vm204_vm1, %v462_v7  ;;  %v720_v51 = vadd.f32 %v5665_v41, %v506_v12  ;;  %v505_v15 = vld [vmem:[#allocation2 + $0x20] sm:$0xff]  ;;  %v676_v22 = vpop.f32.mrb[9].mxu1  ;;  %6025 = vmatmul.mubr.msk.f32.gmra.mrb[114].mxu1 %vm204_vm1, %v6532_v54 }
  0xfe   : > { %477 = vst.msk [vmem:[#allocation2 + $0x40] sm:$0xff] %vm204_vm1, %v461_v11  ;;  %v719_v21 = vadd.f32 %v656_v44, %v505_v15  ;;  %v5648_v52 = vpop.f32.mrb[10].mxu0  ;;  %6027 = vmatprep.mubr.msk.f32.mxu1 %vm204_vm1, %v6569_v55  ;;  %v5283_v3 = vld [vmem:[%s6205_s5 + $0xc1] sm:$0xff] }
  0xff   : > { %736 = vst.msk [vmem:[#allocation2 + $0x28] sm:$0xff] %vm204_vm1, %v720_v51  ;;  %v464_v23 = vadd.f32 %v5648_v52, %v250_v13  ;;  %v424_v24 = vpop.f32.mrb[11].mxu0  ;;  %6002 = vmatmul.mubr.msk.f32.gmra.mrb[116].mxu0 %vm204_vm1, %v5276_v14  ;;  %v766_v7 = vld [vmem:[#allocation2] sm:$0xff] }
 0x100   : > { %735 = vst.msk [vmem:[#allocation2 + $0x20] sm:$0xff] %vm204_vm1, %v719_v21  ;;  %v463_v25 = vadd.f32 %v424_v24, %v249_v17  ;;  %v508_v26 = vld [vmem:[#allocation2 + $0x38] sm:$0xff]  ;;  %6004 = vmatprep.mubr.msk.f32.mxu0 %vm204_vm1, %v5277_v19  ;;  %v5674_v32 = vpop.f32.mrb[10].mxu1 }
 0x101   : > { %480 = vst.msk [vmem:[#allocation2 + $0x58] sm:$0xff] %vm204_vm1, %v464_v23  ;;  %v722_v54 = vadd.f32 %v5668_v5, %v508_v26  ;;  %v507_v29 = vld [vmem:[#allocation2 + $0x30] sm:$0xff]  ;;  %v686_v34 = vpop.f32.mrb[11].mxu1  ;;  %6028 = vmatmul.mubr.msk.f32.gmra.mrb[116].mxu1 %vm204_vm1, %v6578_v56 }
 0x102   : > { %479 = vst.msk [vmem:[#allocation2 + $0x50] sm:$0xff] %vm204_vm1, %v463_v25  ;;  %v721_v33 = vadd.f32 %v666_v6, %v507_v29  ;;  %v5651_v55 = vpop.f32.mrb[12].mxu0  ;;  %6030 = vmatprep.mubr.msk.f32.mxu1 %vm204_vm1, %v6583_v57  ;;  %v769_v15 = vld [vmem:[#allocation2 + $0x18] sm:$0xff] }
 0x103   : > { %738 = vst.msk [vmem:[#allocation2 + $0x38] sm:$0xff] %vm204_vm1, %v722_v54  ;;  %v466_v35 = vadd.f32 %v5651_v55, %v252_v27  ;;  %v434_v36 = vpop.f32.mrb[13].mxu0  ;;  %6005 = vmatmul.mubr.msk.f32.gmra.mrb[118].mxu0 %vm204_vm1, %v5278_v28  ;;  %v768_v21 = vld [vmem:[#allocation2 + $0x10] sm:$0xff] }
 0x104   : > { %737 = vst.msk [vmem:[#allocation2 + $0x30] sm:$0xff] %vm204_vm1, %v721_v33  ;;  %v465_v37 = vadd.f32 %v434_v36, %v251_v30  ;;  %v510_v38 = vld [vmem:[#allocation2 + $0x48] sm:$0xff]  ;;  %6007 = vmatprep.mubr.msk.f32.mxu0 %vm204_vm1, %v5279_v31  ;;  %v5677_v44 = vpop.f32.mrb[12].mxu1 }
 0x105   : > { %482 = vst.msk [vmem:[#allocation2 + $0x68] sm:$0xff] %vm204_vm1, %v466_v35  ;;  %v724_v56 = vadd.f32 %v5671_v20, %v510_v38  ;;  %v509_v41 = vld [vmem:[#allocation2 + $0x40] sm:$0xff]  ;;  %v696_v45 = vpop.f32.mrb[13].mxu1  ;;  %6031 = vmatmul.mubr.msk.f32.gmra.mrb[118].mxu1 %vm204_vm1, %v6592_v58 }
 0x106   : > { %481 = vst.msk [vmem:[#allocation2 + $0x60] sm:$0xff] %vm204_vm1, %v465_v37  ;;  %v723_v57 = vadd.f32 %v676_v22, %v509_v41  ;;  %v5654_v16 = vpop.f32.mrb[14].mxu0  ;;  %6033 = vmatprep.mubr.msk.f32.mxu1 %vm204_vm1, %v6597_v59  ;;  %v767_v59 = vld [vmem:[#allocation2 + $0x8] sm:$0xff] }
 0x107   : > { %740 = vst.msk [vmem:[#allocation2 + $0x48] sm:$0xff] %vm204_vm1, %v724_v56  ;;  %v468_v46 = vadd.f32 %v5654_v16, %v254_v39  ;;  %v444_v47 = vpop.f32.mrb[15].mxu0  ;;  %6008 = vmatmul.mubr.msk.f32.gmra.mrb[120].mxu0 %vm204_vm1, %v5280_v40  ;;  %v771_v27 = vld [vmem:[#allocation2 + $0x28] sm:$0xff]  ;;  %v770_v29 = vld [vmem:[#allocation2 + $0x20] sm:$0xff] }
 0x108   : > { %739 = vst.msk [vmem:[#allocation2 + $0x40] sm:$0xff] %vm204_vm1, %v723_v57  ;;  %v467_v48 = vadd.f32 %v444_v47, %v253_v42  ;;  %v512_v49 = vld [vmem:[#allocation2 + $0x58] sm:$0xff]  ;;  %6010 = vmatprep.mubr.msk.f32.mxu0 %vm204_vm1, %v5281_v43  ;;  %v5680_v4 = vpop.f32.mrb[14].mxu1  ;;  %v5320_v31 = vld [vmem:[%s6205_s5 + $0xe2] sm:$0xff] }
 0x109   : > { %484 = vst.msk [vmem:[#allocation2 + $0x78] sm:$0xff] %vm204_vm1, %v468_v46  ;;  %v726_v58 = vadd.f32 %v5674_v32, %v512_v49  ;;  %v511_v0 = vld [vmem:[#allocation2 + $0x50] sm:$0xff]  ;;  %v706_v50 = vpop.f32.mrb[15].mxu1  ;;  %6034 = vmatmul.mubr.msk.f32.gmra.mrb[120].mxu1 %vm204_vm1, %v6606_v60 }
 0x10a   : > { %483 = vst.msk [vmem:[#allocation2 + $0x70] sm:$0xff] %vm204_vm1, %v467_v48  ;;  %v725_v5 = vadd.f32 %v686_v34, %v511_v0  ;;  %v5685_v18 = vpop.f32.mrb[16].mxu0  ;;  %6036 = vmatprep.mubr.msk.f32.mxu1 %vm204_vm1, %v6611_v61  ;;  %v5284_v60 = vld [vmem:[%s6205_s5 + $0xc9] sm:$0xff]  ;;  %v773_v36 = vld [vmem:[#allocation2 + $0x38] sm:$0xff] }
 0x10b   : > { %742 = vst.msk [vmem:[#allocation2 + $0x58] sm:$0xff] %vm204_vm1, %v726_v58  ;;  %v981_v6 = vadd.f32 %v5685_v18, %v767_v59  ;;  %v901_v8 = vpop.f32.mrb[17].mxu0  ;;  %6011 = vmatmul.mubr.msk.f32.gmra.mrb[122].mxu0 %vm204_vm1, %v5282_v63  ;;  %v772_v39 = vld [vmem:[#allocation2 + $0x30] sm:$0xff] }
 0x10c   : > { %741 = vst.msk [vmem:[#allocation2 + $0x50] sm:$0xff] %vm204_vm1, %v725_v5  ;;  %v514_v11 = vld [vmem:[#allocation2 + $0x68] sm:$0xff]  ;;  %v980_v12 = vadd.f32 %v901_v8, %v766_v7  ;;  %6013 = vmatprep.mubr.msk.f32.mxu0 %vm204_vm1, %v5283_v3  ;;  %v5711_v51 = vpop.f32.mrb[16].mxu1 }
 0x10d   : > { %997 = vst.msk [vmem:[#allocation2 + $0x8] sm:$0xff] %vm204_vm1, %v981_v6  ;;  %v728_v13 = vadd.f32 %v5677_v44, %v514_v11  ;;  %v513_v14 = vld [vmem:[#allocation2 + $0x60] sm:$0xff]  ;;  %v1163_v19 = vpop.f32.mrb[17].mxu1  ;;  %6037 = vmatmul.mubr.msk.f32.gmra.mrb[122].mxu1 %vm204_vm1, %v6620_v62 }
 0x10e   : > { %996 = vst.msk [vmem:[#allocation2] sm:$0xff] %vm204_vm1, %v980_v12  ;;  %v727_v61 = vadd.f32 %v696_v45, %v513_v14  ;;  %v5688_v17 = vpop.f32.mrb[18].mxu0  ;;  %6039 = vmatprep.mubr.msk.f32.mxu1 %vm204_vm1, %v6693_v1  ;;  %v5319_v62 = vld [vmem:[%s6205_s5 + $0xda] sm:$0xff]  ;;  %s192_s5 = sadd.s32 %s4835_s22, %s4834_s12  ;;  %v775_v16 = vld [vmem:[#allocation2 + $0x48] sm:$0xff] }
 0x10f   : > { %744 = vst.msk [vmem:[#allocation2 + $0x68] sm:$0xff] %vm204_vm1, %v728_v13  ;;  %v983_v20 = vadd.f32 %v5688_v17, %v769_v15  ;;  %v911_v52 = vpop.f32.mrb[19].mxu0  ;;  %6014 = vmatmul.mubr.msk.f32.gmra.mrb[124].mxu0 %vm204_vm1, %v5284_v60  ;;  %s4836_s13 = sshll.u32 %s192_s5, 3  ;;  %v774_v48 = vld [vmem:[#allocation2 + $0x40] sm:$0xff] }
 0x110   : > { %743 = vst.msk [vmem:[#allocation2 + $0x60] sm:$0xff] %vm204_vm1, %v727_v61  ;;  %v516_v22 = vld [vmem:[#allocation2 + $0x78] sm:$0xff]  ;;  %v982_v23 = vadd.f32 %v911_v52, %v768_v21  ;;  %6016 = vmatprep.mubr.msk.f32.mxu0 %vm204_vm1, %v6848_v9  ;;  %v5714_v1 = vpop.f32.mrb[18].mxu1  ;;  %s7052_s25 = scalar_lea.vmem %s7540_s3, %s4836_s13 }
 0x111   : > { %999 = vst.msk [vmem:[#allocation2 + $0x18] sm:$0xff] %vm204_vm1, %v983_v20  ;;  %v730_v24 = vadd.f32 %v5680_v4, %v516_v22  ;;  %v515_v25 = vld [vmem:[#allocation2 + $0x70] sm:$0xff]  ;;  %v1173_v54 = vpop.f32.mrb[19].mxu1  ;;  %6040 = vmatmul.mubr.msk.f32.gmra.mrb[124].mxu1 %vm204_vm1, %v6702_v2 }
 0x112   : > { %998 = vst.msk [vmem:[#allocation2 + $0x10] sm:$0xff] %vm204_vm1, %v982_v23  ;;  %v729_v26 = vadd.f32 %v706_v50, %v515_v25  ;;  %v5691_v28 = vpop.f32.mrb[20].mxu0  ;;  %6042 = vmatprep.mubr.msk.f32.mxu1 %vm204_vm1, %v5319_v62  ;;  %v777_v59 = vld [vmem:[#allocation2 + $0x58] sm:$0xff] }
 0x113   : > { %746 = vst.msk [vmem:[#allocation2 + $0x78] sm:$0xff] %vm204_vm1, %v730_v24  ;;  %v985_v9 = vadd.f32 %v5691_v28, %v771_v27  ;;  %v921_v30 = vpop.f32.mrb[21].mxu0  ;;  %6017 = vmatmul.mubr.msk.f32.gmra.mrb[126].mxu0 %vm204_vm1, %v6856_v10  ;;  %v776_v8 = vld [vmem:[#allocation2 + $0x50] sm:$0xff] }
 0x114   : > { %745 = vst.msk [vmem:[#allocation2 + $0x70] sm:$0xff] %vm204_vm1, %v729_v26  ;;  %v984_v32 = vadd.f32 %v921_v30, %v770_v29  ;;  %v1029_v33 = vld [vmem:[#allocation2 + $0x8] sm:$0xff]  ;;  %v5717_v34 = vpop.f32.mrb[20].mxu1 }
 0x115   : > { %1001 = vst.msk [vmem:[#allocation2 + $0x28] sm:$0xff] %vm204_vm1, %v985_v9  ;;  %v1243_v2 = vadd.f32 %v5711_v51, %v1029_v33  ;;  %v1028_v55 = vld [vmem:[#allocation2] sm:$0xff]  ;;  %v1183_v10 = vpop.f32.mrb[21].mxu1  ;;  %6043 = vmatmul.mubr.msk.f32.gmra.mrb[126].mxu1 %vm204_vm1, %v5320_v31 }
 0x116   : > { %1000 = vst.msk [vmem:[#allocation2 + $0x20] sm:$0xff] %vm204_vm1, %v984_v32  ;;  %v1242_v35 = vadd.f32 %v1163_v19, %v1028_v55  ;;  %v5694_v37 = vpop.f32.mrb[22].mxu0  ;;  %v779_v17 = vld [vmem:[#allocation2 + $0x68] sm:$0xff] }
 0x117   : > { %1259 = vst.msk [vmem:[#allocation2 + $0x8] sm:$0xff] %vm204_vm1, %v1243_v2  ;;  %v987_v38 = vadd.f32 %v5694_v37, %v773_v36  ;;  %v931_v40 = vpop.f32.mrb[23].mxu0  ;;  %v778_v22 = vld [vmem:[#allocation2 + $0x60] sm:$0xff] }
 0x118   : > { %1258 = vst.msk [vmem:[#allocation2] sm:$0xff] %vm204_vm1, %v1242_v35  ;;  %v986_v56 = vadd.f32 %v931_v40, %v772_v39  ;;  %v1031_v41 = vld [vmem:[#allocation2 + $0x18] sm:$0xff]  ;;  %v5720_v44 = vpop.f32.mrb[22].mxu1 }
 0x119   : > { %1003 = vst.msk [vmem:[#allocation2 + $0x38] sm:$0xff] %vm204_vm1, %v987_v38  ;;  %v1245_v42 = vadd.f32 %v5714_v1, %v1031_v41  ;;  %v1030_v43 = vld [vmem:[#allocation2 + $0x10] sm:$0xff]  ;;  %v1193_v46 = vpop.f32.mrb[23].mxu1 }
 0x11a   : > { %1002 = vst.msk [vmem:[#allocation2 + $0x30] sm:$0xff] %vm204_vm1, %v986_v56  ;;  %v1244_v57 = vadd.f32 %v1173_v54, %v1030_v43  ;;  %v5697_v45 = vpop.f32.mrb[24].mxu0  ;;  %v781_v54 = vld [vmem:[#allocation2 + $0x78] sm:$0xff] }
 0x11b   : > { %1261 = vst.msk [vmem:[#allocation2 + $0x18] sm:$0xff] %vm204_vm1, %v1245_v42  ;;  %v989_v47 = vadd.f32 %v5697_v45, %v775_v16  ;;  %v941_v49 = vpop.f32.mrb[25].mxu0  ;;  %v780_v32 = vld [vmem:[#allocation2 + $0x70] sm:$0xff] }
 0x11c   : > { %1260 = vst.msk [vmem:[#allocation2 + $0x10] sm:$0xff] %vm204_vm1, %v1244_v57  ;;  %v988_v63 = vadd.f32 %v941_v49, %v774_v48  ;;  %v1033_v58 = vld [vmem:[#allocation2 + $0x28] sm:$0xff]  ;;  %v5723_v4 = vpop.f32.mrb[24].mxu1 }
 0x11d   : > { %1005 = vst.msk [vmem:[#allocation2 + $0x48] sm:$0xff] %vm204_vm1, %v989_v47  ;;  %v1247_v0 = vadd.f32 %v5717_v34, %v1033_v58  ;;  %v1032_v3 = vld [vmem:[#allocation2 + $0x20] sm:$0xff]  ;;  %v1203_v50 = vpop.f32.mrb[25].mxu1 }
 0x11e   : > { %1004 = vst.msk [vmem:[#allocation2 + $0x40] sm:$0xff] %vm204_vm1, %v988_v63  ;;  %v1246_v5 = vadd.f32 %v1183_v10, %v1032_v3  ;;  %v5700_v18 = vpop.f32.mrb[26].mxu0  ;;  %v1275_v6 = vld [vmem:[#allocation2 + $0x8] sm:$0xff] }
 0x11f   : > { %1263 = vst.msk [vmem:[#allocation2 + $0x28] sm:$0xff] %vm204_vm1, %v1247_v0  ;;  %v991_v7 = vadd.f32 %v5700_v18, %v777_v59  ;;  %v951_v11 = vpop.f32.mrb[27].mxu0  ;;  %1307 = vst.msk [vmem:[#allocation2 + $0x8] sm:$0xff] %vm204_vm1, %v6525_v53  ;;  %v1274_v12 = vld [vmem:[#allocation2] sm:$0xff] }
 0x120   : > { %1291 = vst.msk [vmem:[%s7052_s25 + $0x8] sm:$0xff] %vm204_vm1, %v1275_v6  ;;  %1262 = vst.msk [vmem:[#allocation2 + $0x20] sm:$0xff] %vm204_vm1, %v1246_v5  ;;  %v990_v60 = vadd.f32 %v951_v11, %v776_v8  ;;  %v1035_v13 = vld [vmem:[#allocation2 + $0x38] sm:$0xff]  ;;  %v5726_v61 = vpop.f32.mrb[26].mxu1 }
 0x121   : > { %1306 = vst.msk [vmem:[#allocation2] sm:$0xff] %vm204_vm1, %v6525_v53  ;;  %1290 = vst.msk [vmem:[%s7052_s25] sm:$0xff] %vm204_vm1, %v1274_v12  ;;  %v1249_v14 = vadd.f32 %v5720_v44, %v1035_v13  ;;  %v1034_v51 = vld [vmem:[#allocation2 + $0x30] sm:$0xff]  ;;  %v1213_v20 = vpop.f32.mrb[27].mxu1 }
 0x122   : > { %1007 = vst.msk [vmem:[#allocation2 + $0x58] sm:$0xff] %vm204_vm1, %v991_v7  ;;  %1006 = vst.msk [vmem:[#allocation2 + $0x50] sm:$0xff] %vm204_vm1, %v990_v60  ;;  %v1248_v15 = vadd.f32 %v1193_v46, %v1034_v51  ;;  %v5703_v19 = vpop.f32.mrb[28].mxu0  ;;  %v1277_v21 = vld [vmem:[#allocation2 + $0x18] sm:$0xff] }
 0x123   : > { %1265 = vst.msk [vmem:[#allocation2 + $0x38] sm:$0xff] %vm204_vm1, %v1249_v14  ;;  %v993_v52 = vadd.f32 %v5703_v19, %v779_v17  ;;  %v961_v23 = vpop.f32.mrb[29].mxu0  ;;  %1309 = vst.msk [vmem:[#allocation2 + $0x18] sm:$0xff] %vm204_vm1, %v6525_v53  ;;  %v1276_v62 = vld [vmem:[#allocation2 + $0x10] sm:$0xff] }
 0x124   : > { %1293 = vst.msk [vmem:[%s7052_s25 + $0x28] sm:$0xff] %vm204_vm1, %v1277_v21  ;;  %1264 = vst.msk [vmem:[#allocation2 + $0x30] sm:$0xff] %vm204_vm1, %v1248_v15  ;;  %v992_v24 = vadd.f32 %v961_v23, %v778_v22  ;;  %v1037_v25 = vld [vmem:[#allocation2 + $0x48] sm:$0xff]  ;;  %v5729_v27 = vpop.f32.mrb[28].mxu1 }
 0x125   : > { %1308 = vst.msk [vmem:[#allocation2 + $0x10] sm:$0xff] %vm204_vm1, %v6525_v53  ;;  %1292 = vst.msk [vmem:[%s7052_s25 + $0x20] sm:$0xff] %vm204_vm1, %v1276_v62  ;;  %v1251_v1 = vadd.f32 %v5723_v4, %v1037_v25  ;;  %v1036_v26 = vld [vmem:[#allocation2 + $0x40] sm:$0xff]  ;;  %v1223_v29 = vpop.f32.mrb[29].mxu1 }
 0x126   : > { %1009 = vst.msk [vmem:[#allocation2 + $0x68] sm:$0xff] %vm204_vm1, %v993_v52  ;;  %1008 = vst.msk [vmem:[#allocation2 + $0x60] sm:$0xff] %vm204_vm1, %v992_v24  ;;  %v1250_v28 = vadd.f32 %v1203_v50, %v1036_v26  ;;  %v5706_v9 = vpop.f32.mrb[30].mxu0  ;;  %v1279_v30 = vld [vmem:[#allocation2 + $0x28] sm:$0xff] }
 0x127   : > { %1267 = vst.msk [vmem:[#allocation2 + $0x48] sm:$0xff] %vm204_vm1, %v1251_v1  ;;  %v995_v31 = vadd.f32 %v5706_v9, %v781_v54  ;;  %v971_v33 = vpop.f32.mrb[31].mxu0  ;;  %1311 = vst.msk [vmem:[#allocation2 + $0x28] sm:$0xff] %vm204_vm1, %v6525_v53  ;;  %v1278_v2 = vld [vmem:[#allocation2 + $0x20] sm:$0xff]  ;;  %v1339_v35 = vld [vmem:[#allocation2 + $0x8] sm:$0xff] }
 0x128   : > { %1295 = vst.msk [vmem:[%s7052_s25 + $0x48] sm:$0xff] %vm204_vm1, %v1279_v30  ;;  %1266 = vst.msk [vmem:[#allocation2 + $0x40] sm:$0xff] %vm204_vm1, %v1250_v28  ;;  %v994_v55 = vadd.f32 %v971_v33, %v780_v32  ;;  %v1338_v10 = vld [vmem:[#allocation2] sm:$0xff]  ;;  %v5732_v38 = vpop.f32.mrb[30].mxu1 }
 0x129   : > { %v1039_v34 = vld [vmem:[#allocation2 + $0x58] sm:$0xff]  ;;  %1310 = vst.msk [vmem:[#allocation2 + $0x20] sm:$0xff] %vm204_vm1, %v6525_v53  ;;  %1294 = vst.msk [vmem:[%s7052_s25 + $0x40] sm:$0xff] %vm204_vm1, %v1278_v2  ;;  %v1038_v37 = vld [vmem:[#allocation2 + $0x50] sm:$0xff]  ;;  %v1233_v56 = vpop.f32.mrb[31].mxu1 }
 0x12a   : > { %1011 = vst.msk [vmem:[#allocation2 + $0x78] sm:$0xff] %vm204_vm1, %v995_v31  ;;  %v1253_v36 = vadd.f32 %v5726_v61, %v1039_v34  ;;  %1010 = vst.msk [vmem:[#allocation2 + $0x70] sm:$0xff] %vm204_vm1, %v994_v55  ;;  %v1252_v39 = vadd.f32 %v1213_v20, %v1038_v37  ;;  %v5737_v40 = vpop.f32.mrb[32].mxu0  ;;  %v1281_v41 = vld [vmem:[#allocation2 + $0x38] sm:$0xff] }
 0x12b   : > { %v1553_v42 = vadd.f32 %v5737_v40, %v1339_v35  ;;  %v1473_v43 = vpop.f32.mrb[33].mxu0  ;;  %1313 = vst.msk [vmem:[#allocation2 + $0x38] sm:$0xff] %vm204_vm1, %v6525_v53  ;;  %v1280_v44 = vld [vmem:[#allocation2 + $0x30] sm:$0xff]  ;;  %1297 = vst.msk [vmem:[%s7052_s25 + $0x68] sm:$0xff] %vm204_vm1, %v1281_v41  ;;  %v1341_v45 = vld [vmem:[#allocation2 + $0x18] sm:$0xff] }
 0x12c   : > { %1269 = vst.msk [vmem:[#allocation2 + $0x58] sm:$0xff] %vm204_vm1, %v1253_v36  ;;  %1268 = vst.msk [vmem:[#allocation2 + $0x50] sm:$0xff] %vm204_vm1, %v1252_v39  ;;  %v1552_v16 = vadd.f32 %v1473_v43, %v1338_v10  ;;  %v1340_v48 = vld [vmem:[#allocation2 + $0x10] sm:$0xff]  ;;  %v5763_v49 = vpop.f32.mrb[32].mxu1 }
 0x12d   : > { %v1041_v57 = vld [vmem:[#allocation2 + $0x68] sm:$0xff]  ;;  %1312 = vst.msk [vmem:[#allocation2 + $0x30] sm:$0xff] %vm204_vm1, %v6525_v53  ;;  %1296 = vst.msk [vmem:[%s7052_s25 + $0x60] sm:$0xff] %vm204_vm1, %v1280_v44  ;;  %v1040_v47 = vld [vmem:[#allocation2 + $0x60] sm:$0xff]  ;;  %v1735_v0 = vpop.f32.mrb[33].mxu1 }
 0x12e   : > { %1569 = vst.msk [vmem:[#allocation2 + $0x8] sm:$0xff] %vm204_vm1, %v1553_v42  ;;  %v1255_v46 = vadd.f32 %v5729_v27, %v1041_v57  ;;  %1568 = vst.msk [vmem:[#allocation2] sm:$0xff] %vm204_vm1, %v1552_v16  ;;  %v1254_v63 = vadd.f32 %v1223_v29, %v1040_v47  ;;  %v5740_v58 = vpop.f32.mrb[34].mxu0  ;;  %v1283_v3 = vld [vmem:[#allocation2 + $0x48] sm:$0xff] }
 0x12f   : > { %v1555_v4 = vadd.f32 %v5740_v58, %v1341_v45  ;;  %v1483_v5 = vpop.f32.mrb[35].mxu0  ;;  %1315 = vst.msk [vmem:[#allocation2 + $0x48] sm:$0xff] %vm204_vm1, %v6525_v53  ;;  %v1282_v59 = vld [vmem:[#allocation2 + $0x40] sm:$0xff]  ;;  %1299 = vst.msk [vmem:[%s7052_s25 + $0x88] sm:$0xff] %vm204_vm1, %v1283_v3  ;;  %v1343_v6 = vld [vmem:[#allocation2 + $0x28] sm:$0xff] }
 0x130   : > { %1271 = vst.msk [vmem:[#allocation2 + $0x68] sm:$0xff] %vm204_vm1, %v1255_v46  ;;  %1270 = vst.msk [vmem:[#allocation2 + $0x60] sm:$0xff] %vm204_vm1, %v1254_v63  ;;  %v1554_v50 = vadd.f32 %v1483_v5, %v1340_v48  ;;  %v1342_v11 = vld [vmem:[#allocation2 + $0x20] sm:$0xff]  ;;  %v5766_v12 = vpop.f32.mrb[34].mxu1 }
 0x131   : > { %v1043_v18 = vld [vmem:[#allocation2 + $0x78] sm:$0xff]  ;;  %1314 = vst.msk [vmem:[#allocation2 + $0x40] sm:$0xff] %vm204_vm1, %v6525_v53  ;;  %1298 = vst.msk [vmem:[%s7052_s25 + $0x80] sm:$0xff] %vm204_vm1, %v1282_v59  ;;  %v1042_v8 = vld [vmem:[#allocation2 + $0x70] sm:$0xff]  ;;  %v1745_v14 = vpop.f32.mrb[35].mxu1 }
 0x132   : > { %1571 = vst.msk [vmem:[#allocation2 + $0x18] sm:$0xff] %vm204_vm1, %v1555_v4  ;;  %v1257_v7 = vadd.f32 %v5732_v38, %v1043_v18  ;;  %1570 = vst.msk [vmem:[#allocation2 + $0x10] sm:$0xff] %vm204_vm1, %v1554_v50  ;;  %v1256_v60 = vadd.f32 %v1233_v56, %v1042_v8  ;;  %v5743_v13 = vpop.f32.mrb[36].mxu0  ;;  %v1345_v21 = vld [vmem:[#allocation2 + $0x38] sm:$0xff] }
 0x133   : > { %v1285_v51 = vld [vmem:[#allocation2 + $0x58] sm:$0xff]  ;;  %v1557_v61 = vadd.f32 %v5743_v13, %v1343_v6  ;;  %v1493_v15 = vpop.f32.mrb[37].mxu0  ;;  %v1284_v17 = vld [vmem:[#allocation2 + $0x50] sm:$0xff] }
 0x134   : > { %1273 = vst.msk [vmem:[#allocation2 + $0x78] sm:$0xff] %vm204_vm1, %v1257_v7  ;;  %1317 = vst.msk [vmem:[#allocation2 + $0x58] sm:$0xff] %vm204_vm1, %v6525_v53  ;;  %v1556_v19 = vadd.f32 %v1493_v15, %v1342_v11  ;;  %v1344_v23 = vld [vmem:[#allocation2 + $0x30] sm:$0xff]  ;;  %v5769_v62 = vpop.f32.mrb[36].mxu1 }
 0x135   : > { %1301 = vst.msk [vmem:[%s7052_s25 + $0xa8] sm:$0xff] %vm204_vm1, %v1285_v51  ;;  %1272 = vst.msk [vmem:[#allocation2 + $0x70] sm:$0xff] %vm204_vm1, %v1256_v60  ;;  %v1601_v20 = vld [vmem:[#allocation2 + $0x8] sm:$0xff]  ;;  %v1600_v22 = vld [vmem:[#allocation2] sm:$0xff]  ;;  %v1755_v1 = vpop.f32.mrb[37].mxu1 }
 0x136   : > { %1316 = vst.msk [vmem:[#allocation2 + $0x50] sm:$0xff] %vm204_vm1, %v6525_v53  ;;  %1300 = vst.msk [vmem:[%s7052_s25 + $0xa0] sm:$0xff] %vm204_vm1, %v1284_v17  ;;  %v1815_v52 = vadd.f32 %v5763_v49, %v1601_v20  ;;  %v1814_v24 = vadd.f32 %v1735_v0, %v1600_v22  ;;  %v5746_v25 = vpop.f32.mrb[38].mxu0  ;;  %v1347_v30 = vld [vmem:[#allocation2 + $0x48] sm:$0xff] }
 0x137   : > { %1573 = vst.msk [vmem:[#allocation2 + $0x28] sm:$0xff] %vm204_vm1, %v1557_v61  ;;  %1572 = vst.msk [vmem:[#allocation2 + $0x20] sm:$0xff] %vm204_vm1, %v1556_v19  ;;  %v1287_v26 = vld [vmem:[#allocation2 + $0x68] sm:$0xff]  ;;  %v1559_v27 = vadd.f32 %v5746_v25, %v1345_v21  ;;  %v1503_v28 = vpop.f32.mrb[39].mxu0  ;;  %v1286_v54 = vld [vmem:[#allocation2 + $0x60] sm:$0xff] }
 0x138   : > { %1831 = vst.msk [vmem:[#allocation2 + $0x8] sm:$0xff] %vm204_vm1, %v1815_v52  ;;  %1319 = vst.msk [vmem:[#allocation2 + $0x68] sm:$0xff] %vm204_vm1, %v6525_v53  ;;  %v1558_v9 = vadd.f32 %v1503_v28, %v1344_v23  ;;  %v1346_v33 = vld [vmem:[#allocation2 + $0x40] sm:$0xff]  ;;  %v5772_v2 = vpop.f32.mrb[38].mxu1 }
 0x139   : > { %1303 = vst.msk [vmem:[%s7052_s25 + $0xc8] sm:$0xff] %vm204_vm1, %v1287_v26  ;;  %1830 = vst.msk [vmem:[#allocation2] sm:$0xff] %vm204_vm1, %v1814_v24  ;;  %v1603_v29 = vld [vmem:[#allocation2 + $0x18] sm:$0xff]  ;;  %v1602_v32 = vld [vmem:[#allocation2 + $0x10] sm:$0xff]  ;;  %v1765_v35 = vpop.f32.mrb[39].mxu1 }
 0x13a   : > { %1318 = vst.msk [vmem:[#allocation2 + $0x60] sm:$0xff] %vm204_vm1, %v6525_v53  ;;  %1302 = vst.msk [vmem:[%s7052_s25 + $0xc0] sm:$0xff] %vm204_vm1, %v1286_v54  ;;  %v1817_v31 = vadd.f32 %v5766_v12, %v1603_v29  ;;  %v1816_v55 = vadd.f32 %v1745_v14, %v1602_v32  ;;  %v5749_v34 = vpop.f32.mrb[40].mxu0 }
 0x13b   : > { %1575 = vst.msk [vmem:[#allocation2 + $0x38] sm:$0xff] %vm204_vm1, %v1559_v27  ;;  %1574 = vst.msk [vmem:[#allocation2 + $0x30] sm:$0xff] %vm204_vm1, %v1558_v9  ;;  %v1289_v36 = vld [vmem:[#allocation2 + $0x78] sm:$0xff]  ;;  %v1561_v37 = vadd.f32 %v5749_v34, %v1347_v30  ;;  %v1513_v10 = vpop.f32.mrb[41].mxu0 }
 0x13c   : > { %1833 = vst.msk [vmem:[#allocation2 + $0x18] sm:$0xff] %vm204_vm1, %v1817_v31  ;;  %1321 = vst.msk [vmem:[#allocation2 + $0x78] sm:$0xff] %vm204_vm1, %v6525_v53  ;;  %v1288_v38 = vld [vmem:[#allocation2 + $0x70] sm:$0xff]  ;;  %v1560_v39 = vadd.f32 %v1513_v10, %v1346_v33  ;;  %v1349_v56 = vld [vmem:[#allocation2 + $0x58] sm:$0xff]  ;;  %v5775_v44 = vpop.f32.mrb[40].mxu1 }
 0x13d   : > { %1305 = vst.msk [vmem:[%s7052_s25 + $0xe8] sm:$0xff] %vm204_vm1, %v1289_v36  ;;  %1832 = vst.msk [vmem:[#allocation2 + $0x10] sm:$0xff] %vm204_vm1, %v1816_v55  ;;  %v1348_v43 = vld [vmem:[#allocation2 + $0x50] sm:$0xff]  ;;  %v1775_v45 = vpop.f32.mrb[41].mxu1 }
 0x13e   : > { %v1605_v40 = vld [vmem:[#allocation2 + $0x28] sm:$0xff]  ;;  %1320 = vst.msk [vmem:[#allocation2 + $0x70] sm:$0xff] %vm204_vm1, %v6525_v53  ;;  %1304 = vst.msk [vmem:[%s7052_s25 + $0xe0] sm:$0xff] %vm204_vm1, %v1288_v38  ;;  %v1604_v42 = vld [vmem:[#allocation2 + $0x20] sm:$0xff]  ;;  %v5752_v16 = vpop.f32.mrb[42].mxu0 }
 0x13f   : > { %1577 = vst.msk [vmem:[#allocation2 + $0x48] sm:$0xff] %vm204_vm1, %v1561_v37  ;;  %v1819_v41 = vadd.f32 %v5769_v62, %v1605_v40  ;;  %1576 = vst.msk [vmem:[#allocation2 + $0x40] sm:$0xff] %vm204_vm1, %v1560_v39  ;;  %v1818_v57 = vadd.f32 %v1755_v1, %v1604_v42  ;;  %v1563_v46 = vadd.f32 %v5752_v16, %v1349_v56  ;;  %v1523_v47 = vpop.f32.mrb[43].mxu0  ;;  %v1351_v63 = vld [vmem:[#allocation2 + $0x68] sm:$0xff] }
 0x140   : > { %v1562_v48 = vadd.f32 %v1523_v47, %v1348_v43  ;;  %v5778_v4 = vpop.f32.mrb[42].mxu1  ;;  %v1863_v24 = vld [vmem:[#allocation2 + $0x8] sm:$0xff]  ;;  %v1862_v27 = vld [vmem:[#allocation2] sm:$0xff] }
 0x141   : > { %1835 = vst.msk [vmem:[#allocation2 + $0x28] sm:$0xff] %vm204_vm1, %v1819_v41  ;;  %1834 = vst.msk [vmem:[#allocation2 + $0x20] sm:$0xff] %vm204_vm1, %v1818_v57  ;;  %v1350_v3 = vld [vmem:[#allocation2 + $0x60] sm:$0xff]  ;;  %v1785_v18 = vpop.f32.mrb[43].mxu1 }
 0x142   : > { %v1607_v49 = vld [vmem:[#allocation2 + $0x38] sm:$0xff]  ;;  %1579 = vst.msk [vmem:[#allocation2 + $0x58] sm:$0xff] %vm204_vm1, %v1563_v46  ;;  %v1606_v0 = vld [vmem:[#allocation2 + $0x30] sm:$0xff]  ;;  %1578 = vst.msk [vmem:[#allocation2 + $0x50] sm:$0xff] %vm204_vm1, %v1562_v48  ;;  %v5755_v59 = vpop.f32.mrb[44].mxu0 }
 0x143   : > { %v1821_v58 = vadd.f32 %v5772_v2, %v1607_v49  ;;  %v1820_v5 = vadd.f32 %v1765_v35, %v1606_v0  ;;  %v1565_v50 = vadd.f32 %v5755_v59, %v1351_v63  ;;  %v1533_v6 = vpop.f32.mrb[45].mxu0  ;;  %v1353_v11 = vld [vmem:[#allocation2 + $0x78] sm:$0xff] }
 0x144   : > { %v1564_v7 = vadd.f32 %v1533_v6, %v1350_v3  ;;  %v5781_v14 = vpop.f32.mrb[44].mxu1  ;;  %v1865_v33 = vld [vmem:[#allocation2 + $0x18] sm:$0xff]  ;;  %v1864_v35 = vld [vmem:[#allocation2 + $0x10] sm:$0xff] }
 0x145   : > { %1837 = vst.msk [vmem:[#allocation2 + $0x38] sm:$0xff] %vm204_vm1, %v1821_v58  ;;  %1836 = vst.msk [vmem:[#allocation2 + $0x30] sm:$0xff] %vm204_vm1, %v1820_v5  ;;  %v1352_v13 = vld [vmem:[#allocation2 + $0x70] sm:$0xff]  ;;  %v1795_v15 = vpop.f32.mrb[45].mxu1 }
 0x146   : > { %v1609_v8 = vld [vmem:[#allocation2 + $0x48] sm:$0xff]  ;;  %1581 = vst.msk [vmem:[#allocation2 + $0x68] sm:$0xff] %vm204_vm1, %v1565_v50  ;;  %v1608_v60 = vld [vmem:[#allocation2 + $0x40] sm:$0xff]  ;;  %1580 = vst.msk [vmem:[#allocation2 + $0x60] sm:$0xff] %vm204_vm1, %v1564_v7  ;;  %v5758_v61 = vpop.f32.mrb[46].mxu0 }
 0x147   : > { %v1823_v12 = vadd.f32 %v5775_v44, %v1609_v8  ;;  %v1822_v51 = vadd.f32 %v1775_v45, %v1608_v60  ;;  %v1567_v17 = vadd.f32 %v5758_v61, %v1353_v11  ;;  %v1543_v19 = vpop.f32.mrb[47].mxu0 }
 0x148   : > { %v1566_v20 = vadd.f32 %v1543_v19, %v1352_v13  ;;  %v5784_v23 = vpop.f32.mrb[46].mxu1  ;;  %v1867_v41 = vld [vmem:[#allocation2 + $0x28] sm:$0xff]  ;;  %v1866_v57 = vld [vmem:[#allocation2 + $0x20] sm:$0xff] }
 0x149   : > { %1839 = vst.msk [vmem:[#allocation2 + $0x48] sm:$0xff] %vm204_vm1, %v1823_v12  ;;  %1838 = vst.msk [vmem:[#allocation2 + $0x40] sm:$0xff] %vm204_vm1, %v1822_v51  ;;  %v1611_v21 = vld [vmem:[#allocation2 + $0x58] sm:$0xff]  ;;  %v1610_v22 = vld [vmem:[#allocation2 + $0x50] sm:$0xff]  ;;  %v1805_v1 = vpop.f32.mrb[47].mxu1 }
 0x14a   : > { %1583 = vst.msk [vmem:[#allocation2 + $0x78] sm:$0xff] %vm204_vm1, %v1567_v17  ;;  %v1825_v52 = vadd.f32 %v5778_v4, %v1611_v21  ;;  %1582 = vst.msk [vmem:[#allocation2 + $0x70] sm:$0xff] %vm204_vm1, %v1566_v20  ;;  %v1824_v62 = vadd.f32 %v1785_v18, %v1610_v22  ;;  %v5789_v25 = vpop.f32.mrb[48].mxu0 }
 0x14b   : > { %v2077_v26 = vadd.f32 %v5789_v25, %v1863_v24  ;;  %v1997_v28 = vpop.f32.mrb[49].mxu0 }
 0x14c   : > { %1841 = vst.msk [vmem:[#allocation2 + $0x58] sm:$0xff] %vm204_vm1, %v1825_v52  ;;  %1840 = vst.msk [vmem:[#allocation2 + $0x50] sm:$0xff] %vm204_vm1, %v1824_v62  ;;  %v2076_v9 = vadd.f32 %v1997_v28, %v1862_v27  ;;  %v5815_v31 = vpop.f32.mrb[48].mxu1  ;;  %v1869_v58 = vld [vmem:[#allocation2 + $0x38] sm:$0xff]  ;;  %v1868_v5 = vld [vmem:[#allocation2 + $0x30] sm:$0xff] }
 0x14d   : > { %v1613_v54 = vld [vmem:[#allocation2 + $0x68] sm:$0xff]  ;;  %2093 = vst.msk [vmem:[#allocation2 + $0x8] sm:$0xff] %vm204_vm1, %v2077_v26  ;;  %v1612_v30 = vld [vmem:[#allocation2 + $0x60] sm:$0xff]  ;;  %v2259_v55 = vpop.f32.mrb[49].mxu1 }
 0x14e   : > { %v1827_v29 = vadd.f32 %v5781_v14, %v1613_v54  ;;  %2092 = vst.msk [vmem:[#allocation2] sm:$0xff] %vm204_vm1, %v2076_v9  ;;  %v1826_v32 = vadd.f32 %v1795_v15, %v1612_v30  ;;  %v5792_v2 = vpop.f32.mrb[50].mxu0 }
 0x14f   : > { %v2079_v34 = vadd.f32 %v5792_v2, %v1865_v33  ;;  %v2007_v36 = vpop.f32.mrb[51].mxu0 }
 0x150   : > { %1843 = vst.msk [vmem:[#allocation2 + $0x68] sm:$0xff] %vm204_vm1, %v1827_v29  ;;  %1842 = vst.msk [vmem:[#allocation2 + $0x60] sm:$0xff] %vm204_vm1, %v1826_v32  ;;  %v2078_v10 = vadd.f32 %v2007_v36, %v1864_v35  ;;  %v5818_v40 = vpop.f32.mrb[50].mxu1  ;;  %v1871_v12 = vld [vmem:[#allocation2 + $0x48] sm:$0xff]  ;;  %v1870_v51 = vld [vmem:[#allocation2 + $0x40] sm:$0xff] }
 0x151   : > { %v1615_v37 = vld [vmem:[#allocation2 + $0x78] sm:$0xff]  ;;  %2095 = vst.msk [vmem:[#allocation2 + $0x18] sm:$0xff] %vm204_vm1, %v2079_v34  ;;  %v1614_v39 = vld [vmem:[#allocation2 + $0x70] sm:$0xff]  ;;  %v2269_v43 = vpop.f32.mrb[51].mxu1 }
 0x152   : > { %v1829_v38 = vadd.f32 %v5784_v23, %v1615_v37  ;;  %2094 = vst.msk [vmem:[#allocation2 + $0x10] sm:$0xff] %vm204_vm1, %v2078_v10  ;;  %v1828_v56 = vadd.f32 %v1805_v1, %v1614_v39  ;;  %v5795_v42 = vpop.f32.mrb[52].mxu0 }
 0x153   : > { %v2081_v44 = vadd.f32 %v5795_v42, %v1867_v41  ;;  %v2017_v16 = vpop.f32.mrb[53].mxu0  ;;  %v1873_v22 = vld [vmem:[#allocation2 + $0x58] sm:$0xff]  ;;  %v1872_v1 = vld [vmem:[#allocation2 + $0x50] sm:$0xff] }
 0x154   : > { %1845 = vst.msk [vmem:[#allocation2 + $0x78] sm:$0xff] %vm204_vm1, %v1829_v38  ;;  %1844 = vst.msk [vmem:[#allocation2 + $0x70] sm:$0xff] %vm204_vm1, %v1828_v56  ;;  %v2080_v45 = vadd.f32 %v2017_v16, %v1866_v57  ;;  %v2125_v46 = vld [vmem:[#allocation2 + $0x8] sm:$0xff]  ;;  %v5821_v49 = vpop.f32.mrb[52].mxu1 }
 0x155   : > { %2097 = vst.msk [vmem:[#allocation2 + $0x28] sm:$0xff] %vm204_vm1, %v2081_v44  ;;  %v2339_v47 = vadd.f32 %v5815_v31, %v2125_v46  ;;  %v2124_v48 = vld [vmem:[#allocation2] sm:$0xff]  ;;  %v2279_v3 = vpop.f32.mrb[53].mxu1 }
 0x156   : > { %2096 = vst.msk [vmem:[#allocation2 + $0x20] sm:$0xff] %vm204_vm1, %v2080_v45  ;;  %v2338_v63 = vadd.f32 %v2259_v55, %v2124_v48  ;;  %v5798_v0 = vpop.f32.mrb[54].mxu0 }
 0x157   : > { %2355 = vst.msk [vmem:[#allocation2 + $0x8] sm:$0xff] %vm204_vm1, %v2339_v47  ;;  %v2083_v4 = vadd.f32 %v5798_v0, %v1869_v58  ;;  %v2027_v59 = vpop.f32.mrb[55].mxu0  ;;  %v1875_v32 = vld [vmem:[#allocation2 + $0x68] sm:$0xff]  ;;  %v1874_v35 = vld [vmem:[#allocation2 + $0x60] sm:$0xff] }
 0x158   : > { %2354 = vst.msk [vmem:[#allocation2] sm:$0xff] %vm204_vm1, %v2338_v63  ;;  %v2082_v18 = vadd.f32 %v2027_v59, %v1868_v5  ;;  %v2127_v50 = vld [vmem:[#allocation2 + $0x18] sm:$0xff]  ;;  %v5824_v8 = vpop.f32.mrb[54].mxu1 }
 0x159   : > { %2099 = vst.msk [vmem:[#allocation2 + $0x38] sm:$0xff] %vm204_vm1, %v2083_v4  ;;  %v2341_v6 = vadd.f32 %v5818_v40, %v2127_v50  ;;  %v2126_v7 = vld [vmem:[#allocation2 + $0x10] sm:$0xff]  ;;  %v2289_v13 = vpop.f32.mrb[55].mxu1 }
 0x15a   : > { %2098 = vst.msk [vmem:[#allocation2 + $0x30] sm:$0xff] %vm204_vm1, %v2082_v18  ;;  %v2340_v11 = vadd.f32 %v2269_v43, %v2126_v7  ;;  %v5801_v60 = vpop.f32.mrb[56].mxu0 }
 0x15b   : > { %2357 = vst.msk [vmem:[#allocation2 + $0x18] sm:$0xff] %vm204_vm1, %v2341_v6  ;;  %v2085_v14 = vadd.f32 %v5801_v60, %v1871_v12  ;;  %v2037_v61 = vpop.f32.mrb[57].mxu0  ;;  %v1877_v42 = vld [vmem:[#allocation2 + $0x78] sm:$0xff]  ;;  %v1876_v45 = vld [vmem:[#allocation2 + $0x70] sm:$0xff] }
 0x15c   : > { %2356 = vst.msk [vmem:[#allocation2 + $0x10] sm:$0xff] %vm204_vm1, %v2340_v11  ;;  %v2084_v15 = vadd.f32 %v2037_v61, %v1870_v51  ;;  %v2129_v17 = vld [vmem:[#allocation2 + $0x28] sm:$0xff]  ;;  %v5827_v21 = vpop.f32.mrb[56].mxu1 }
 0x15d   : > { %2101 = vst.msk [vmem:[#allocation2 + $0x48] sm:$0xff] %vm204_vm1, %v2085_v14  ;;  %v2343_v19 = vadd.f32 %v5821_v49, %v2129_v17  ;;  %v2128_v20 = vld [vmem:[#allocation2 + $0x20] sm:$0xff]  ;;  %v2299_v24 = vpop.f32.mrb[57].mxu1 }
 0x15e   : > { %2100 = vst.msk [vmem:[#allocation2 + $0x40] sm:$0xff] %vm204_vm1, %v2084_v15  ;;  %v2342_v52 = vadd.f32 %v2279_v3, %v2128_v20  ;;  %v5804_v23 = vpop.f32.mrb[58].mxu0  ;;  %v2371_v62 = vld [vmem:[#allocation2 + $0x8] sm:$0xff] }
 0x15f   : > { %2359 = vst.msk [vmem:[#allocation2 + $0x28] sm:$0xff] %vm204_vm1, %v2343_v19  ;;  %v2087_v25 = vadd.f32 %v5804_v23, %v1873_v22  ;;  %2404 = vrot.lane.b32.xlu0 %v2371_v62, %s6127_s26  ;;  %2468 = vst.msk [vmem:[#allocation2 + $0x8] sm:$0xff] %vm204_vm1, %v6525_v53  ;;  %v2047_v26 = vpop.f32.mrb[59].mxu0  ;;  %v2370_v27 = vld [vmem:[#allocation2] sm:$0xff] }
 0x160   : > { %2358 = vst.msk [vmem:[#allocation2 + $0x20] sm:$0xff] %vm204_vm1, %v2342_v52  ;;  %v2131_v28 = vld [vmem:[#allocation2 + $0x38] sm:$0xff]  ;;  %v2086_v54 = vadd.f32 %v2047_v26, %v1872_v1  ;;  %2467 = vst.msk [vmem:[#allocation2] sm:$0xff] %vm204_vm1, %v6525_v53  ;;  %v5830_v30 = vpop.f32.mrb[58].mxu1 }
 0x161   : > { %2103 = vst.msk [vmem:[#allocation2 + $0x58] sm:$0xff] %vm204_vm1, %v2087_v25  ;;  %v2345_v9 = vadd.f32 %v5824_v8, %v2131_v28  ;;  %v2130_v29 = vld [vmem:[#allocation2 + $0x30] sm:$0xff]  ;;  %v2309_v55 = vpop.f32.mrb[59].mxu1 }
 0x162   : > { %2102 = vst.msk [vmem:[#allocation2 + $0x50] sm:$0xff] %vm204_vm1, %v2086_v54  ;;  %v2344_v31 = vadd.f32 %v2289_v13, %v2130_v29  ;;  %v5807_v33 = vpop.f32.mrb[60].mxu0  ;;  %v2373_v2 = vld [vmem:[#allocation2 + $0x18] sm:$0xff] }
 0x163   : > { %2361 = vst.msk [vmem:[#allocation2 + $0x38] sm:$0xff] %vm204_vm1, %v2345_v9  ;;  %v2089_v34 = vadd.f32 %v5807_v33, %v1875_v32  ;;  %2402 = vrot.lane.b32.xlu0 %v2370_v27, %s6127_s26  ;;  %2408 = vrot.lane.b32.xlu1 %v2373_v2, %s6127_s26  ;;  %2470 = vst.msk [vmem:[#allocation2 + $0x18] sm:$0xff] %vm204_vm1, %v6525_v53  ;;  %v2057_v36 = vpop.f32.mrb[61].mxu0  ;;  %v2372_v37 = vld [vmem:[#allocation2 + $0x10] sm:$0xff] }
 0x164   : > { %2360 = vst.msk [vmem:[#allocation2 + $0x30] sm:$0xff] %vm204_vm1, %v2344_v31  ;;  %v2133_v10 = vld [vmem:[#allocation2 + $0x48] sm:$0xff]  ;;  %v2088_v38 = vadd.f32 %v2057_v36, %v1874_v35  ;;  %2469 = vst.msk [vmem:[#allocation2 + $0x10] sm:$0xff] %vm204_vm1, %v6525_v53  ;;  %v5833_v56 = vpop.f32.mrb[60].mxu1 }
 0x165   : > { %2105 = vst.msk [vmem:[#allocation2 + $0x68] sm:$0xff] %vm204_vm1, %v2089_v34  ;;  %v2347_v39 = vadd.f32 %v5827_v21, %v2133_v10  ;;  %v2132_v40 = vld [vmem:[#allocation2 + $0x40] sm:$0xff]  ;;  %v2319_v57 = vpop.f32.mrb[61].mxu1 }
 0x166   : > { %2104 = vst.msk [vmem:[#allocation2 + $0x60] sm:$0xff] %vm204_vm1, %v2088_v38  ;;  %v2346_v41 = vadd.f32 %v2299_v24, %v2132_v40  ;;  %v5810_v43 = vpop.f32.mrb[62].mxu0  ;;  %v2375_v44 = vld [vmem:[#allocation2 + $0x28] sm:$0xff] }
 0x167   : > { %2363 = vst.msk [vmem:[#allocation2 + $0x48] sm:$0xff] %vm204_vm1, %v2347_v39  ;;  %v2091_v16 = vadd.f32 %v5810_v43, %v1877_v42  ;;  %2406 = vrot.lane.b32.xlu1 %v2372_v37, %s6127_s26  ;;  %v2067_v46 = vpop.f32.mrb[63].mxu0  ;;  %v2374_v47 = vld [vmem:[#allocation2 + $0x20] sm:$0xff]  ;;  %2472 = vst.msk [vmem:[#allocation2 + $0x28] sm:$0xff] %vm204_vm1, %v6525_v53  ;;  %v2500_v63 = vld [vmem:[#allocation2 + $0x8] sm:$0xff] }
 0x168   : > { %2362 = vst.msk [vmem:[#allocation2 + $0x40] sm:$0xff] %vm204_vm1, %v2346_v41  ;;  %v2135_v48 = vld [vmem:[#allocation2 + $0x58] sm:$0xff]  ;;  %v2090_v49 = vadd.f32 %v2067_v46, %v1876_v45  ;;  %2410 = vrot.lane.b32.xlu0 %v2374_v47, %s6127_s26  ;;  %2471 = vst.msk [vmem:[#allocation2 + $0x20] sm:$0xff] %vm204_vm1, %v6525_v53  ;;  %v2499_v3 = vld [vmem:[#allocation2] sm:$0xff]  ;;  %v5836_v4 = vpop.f32.mrb[62].mxu1 }
 0x169   : > { %2107 = vst.msk [vmem:[#allocation2 + $0x78] sm:$0xff] %vm204_vm1, %v2091_v16  ;;  %v2349_v58 = vadd.f32 %v5830_v30, %v2135_v48  ;;  %v2134_v0 = vld [vmem:[#allocation2 + $0x50] sm:$0xff]  ;;  %v2329_v50 = vpop.f32.mrb[63].mxu1 }
 0x16a   : > { %2106 = vst.msk [vmem:[#allocation2 + $0x70] sm:$0xff] %vm204_vm1, %v2090_v49  ;;  %v2348_v5 = vadd.f32 %v2309_v55, %v2134_v0  ;;  %v5841_v59 = vpop.f32.mrb[64].mxu0  ;;  %v2377_v18 = vld [vmem:[#allocation2 + $0x38] sm:$0xff] }
 0x16b   : > { %2365 = vst.msk [vmem:[#allocation2 + $0x58] sm:$0xff] %vm204_vm1, %v2349_v58  ;;  %v2714_v6 = vadd.f32 %v5841_v59, %v2500_v63  ;;  %2412 = vrot.lane.b32.xlu1 %v2375_v44, %s6127_s26  ;;  %v2634_v7 = vpop.f32.mrb[65].mxu0  ;;  %v2376_v8 = vld [vmem:[#allocation2 + $0x30] sm:$0xff]  ;;  %2474 = vst.msk [vmem:[#allocation2 + $0x38] sm:$0xff] %vm204_vm1, %v6525_v53  ;;  %v2502_v60 = vld [vmem:[#allocation2 + $0x18] sm:$0xff] }
 0x16c   : > { %2364 = vst.msk [vmem:[#allocation2 + $0x50] sm:$0xff] %vm204_vm1, %v2348_v5  ;;  %v2137_v11 = vld [vmem:[#allocation2 + $0x68] sm:$0xff]  ;;  %v2713_v12 = vadd.f32 %v2634_v7, %v2499_v3  ;;  %2414 = vrot.lane.b32.xlu0 %v2376_v8, %s6127_s26  ;;  %2473 = vst.msk [vmem:[#allocation2 + $0x30] sm:$0xff] %vm204_vm1, %v6525_v53  ;;  %v2501_v51 = vld [vmem:[#allocation2 + $0x10] sm:$0xff]  ;;  %v5867_v61 = vpop.f32.mrb[64].mxu1 }
 0x16d   : > { %2730 = vst.msk [vmem:[#allocation2 + $0x8] sm:$0xff] %vm204_vm1, %v2714_v6  ;;  %v2351_v13 = vadd.f32 %v5833_v56, %v2137_v11  ;;  %v2136_v14 = vld [vmem:[#allocation2 + $0x60] sm:$0xff]  ;;  %v2896_v20 = vpop.f32.mrb[65].mxu1 }
 0x16e   : > { %2729 = vst.msk [vmem:[#allocation2] sm:$0xff] %vm204_vm1, %v2713_v12  ;;  %v2350_v15 = vadd.f32 %v2319_v57, %v2136_v14  ;;  %v5844_v17 = vpop.f32.mrb[66].mxu0  ;;  %v2379_v19 = vld [vmem:[#allocation2 + $0x48] sm:$0xff] }
 0x16f   : > { %2367 = vst.msk [vmem:[#allocation2 + $0x68] sm:$0xff] %vm204_vm1, %v2351_v13  ;;  %v2716_v21 = vadd.f32 %v5844_v17, %v2502_v60  ;;  %2416 = vrot.lane.b32.xlu1 %v2377_v18, %s6127_s26  ;;  %v2644_v52 = vpop.f32.mrb[67].mxu0  ;;  %v2378_v22 = vld [vmem:[#allocation2 + $0x40] sm:$0xff]  ;;  %2476 = vst.msk [vmem:[#allocation2 + $0x48] sm:$0xff] %vm204_vm1, %v6525_v53  ;;  %v2504_v24 = vld [vmem:[#allocation2 + $0x28] sm:$0xff] }
 0x170   : > { %2366 = vst.msk [vmem:[#allocation2 + $0x60] sm:$0xff] %vm204_vm1, %v2350_v15  ;;  %v2139_v23 = vld [vmem:[#allocation2 + $0x78] sm:$0xff]  ;;  %v2715_v62 = vadd.f32 %v2644_v52, %v2501_v51  ;;  %2418 = vrot.lane.b32.xlu0 %v2378_v22, %s6127_s26  ;;  %2475 = vst.msk [vmem:[#allocation2 + $0x40] sm:$0xff] %vm204_vm1, %v6525_v53  ;;  %v2503_v26 = vld [vmem:[#allocation2 + $0x20] sm:$0xff]  ;;  %v5870_v27 = vpop.f32.mrb[66].mxu1 }
 0x171   : > { %2732 = vst.msk [vmem:[#allocation2 + $0x18] sm:$0xff] %vm204_vm1, %v2716_v21  ;;  %v2353_v25 = vadd.f32 %v5836_v4, %v2139_v23  ;;  %v2138_v1 = vld [vmem:[#allocation2 + $0x70] sm:$0xff]  ;;  %v2906_v29 = vpop.f32.mrb[67].mxu1 }
 0x172   : > { %2731 = vst.msk [vmem:[#allocation2 + $0x10] sm:$0xff] %vm204_vm1, %v2715_v62  ;;  %v2352_v28 = vadd.f32 %v2329_v50, %v2138_v1  ;;  %v5847_v54 = vpop.f32.mrb[68].mxu0  ;;  %v2381_v9 = vld [vmem:[#allocation2 + $0x58] sm:$0xff] }
 0x173   : > { %2369 = vst.msk [vmem:[#allocation2 + $0x78] sm:$0xff] %vm204_vm1, %v2353_v25  ;;  %v2718_v30 = vadd.f32 %v5847_v54, %v2504_v24  ;;  %2420 = vrot.lane.b32.xlu1 %v2379_v19, %s6127_s26  ;;  %v2654_v31 = vpop.f32.mrb[69].mxu0  ;;  %v2380_v32 = vld [vmem:[#allocation2 + $0x50] sm:$0xff]  ;;  %2478 = vst.msk [vmem:[#allocation2 + $0x58] sm:$0xff] %vm204_vm1, %v6525_v53  ;;  %v2506_v55 = vld [vmem:[#allocation2 + $0x38] sm:$0xff] }
 0x174   : > { %2368 = vst.msk [vmem:[#allocation2 + $0x70] sm:$0xff] %vm204_vm1, %v2352_v28  ;;  %v2762_v33 = vld [vmem:[#allocation2 + $0x8] sm:$0xff]  ;;  %v2717_v2 = vadd.f32 %v2654_v31, %v2503_v26  ;;  %2422 = vrot.lane.b32.xlu0 %v2380_v32, %s6127_s26  ;;  %2477 = vst.msk [vmem:[#allocation2 + $0x50] sm:$0xff] %vm204_vm1, %v6525_v53  ;;  %v2505_v36 = vld [vmem:[#allocation2 + $0x30] sm:$0xff]  ;;  %v5873_v37 = vpop.f32.mrb[68].mxu1 }
 0x175   : > { %2734 = vst.msk [vmem:[#allocation2 + $0x28] sm:$0xff] %vm204_vm1, %v2718_v30  ;;  %v2976_v34 = vadd.f32 %v5867_v61, %v2762_v33  ;;  %v2761_v35 = vld [vmem:[#allocation2] sm:$0xff]  ;;  %v2916_v40 = vpop.f32.mrb[69].mxu1 }
 0x176   : > { %2733 = vst.msk [vmem:[#allocation2 + $0x20] sm:$0xff] %vm204_vm1, %v2717_v2  ;;  %v2975_v10 = vadd.f32 %v2896_v20, %v2761_v35  ;;  %v5850_v38 = vpop.f32.mrb[70].mxu0  ;;  %v2383_v39 = vld [vmem:[#allocation2 + $0x68] sm:$0xff] }
 0x177   : > { %2992 = vst.msk [vmem:[#allocation2 + $0x8] sm:$0xff] %vm204_vm1, %v2976_v34  ;;  %v2720_v56 = vadd.f32 %v5850_v38, %v2506_v55  ;;  %2424 = vrot.lane.b32.xlu1 %v2381_v9, %s6127_s26  ;;  %v2664_v41 = vpop.f32.mrb[71].mxu0  ;;  %v2382_v42 = vld [vmem:[#allocation2 + $0x60] sm:$0xff]  ;;  %2480 = vst.msk [vmem:[#allocation2 + $0x68] sm:$0xff] %vm204_vm1, %v6525_v53  ;;  %v2508_v57 = vld [vmem:[#allocation2 + $0x48] sm:$0xff] }
 0x178   : > { %2991 = vst.msk [vmem:[#allocation2] sm:$0xff] %vm204_vm1, %v2975_v10  ;;  %v2764_v43 = vld [vmem:[#allocation2 + $0x18] sm:$0xff]  ;;  %v2719_v44 = vadd.f32 %v2664_v41, %v2505_v36  ;;  %2426 = vrot.lane.b32.xlu0 %v2382_v42, %s6127_s26  ;;  %2479 = vst.msk [vmem:[#allocation2 + $0x60] sm:$0xff] %vm204_vm1, %v6525_v53  ;;  %v2507_v46 = vld [vmem:[#allocation2 + $0x40] sm:$0xff]  ;;  %v5876_v47 = vpop.f32.mrb[70].mxu1 }
 0x179   : > { %2736 = vst.msk [vmem:[#allocation2 + $0x38] sm:$0xff] %vm204_vm1, %v2720_v56  ;;  %v2978_v16 = vadd.f32 %v5870_v27, %v2764_v43  ;;  %v2763_v45 = vld [vmem:[#allocation2 + $0x10] sm:$0xff]  ;;  %v2926_v58 = vpop.f32.mrb[71].mxu1 }
 0x17a   : > { %2735 = vst.msk [vmem:[#allocation2 + $0x30] sm:$0xff] %vm204_vm1, %v2719_v44  ;;  %v2977_v48 = vadd.f32 %v2906_v29, %v2763_v45  ;;  %v5853_v49 = vpop.f32.mrb[72].mxu0  ;;  %v2385_v63 = vld [vmem:[#allocation2 + $0x78] sm:$0xff] }
 0x17b   : > { %2994 = vst.msk [vmem:[#allocation2 + $0x18] sm:$0xff] %vm204_vm1, %v2978_v16  ;;  %v2722_v0 = vadd.f32 %v5853_v49, %v2508_v57  ;;  %2428 = vrot.lane.b32.xlu1 %v2383_v39, %s6127_s26  ;;  %v2674_v3 = vpop.f32.mrb[73].mxu0  ;;  %v2384_v4 = vld [vmem:[#allocation2 + $0x70] sm:$0xff]  ;;  %2482 = vst.msk [vmem:[#allocation2 + $0x78] sm:$0xff] %vm204_vm1, %v6525_v53  ;;  %v2510_v18 = vld [vmem:[#allocation2 + $0x58] sm:$0xff] }
 0x17c   : > { %2993 = vst.msk [vmem:[#allocation2 + $0x10] sm:$0xff] %vm204_vm1, %v2977_v48  ;;  %v2766_v5 = vld [vmem:[#allocation2 + $0x28] sm:$0xff]  ;;  %v2721_v59 = vadd.f32 %v2674_v3, %v2507_v46  ;;  %2430 = vrot.lane.b32.xlu0 %v2384_v4, %s6127_s26  ;;  %2481 = vst.msk [vmem:[#allocation2 + $0x70] sm:$0xff] %vm204_vm1, %v6525_v53  ;;  %v2509_v7 = vld [vmem:[#allocation2 + $0x50] sm:$0xff]  ;;  %v5879_v8 = vpop.f32.mrb[72].mxu1 }
 0x17d   : > { %2738 = vst.msk [vmem:[#allocation2 + $0x48] sm:$0xff] %vm204_vm1, %v2722_v0  ;;  %v2980_v50 = vadd.f32 %v5873_v37, %v2766_v5  ;;  %v2765_v6 = vld [vmem:[#allocation2 + $0x20] sm:$0xff]  ;;  %v2936_v60 = vpop.f32.mrb[73].mxu1 }
 0x17e   : > { %2737 = vst.msk [vmem:[#allocation2 + $0x40] sm:$0xff] %vm204_vm1, %v2721_v59  ;;  %v2979_v11 = vadd.f32 %v2916_v40, %v2765_v6  ;;  %v5856_v12 = vpop.f32.mrb[74].mxu0  ;;  %v2512_v15 = vld [vmem:[#allocation2 + $0x68] sm:$0xff] }
 0x17f   : > { %2996 = vst.msk [vmem:[#allocation2 + $0x28] sm:$0xff] %vm204_vm1, %v2980_v50  ;;  %v2724_v13 = vadd.f32 %v5856_v12, %v2510_v18  ;;  %2432 = vrot.lane.b32.xlu1 %v2385_v63, %s6127_s26  ;;  %v2684_v14 = vpop.f32.mrb[75].mxu0  ;;  %v2511_v20 = vld [vmem:[#allocation2 + $0x60] sm:$0xff]  ;;  %v3027_v10 = vld [vmem:[#allocation2 + $0x8] sm:$0xff] }
 0x180   : > { %2995 = vst.msk [vmem:[#allocation2 + $0x20] sm:$0xff] %vm204_vm1, %v2979_v11  ;;  %v2768_v51 = vld [vmem:[#allocation2 + $0x38] sm:$0xff]  ;;  %v2723_v61 = vadd.f32 %v2684_v14, %v2509_v7  ;;  %v5882_v21 = vpop.f32.mrb[74].mxu1  ;;  %v3026_v56 = vld [vmem:[#allocation2] sm:$0xff] }
 0x181   : > { %2740 = vst.msk [vmem:[#allocation2 + $0x58] sm:$0xff] %vm204_vm1, %v2724_v13  ;;  %v2982_v17 = vadd.f32 %v5876_v47, %v2768_v51  ;;  %v2767_v19 = vld [vmem:[#allocation2 + $0x30] sm:$0xff]  ;;  %v2946_v23 = vpop.f32.mrb[75].mxu1 }
 0x182   : > { %2739 = vst.msk [vmem:[#allocation2 + $0x50] sm:$0xff] %vm204_vm1, %v2723_v61  ;;  %v2981_v52 = vadd.f32 %v2926_v58, %v2767_v19  ;;  %v5859_v22 = vpop.f32.mrb[76].mxu0  ;;  %v2514_v26 = vld [vmem:[#allocation2 + $0x78] sm:$0xff] }
 0x183   : > { %2998 = vst.msk [vmem:[#allocation2 + $0x38] sm:$0xff] %vm204_vm1, %v2982_v17  ;;  %v2726_v62 = vadd.f32 %v5859_v22, %v2512_v15  ;;  %v2694_v24 = vpop.f32.mrb[77].mxu0  ;;  %v2513_v54 = vld [vmem:[#allocation2 + $0x70] sm:$0xff]  ;;  %v3029_v46 = vld [vmem:[#allocation2 + $0x18] sm:$0xff] }
 0x184   : > { %2997 = vst.msk [vmem:[#allocation2 + $0x30] sm:$0xff] %vm204_vm1, %v2981_v52  ;;  %v2725_v25 = vadd.f32 %v2694_v24, %v2511_v20  ;;  %v2770_v1 = vld [vmem:[#allocation2 + $0x48] sm:$0xff]  ;;  %v5885_v9 = vpop.f32.mrb[76].mxu1  ;;  %v3028_v63 = vld [vmem:[#allocation2 + $0x10] sm:$0xff] }
 0x185   : > { %2742 = vst.msk [vmem:[#allocation2 + $0x68] sm:$0xff] %vm204_vm1, %v2726_v62  ;;  %v2984_v27 = vadd.f32 %v5879_v8, %v2770_v1  ;;  %v2769_v28 = vld [vmem:[#allocation2 + $0x40] sm:$0xff]  ;;  %v2956_v31 = vpop.f32.mrb[77].mxu1 }
 0x186   : > { %2741 = vst.msk [vmem:[#allocation2 + $0x60] sm:$0xff] %vm204_vm1, %v2725_v25  ;;  %v2983_v29 = vadd.f32 %v2936_v60, %v2769_v28  ;;  %v5862_v30 = vpop.f32.mrb[78].mxu0  ;;  %v3031_v50 = vld [vmem:[#allocation2 + $0x28] sm:$0xff] }
 0x187   : > { %3000 = vst.msk [vmem:[#allocation2 + $0x48] sm:$0xff] %vm204_vm1, %v2984_v27  ;;  %v2728_v32 = vadd.f32 %v5862_v30, %v2514_v26  ;;  %v2704_v33 = vpop.f32.mrb[79].mxu0  ;;  %v3030_v11 = vld [vmem:[#allocation2 + $0x20] sm:$0xff] }
 0x188   : > { %2999 = vst.msk [vmem:[#allocation2 + $0x40] sm:$0xff] %vm204_vm1, %v2983_v29  ;;  %v2727_v2 = vadd.f32 %v2704_v33, %v2513_v54  ;;  %v2772_v55 = vld [vmem:[#allocation2 + $0x58] sm:$0xff]  ;;  %v5888_v36 = vpop.f32.mrb[78].mxu1 }
 0x189   : > { %2744 = vst.msk [vmem:[#allocation2 + $0x78] sm:$0xff] %vm204_vm1, %v2728_v32  ;;  %v2986_v34 = vadd.f32 %v5882_v21, %v2772_v55  ;;  %v2771_v35 = vld [vmem:[#allocation2 + $0x50] sm:$0xff]  ;;  %v2966_v39 = vpop.f32.mrb[79].mxu1 }
 0x18a   : > { %2743 = vst.msk [vmem:[#allocation2 + $0x70] sm:$0xff] %vm204_vm1, %v2727_v2  ;;  %v2985_v37 = vadd.f32 %v2946_v23, %v2771_v35  ;;  %v5893_v38 = vpop.f32.mrb[80].mxu0  ;;  %v3033_v17 = vld [vmem:[#allocation2 + $0x38] sm:$0xff] }
 0x18b   : > { %3002 = vst.msk [vmem:[#allocation2 + $0x58] sm:$0xff] %vm204_vm1, %v2986_v34  ;;  %v3241_v40 = vadd.f32 %v5893_v38, %v3027_v10  ;;  %v3161_v41 = vpop.f32.mrb[81].mxu0  ;;  %v3032_v52 = vld [vmem:[#allocation2 + $0x30] sm:$0xff] }
 0x18c   : > { %3001 = vst.msk [vmem:[#allocation2 + $0x50] sm:$0xff] %vm204_vm1, %v2985_v37  ;;  %v2774_v42 = vld [vmem:[#allocation2 + $0x68] sm:$0xff]  ;;  %v3240_v43 = vadd.f32 %v3161_v41, %v3026_v56  ;;  %v5919_v16 = vpop.f32.mrb[80].mxu1 }
 0x18d   : > { %3257 = vst.msk [vmem:[#allocation2 + $0x8] sm:$0xff] %vm204_vm1, %v3241_v40  ;;  %v2988_v44 = vadd.f32 %v5885_v9, %v2774_v42  ;;  %v2773_v57 = vld [vmem:[#allocation2 + $0x60] sm:$0xff]  ;;  %v3423_v48 = vpop.f32.mrb[81].mxu1 }
 0x18e   : > { %3256 = vst.msk [vmem:[#allocation2] sm:$0xff] %vm204_vm1, %v3240_v43  ;;  %v2987_v45 = vadd.f32 %v2956_v31, %v2773_v57  ;;  %v5896_v47 = vpop.f32.mrb[82].mxu0  ;;  %v3035_v27 = vld [vmem:[#allocation2 + $0x48] sm:$0xff] }
 0x18f   : > { %3004 = vst.msk [vmem:[#allocation2 + $0x68] sm:$0xff] %vm204_vm1, %v2988_v44  ;;  %v3243_v49 = vadd.f32 %v5896_v47, %v3029_v46  ;;  %v3171_v58 = vpop.f32.mrb[83].mxu0  ;;  %v3034_v29 = vld [vmem:[#allocation2 + $0x40] sm:$0xff] }
 0x190   : > { %3003 = vst.msk [vmem:[#allocation2 + $0x60] sm:$0xff] %vm204_vm1, %v2987_v45  ;;  %v2776_v0 = vld [vmem:[#allocation2 + $0x78] sm:$0xff]  ;;  %v3242_v3 = vadd.f32 %v3171_v58, %v3028_v63  ;;  %v5922_v59 = vpop.f32.mrb[82].mxu1 }
 0x191   : > { %3259 = vst.msk [vmem:[#allocation2 + $0x18] sm:$0xff] %vm204_vm1, %v3243_v49  ;;  %v2990_v4 = vadd.f32 %v5888_v36, %v2776_v0  ;;  %v2775_v5 = vld [vmem:[#allocation2 + $0x70] sm:$0xff]  ;;  %v3433_v7 = vpop.f32.mrb[83].mxu1 }
 0x192   : > { %3258 = vst.msk [vmem:[#allocation2 + $0x10] sm:$0xff] %vm204_vm1, %v3242_v3  ;;  %v2989_v18 = vadd.f32 %v2966_v39, %v2775_v5  ;;  %v5899_v6 = vpop.f32.mrb[84].mxu0  ;;  %v3037_v35 = vld [vmem:[#allocation2 + $0x58] sm:$0xff] }
 0x193   : > { %3006 = vst.msk [vmem:[#allocation2 + $0x78] sm:$0xff] %vm204_vm1, %v2990_v4  ;;  %v3245_v8 = vadd.f32 %v5899_v6, %v3031_v50  ;;  %v3181_v12 = vpop.f32.mrb[85].mxu0  ;;  %v3036_v39 = vld [vmem:[#allocation2 + $0x50] sm:$0xff] }
 0x194   : > { %3005 = vst.msk [vmem:[#allocation2 + $0x70] sm:$0xff] %vm204_vm1, %v2989_v18  ;;  %v3244_v60 = vadd.f32 %v3181_v12, %v3030_v11  ;;  %v3289_v13 = vld [vmem:[#allocation2 + $0x8] sm:$0xff]  ;;  %v5925_v61 = vpop.f32.mrb[84].mxu1 }
 0x195   : > { %3261 = vst.msk [vmem:[#allocation2 + $0x28] sm:$0xff] %vm204_vm1, %v3245_v8  ;;  %v3503_v14 = vadd.f32 %v5919_v16, %v3289_v13  ;;  %v3288_v51 = vld [vmem:[#allocation2] sm:$0xff]  ;;  %v3443_v20 = vpop.f32.mrb[85].mxu1 }
 0x196   : > { %3260 = vst.msk [vmem:[#allocation2 + $0x20] sm:$0xff] %vm204_vm1, %v3244_v60  ;;  %v3502_v15 = vadd.f32 %v3423_v48, %v3288_v51  ;;  %v5902_v19 = vpop.f32.mrb[86].mxu0  ;;  %v3039_v45 = vld [vmem:[#allocation2 + $0x68] sm:$0xff] }
 0x197   : > { %3519 = vst.msk [vmem:[#allocation2 + $0x8] sm:$0xff] %vm204_vm1, %v3503_v14  ;;  %v3247_v21 = vadd.f32 %v5902_v19, %v3033_v17  ;;  %v3191_v22 = vpop.f32.mrb[87].mxu0  ;;  %v3038_v63 = vld [vmem:[#allocation2 + $0x60] sm:$0xff] }
 0x198   : > { %3518 = vst.msk [vmem:[#allocation2] sm:$0xff] %vm204_vm1, %v3502_v15  ;;  %v3246_v23 = vadd.f32 %v3191_v22, %v3032_v52  ;;  %v3291_v62 = vld [vmem:[#allocation2 + $0x18] sm:$0xff]  ;;  %v5928_v1 = vpop.f32.mrb[86].mxu1 }
 0x199   : > { %3263 = vst.msk [vmem:[#allocation2 + $0x38] sm:$0xff] %vm204_vm1, %v3247_v21  ;;  %v3505_v24 = vadd.f32 %v5922_v59, %v3291_v62  ;;  %v3290_v25 = vld [vmem:[#allocation2 + $0x10] sm:$0xff]  ;;  %v3453_v54 = vpop.f32.mrb[87].mxu1 }
 0x19a   : > { %3262 = vst.msk [vmem:[#allocation2 + $0x30] sm:$0xff] %vm204_vm1, %v3246_v23  ;;  %v3504_v26 = vadd.f32 %v3433_v7, %v3290_v25  ;;  %v5905_v28 = vpop.f32.mrb[88].mxu0  ;;  %v3041_v6 = vld [vmem:[#allocation2 + $0x78] sm:$0xff] }
 0x19b   : > { %3521 = vst.msk [vmem:[#allocation2 + $0x18] sm:$0xff] %vm204_vm1, %v3505_v24  ;;  %v3249_v9 = vadd.f32 %v5905_v28, %v3035_v27  ;;  %v3201_v30 = vpop.f32.mrb[89].mxu0  ;;  %v3040_v60 = vld [vmem:[#allocation2 + $0x70] sm:$0xff] }
 0x19c   : > { %3520 = vst.msk [vmem:[#allocation2 + $0x10] sm:$0xff] %vm204_vm1, %v3504_v26  ;;  %v3248_v31 = vadd.f32 %v3201_v30, %v3034_v29  ;;  %v3293_v32 = vld [vmem:[#allocation2 + $0x28] sm:$0xff]  ;;  %v5931_v55 = vpop.f32.mrb[88].mxu1 }
 0x19d   : > { %3265 = vst.msk [vmem:[#allocation2 + $0x48] sm:$0xff] %vm204_vm1, %v3249_v9  ;;  %v3507_v33 = vadd.f32 %v5925_v61, %v3293_v32  ;;  %v3292_v2 = vld [vmem:[#allocation2 + $0x20] sm:$0xff]  ;;  %v3463_v37 = vpop.f32.mrb[89].mxu1 }
 0x19e   : > { %3264 = vst.msk [vmem:[#allocation2 + $0x40] sm:$0xff] %vm204_vm1, %v3248_v31  ;;  %v3506_v34 = vadd.f32 %v3443_v20, %v3292_v2  ;;  %v5908_v36 = vpop.f32.mrb[90].mxu0  ;;  %v3535_v10 = vld [vmem:[#allocation2 + $0x8] sm:$0xff] }
 0x19f   : > { %3523 = vst.msk [vmem:[#allocation2 + $0x28] sm:$0xff] %vm204_vm1, %v3507_v33  ;;  %v3251_v38 = vadd.f32 %v5908_v36, %v3037_v35  ;;  %v3211_v40 = vpop.f32.mrb[91].mxu0  ;;  %3568 = vst.msk [vmem:[#allocation2 + $0x8] sm:$0xff] %vm204_vm1, %v6525_v53  ;;  %v3534_v56 = vld [vmem:[#allocation2] sm:$0xff] }
 0x1a0   : > { %5188 = vst.msk [vmem:[%s7052_s25 + $0x18] sm:$0xff] %vm204_vm1, %v3535_v10  ;;  %3522 = vst.msk [vmem:[#allocation2 + $0x20] sm:$0xff] %vm204_vm1, %v3506_v34  ;;  %v3250_v41 = vadd.f32 %v3211_v40, %v3036_v39  ;;  %v3295_v42 = vld [vmem:[#allocation2 + $0x38] sm:$0xff]  ;;  %v5934_v57 = vpop.f32.mrb[90].mxu1 }
 0x1a1   : > { %3567 = vst.msk [vmem:[#allocation2] sm:$0xff] %vm204_vm1, %v6525_v53  ;;  %5187 = vst.msk [vmem:[%s7052_s25 + $0x10] sm:$0xff] %vm204_vm1, %v3534_v56  ;;  %v3509_v43 = vadd.f32 %v5928_v1, %v3295_v42  ;;  %v3294_v44 = vld [vmem:[#allocation2 + $0x30] sm:$0xff]  ;;  %v3473_v47 = vpop.f32.mrb[91].mxu1 }
 0x1a2   : > { %3267 = vst.msk [vmem:[#allocation2 + $0x58] sm:$0xff] %vm204_vm1, %v3251_v38  ;;  %3266 = vst.msk [vmem:[#allocation2 + $0x50] sm:$0xff] %vm204_vm1, %v3250_v41  ;;  %v3508_v16 = vadd.f32 %v3453_v54, %v3294_v44  ;;  %v5911_v46 = vpop.f32.mrb[92].mxu0  ;;  %v3537_v48 = vld [vmem:[#allocation2 + $0x18] sm:$0xff] }
 0x1a3   : > { %3525 = vst.msk [vmem:[#allocation2 + $0x38] sm:$0xff] %vm204_vm1, %v3509_v43  ;;  %v3253_v49 = vadd.f32 %v5911_v46, %v3039_v45  ;;  %v3221_v58 = vpop.f32.mrb[93].mxu0  ;;  %3570 = vst.msk [vmem:[#allocation2 + $0x18] sm:$0xff] %vm204_vm1, %v6525_v53  ;;  %v3536_v0 = vld [vmem:[#allocation2 + $0x10] sm:$0xff] }
 0x1a4   : > { %5190 = vst.msk [vmem:[%s7052_s25 + $0x38] sm:$0xff] %vm204_vm1, %v3537_v48  ;;  %3524 = vst.msk [vmem:[#allocation2 + $0x30] sm:$0xff] %vm204_vm1, %v3508_v16  ;;  %v3252_v3 = vadd.f32 %v3221_v58, %v3038_v63  ;;  %v3297_v4 = vld [vmem:[#allocation2 + $0x48] sm:$0xff]  ;;  %v5937_v18 = vpop.f32.mrb[92].mxu1 }
 0x1a5   : > { %3569 = vst.msk [vmem:[#allocation2 + $0x10] sm:$0xff] %vm204_vm1, %v6525_v53  ;;  %5189 = vst.msk [vmem:[%s7052_s25 + $0x30] sm:$0xff] %vm204_vm1, %v3536_v0  ;;  %v3511_v5 = vadd.f32 %v5931_v55, %v3297_v4  ;;  %v3296_v59 = vld [vmem:[#allocation2 + $0x40] sm:$0xff]  ;;  %v3483_v8 = vpop.f32.mrb[93].mxu1 }
 0x1a6   : > { %3269 = vst.msk [vmem:[#allocation2 + $0x68] sm:$0xff] %vm204_vm1, %v3253_v49  ;;  %3268 = vst.msk [vmem:[#allocation2 + $0x60] sm:$0xff] %vm204_vm1, %v3252_v3  ;;  %v3510_v50 = vadd.f32 %v3463_v37, %v3296_v59  ;;  %v5914_v7 = vpop.f32.mrb[94].mxu0  ;;  %v3539_v11 = vld [vmem:[#allocation2 + $0x28] sm:$0xff] }
 0x1a7   : > { %3527 = vst.msk [vmem:[#allocation2 + $0x48] sm:$0xff] %vm204_vm1, %v3511_v5  ;;  %v3255_v12 = vadd.f32 %v5914_v7, %v3041_v6  ;;  %v3231_v13 = vpop.f32.mrb[95].mxu0  ;;  %3572 = vst.msk [vmem:[#allocation2 + $0x28] sm:$0xff] %vm204_vm1, %v6525_v53  ;;  %v3538_v14 = vld [vmem:[#allocation2 + $0x20] sm:$0xff]  ;;  %v3600_v15 = vld [vmem:[#allocation2 + $0x8] sm:$0xff] }
 0x1a8   : > { %5192 = vst.msk [vmem:[%s7052_s25 + $0x58] sm:$0xff] %vm204_vm1, %v3539_v11  ;;  %3526 = vst.msk [vmem:[#allocation2 + $0x40] sm:$0xff] %vm204_vm1, %v3510_v50  ;;  %v3254_v51 = vadd.f32 %v3231_v13, %v3040_v60  ;;  %v3599_v20 = vld [vmem:[#allocation2] sm:$0xff]  ;;  %v5940_v21 = vpop.f32.mrb[94].mxu1 }
 0x1a9   : > { %v3299_v61 = vld [vmem:[#allocation2 + $0x58] sm:$0xff]  ;;  %3571 = vst.msk [vmem:[#allocation2 + $0x20] sm:$0xff] %vm204_vm1, %v6525_v53  ;;  %5191 = vst.msk [vmem:[%s7052_s25 + $0x50] sm:$0xff] %vm204_vm1, %v3538_v14  ;;  %v3298_v19 = vld [vmem:[#allocation2 + $0x50] sm:$0xff]  ;;  %v3493_v23 = vpop.f32.mrb[95].mxu1 }
 0x1aa   : > { %3271 = vst.msk [vmem:[#allocation2 + $0x78] sm:$0xff] %vm204_vm1, %v3255_v12  ;;  %v3513_v17 = vadd.f32 %v5934_v57, %v3299_v61  ;;  %3270 = vst.msk [vmem:[#allocation2 + $0x70] sm:$0xff] %vm204_vm1, %v3254_v51  ;;  %v3512_v52 = vadd.f32 %v3473_v47, %v3298_v19  ;;  %v5945_v22 = vpop.f32.mrb[96].mxu0  ;;  %v3541_v62 = vld [vmem:[#allocation2 + $0x38] sm:$0xff] }
 0x1ab   : > { %v3814_v24 = vadd.f32 %v5945_v22, %v3600_v15  ;;  %v3734_v25 = vpop.f32.mrb[97].mxu0  ;;  %3574 = vst.msk [vmem:[#allocation2 + $0x38] sm:$0xff] %vm204_vm1, %v6525_v53  ;;  %v3540_v1 = vld [vmem:[#allocation2 + $0x30] sm:$0xff]  ;;  %5194 = vst.msk [vmem:[%s7052_s25 + $0x78] sm:$0xff] %vm204_vm1, %v3541_v62  ;;  %v3602_v28 = vld [vmem:[#allocation2 + $0x18] sm:$0xff] }
 0x1ac   : > { %3529 = vst.msk [vmem:[#allocation2 + $0x58] sm:$0xff] %vm204_vm1, %v3513_v17  ;;  %3528 = vst.msk [vmem:[#allocation2 + $0x50] sm:$0xff] %vm204_vm1, %v3512_v52  ;;  %v3813_v27 = vadd.f32 %v3734_v25, %v3599_v20  ;;  %v3601_v29 = vld [vmem:[#allocation2 + $0x10] sm:$0xff]  ;;  %v5971_v30 = vpop.f32.mrb[96].mxu1 }
 0x1ad   : > { %v3301_v26 = vld [vmem:[#allocation2 + $0x68] sm:$0xff]  ;;  %3573 = vst.msk [vmem:[#allocation2 + $0x30] sm:$0xff] %vm204_vm1, %v6525_v53  ;;  %5193 = vst.msk [vmem:[%s7052_s25 + $0x70] sm:$0xff] %vm204_vm1, %v3540_v1  ;;  %v3300_v9 = vld [vmem:[#allocation2 + $0x60] sm:$0xff]  ;;  %v3996_v33 = vpop.f32.mrb[97].mxu1 }
 0x1ae   : > { %3830 = vst.msk [vmem:[#allocation2 + $0x8] sm:$0xff] %vm204_vm1, %v3814_v24  ;;  %v3515_v54 = vadd.f32 %v5937_v18, %v3301_v26  ;;  %3829 = vst.msk [vmem:[#allocation2] sm:$0xff] %vm204_vm1, %v3813_v27  ;;  %v3514_v31 = vadd.f32 %v3483_v8, %v3300_v9  ;;  %v5948_v32 = vpop.f32.mrb[98].mxu0  ;;  %v3543_v2 = vld [vmem:[#allocation2 + $0x48] sm:$0xff] }
 0x1af   : > { %v3816_v55 = vadd.f32 %v5948_v32, %v3602_v28  ;;  %v3744_v34 = vpop.f32.mrb[99].mxu0  ;;  %3576 = vst.msk [vmem:[#allocation2 + $0x48] sm:$0xff] %vm204_vm1, %v6525_v53  ;;  %v3542_v35 = vld [vmem:[#allocation2 + $0x40] sm:$0xff]  ;;  %5196 = vst.msk [vmem:[%s7052_s25 + $0x98] sm:$0xff] %vm204_vm1, %v3543_v2  ;;  %v3604_v10 = vld [vmem:[#allocation2 + $0x28] sm:$0xff] }
 0x1b0   : > { %3531 = vst.msk [vmem:[#allocation2 + $0x68] sm:$0xff] %vm204_vm1, %v3515_v54  ;;  %3530 = vst.msk [vmem:[#allocation2 + $0x60] sm:$0xff] %vm204_vm1, %v3514_v31  ;;  %v3815_v37 = vadd.f32 %v3744_v34, %v3601_v29  ;;  %v3603_v40 = vld [vmem:[#allocation2 + $0x20] sm:$0xff]  ;;  %v5974_v56 = vpop.f32.mrb[98].mxu1 }
 0x1b1   : > { %v3303_v36 = vld [vmem:[#allocation2 + $0x78] sm:$0xff]  ;;  %3575 = vst.msk [vmem:[#allocation2 + $0x40] sm:$0xff] %vm204_vm1, %v6525_v53  ;;  %5195 = vst.msk [vmem:[%s7052_s25 + $0x90] sm:$0xff] %vm204_vm1, %v3542_v35  ;;  %v3302_v39 = vld [vmem:[#allocation2 + $0x70] sm:$0xff]  ;;  %v4006_v43 = vpop.f32.mrb[99].mxu1 }
 0x1b2   : > { %3832 = vst.msk [vmem:[#allocation2 + $0x18] sm:$0xff] %vm204_vm1, %v3816_v55  ;;  %v3517_v38 = vadd.f32 %v5940_v21, %v3303_v36  ;;  %3831 = vst.msk [vmem:[#allocation2 + $0x10] sm:$0xff] %vm204_vm1, %v3815_v37  ;;  %v3516_v41 = vadd.f32 %v3493_v23, %v3302_v39  ;;  %v5951_v42 = vpop.f32.mrb[100].mxu0  ;;  %v3606_v48 = vld [vmem:[#allocation2 + $0x38] sm:$0xff] }
 0x1b3   : > { %v3545_v44 = vld [vmem:[#allocation2 + $0x58] sm:$0xff]  ;;  %v3818_v57 = vadd.f32 %v5951_v42, %v3604_v10  ;;  %v3754_v16 = vpop.f32.mrb[101].mxu0  ;;  %v3544_v45 = vld [vmem:[#allocation2 + $0x50] sm:$0xff] }
 0x1b4   : > { %3533 = vst.msk [vmem:[#allocation2 + $0x78] sm:$0xff] %vm204_vm1, %v3517_v38  ;;  %3578 = vst.msk [vmem:[#allocation2 + $0x58] sm:$0xff] %vm204_vm1, %v6525_v53  ;;  %v3817_v46 = vadd.f32 %v3754_v16, %v3603_v40  ;;  %v3605_v58 = vld [vmem:[#allocation2 + $0x30] sm:$0xff]  ;;  %v5977_v0 = vpop.f32.mrb[100].mxu1 }
 0x1b5   : > { %5198 = vst.msk [vmem:[%s7052_s25 + $0xb8] sm:$0xff] %vm204_vm1, %v3545_v44  ;;  %3532 = vst.msk [vmem:[#allocation2 + $0x70] sm:$0xff] %vm204_vm1, %v3516_v41  ;;  %v3862_v47 = vld [vmem:[#allocation2 + $0x8] sm:$0xff]  ;;  %v3861_v63 = vld [vmem:[#allocation2] sm:$0xff]  ;;  %v4016_v5 = vpop.f32.mrb[101].mxu1 }
 0x1b6   : > { %3577 = vst.msk [vmem:[#allocation2 + $0x50] sm:$0xff] %vm204_vm1, %v6525_v53  ;;  %5197 = vst.msk [vmem:[%s7052_s25 + $0xb0] sm:$0xff] %vm204_vm1, %v3544_v45  ;;  %v4076_v49 = vadd.f32 %v5971_v30, %v3862_v47  ;;  %v4075_v3 = vadd.f32 %v3996_v33, %v3861_v63  ;;  %v5954_v4 = vpop.f32.mrb[102].mxu0  ;;  %v3608_v11 = vld [vmem:[#allocation2 + $0x48] sm:$0xff] }
 0x1b7   : > { %3834 = vst.msk [vmem:[#allocation2 + $0x28] sm:$0xff] %vm204_vm1, %v3818_v57  ;;  %3833 = vst.msk [vmem:[#allocation2 + $0x20] sm:$0xff] %vm204_vm1, %v3817_v46  ;;  %v3547_v59 = vld [vmem:[#allocation2 + $0x68] sm:$0xff]  ;;  %v3820_v18 = vadd.f32 %v5954_v4, %v3606_v48  ;;  %v3764_v50 = vpop.f32.mrb[103].mxu0  ;;  %v3546_v6 = vld [vmem:[#allocation2 + $0x60] sm:$0xff] }
 0x1b8   : > { %4092 = vst.msk [vmem:[#allocation2 + $0x8] sm:$0xff] %vm204_vm1, %v4076_v49  ;;  %3580 = vst.msk [vmem:[#allocation2 + $0x68] sm:$0xff] %vm204_vm1, %v6525_v53  ;;  %v3819_v7 = vadd.f32 %v3764_v50, %v3605_v58  ;;  %v3607_v13 = vld [vmem:[#allocation2 + $0x40] sm:$0xff]  ;;  %v5980_v14 = vpop.f32.mrb[102].mxu1 }
 0x1b9   : > { %5200 = vst.msk [vmem:[%s7052_s25 + $0xd8] sm:$0xff] %vm204_vm1, %v3547_v59  ;;  %4091 = vst.msk [vmem:[#allocation2] sm:$0xff] %vm204_vm1, %v4075_v3  ;;  %v3864_v8 = vld [vmem:[#allocation2 + $0x18] sm:$0xff]  ;;  %v3863_v60 = vld [vmem:[#allocation2 + $0x10] sm:$0xff]  ;;  %v4026_v15 = vpop.f32.mrb[103].mxu1 }
 0x1ba   : > { %3579 = vst.msk [vmem:[#allocation2 + $0x60] sm:$0xff] %vm204_vm1, %v6525_v53  ;;  %5199 = vst.msk [vmem:[%s7052_s25 + $0xd0] sm:$0xff] %vm204_vm1, %v3546_v6  ;;  %v4078_v12 = vadd.f32 %v5974_v56, %v3864_v8  ;;  %v4077_v51 = vadd.f32 %v4006_v43, %v3863_v60  ;;  %v5957_v61 = vpop.f32.mrb[104].mxu0 }
 0x1bb   : > { %3836 = vst.msk [vmem:[#allocation2 + $0x38] sm:$0xff] %vm204_vm1, %v3820_v18  ;;  %3835 = vst.msk [vmem:[#allocation2 + $0x30] sm:$0xff] %vm204_vm1, %v3819_v7  ;;  %v3549_v17 = vld [vmem:[#allocation2 + $0x78] sm:$0xff]  ;;  %v3822_v19 = vadd.f32 %v5957_v61, %v3608_v11  ;;  %v3774_v20 = vpop.f32.mrb[105].mxu0 }
 0x1bc   : > { %4094 = vst.msk [vmem:[#allocation2 + $0x18] sm:$0xff] %vm204_vm1, %v4078_v12  ;;  %3582 = vst.msk [vmem:[#allocation2 + $0x78] sm:$0xff] %vm204_vm1, %v6525_v53  ;;  %v3548_v21 = vld [vmem:[#allocation2 + $0x70] sm:$0xff]  ;;  %v3821_v52 = vadd.f32 %v3774_v20, %v3607_v13  ;;  %v3610_v23 = vld [vmem:[#allocation2 + $0x58] sm:$0xff]  ;;  %v5983_v1 = vpop.f32.mrb[104].mxu1 }
 0x1bd   : > { %5202 = vst.msk [vmem:[%s7052_s25 + $0xf8] sm:$0xff] %vm204_vm1, %v3549_v17  ;;  %4093 = vst.msk [vmem:[#allocation2 + $0x10] sm:$0xff] %vm204_vm1, %v4077_v51  ;;  %v3609_v25 = vld [vmem:[#allocation2 + $0x50] sm:$0xff]  ;;  %v4036_v28 = vpop.f32.mrb[105].mxu1 }
 0x1be   : > { %v3866_v22 = vld [vmem:[#allocation2 + $0x28] sm:$0xff]  ;;  %3581 = vst.msk [vmem:[#allocation2 + $0x70] sm:$0xff] %vm204_vm1, %v6525_v53  ;;  %5201 = vst.msk [vmem:[%s7052_s25 + $0xf0] sm:$0xff] %vm204_vm1, %v3548_v21  ;;  %v3865_v24 = vld [vmem:[#allocation2 + $0x20] sm:$0xff]  ;;  %v5960_v27 = vpop.f32.mrb[106].mxu0 }
 0x1bf   : > { %3838 = vst.msk [vmem:[#allocation2 + $0x48] sm:$0xff] %vm204_vm1, %v3822_v19  ;;  %v4080_v62 = vadd.f32 %v5977_v0, %v3866_v22  ;;  %3837 = vst.msk [vmem:[#allocation2 + $0x40] sm:$0xff] %vm204_vm1, %v3821_v52  ;;  %v4079_v26 = vadd.f32 %v4016_v5, %v3865_v24  ;;  %v3824_v54 = vadd.f32 %v5960_v27, %v3610_v23  ;;  %v3784_v9 = vpop.f32.mrb[107].mxu0  ;;  %v3612_v30 = vld [vmem:[#allocation2 + $0x68] sm:$0xff] }
 0x1c0   : > { %v3823_v53 = vadd.f32 %v3784_v9, %v3609_v25  ;;  %v5986_v2 = vpop.f32.mrb[106].mxu1  ;;  %v4124_v0 = vld [vmem:[#allocation2 + $0x8] sm:$0xff]  ;;  %v4123_v59 = vld [vmem:[#allocation2] sm:$0xff] }
 0x1c1   : > { %4096 = vst.msk [vmem:[#allocation2 + $0x28] sm:$0xff] %vm204_vm1, %v4080_v62  ;;  %4095 = vst.msk [vmem:[#allocation2 + $0x20] sm:$0xff] %vm204_vm1, %v4079_v26  ;;  %v3611_v33 = vld [vmem:[#allocation2 + $0x60] sm:$0xff]  ;;  %v4046_v35 = vpop.f32.mrb[107].mxu1 }
 0x1c2   : > { %v3868_v29 = vld [vmem:[#allocation2 + $0x38] sm:$0xff]  ;;  %3840 = vst.msk [vmem:[#allocation2 + $0x58] sm:$0xff] %vm204_vm1, %v3824_v54  ;;  %v3867_v32 = vld [vmem:[#allocation2 + $0x30] sm:$0xff]  ;;  %3839 = vst.msk [vmem:[#allocation2 + $0x50] sm:$0xff] %vm204_vm1, %v3823_v53  ;;  %v5963_v34 = vpop.f32.mrb[108].mxu0 }
 0x1c3   : > { %v4082_v31 = vadd.f32 %v5980_v14, %v3868_v29  ;;  %v4081_v55 = vadd.f32 %v4026_v15, %v3867_v32  ;;  %v3826_v36 = vadd.f32 %v5963_v34, %v3612_v30  ;;  %v3794_v37 = vpop.f32.mrb[109].mxu0  ;;  %v3614_v39 = vld [vmem:[#allocation2 + $0x78] sm:$0xff] }
 0x1c4   : > { %v3825_v10 = vadd.f32 %v3794_v37, %v3611_v33  ;;  %v5989_v42 = vpop.f32.mrb[108].mxu1  ;;  %v4126_v60 = vld [vmem:[#allocation2 + $0x18] sm:$0xff]  ;;  %v4125_v61 = vld [vmem:[#allocation2 + $0x10] sm:$0xff] }
 0x1c5   : > { %4098 = vst.msk [vmem:[#allocation2 + $0x38] sm:$0xff] %vm204_vm1, %v4082_v31  ;;  %4097 = vst.msk [vmem:[#allocation2 + $0x30] sm:$0xff] %vm204_vm1, %v4081_v55  ;;  %v3613_v41 = vld [vmem:[#allocation2 + $0x70] sm:$0xff]  ;;  %v4056_v57 = vpop.f32.mrb[109].mxu1 }
 0x1c6   : > { %v3870_v38 = vld [vmem:[#allocation2 + $0x48] sm:$0xff]  ;;  %3842 = vst.msk [vmem:[#allocation2 + $0x68] sm:$0xff] %vm204_vm1, %v3826_v36  ;;  %v3869_v56 = vld [vmem:[#allocation2 + $0x40] sm:$0xff]  ;;  %3841 = vst.msk [vmem:[#allocation2 + $0x60] sm:$0xff] %vm204_vm1, %v3825_v10  ;;  %v5966_v44 = vpop.f32.mrb[110].mxu0 }
 0x1c7   : > { %v4084_v40 = vadd.f32 %v5983_v1, %v3870_v38  ;;  %v4083_v43 = vadd.f32 %v4036_v28, %v3869_v56  ;;  %v3828_v16 = vadd.f32 %v5966_v44, %v3614_v39  ;;  %v3804_v45 = vpop.f32.mrb[111].mxu0 }
 0x1c8   : > { %v3827_v46 = vadd.f32 %v3804_v45, %v3613_v41  ;;  %v5992_v63 = vpop.f32.mrb[110].mxu1  ;;  %v4128_v62 = vld [vmem:[#allocation2 + $0x28] sm:$0xff]  ;;  %v4127_v26 = vld [vmem:[#allocation2 + $0x20] sm:$0xff] }
 0x1c9   : > { %4100 = vst.msk [vmem:[#allocation2 + $0x48] sm:$0xff] %vm204_vm1, %v4084_v40  ;;  %4099 = vst.msk [vmem:[#allocation2 + $0x40] sm:$0xff] %vm204_vm1, %v4083_v43  ;;  %v3872_v47 = vld [vmem:[#allocation2 + $0x58] sm:$0xff]  ;;  %v3871_v49 = vld [vmem:[#allocation2 + $0x50] sm:$0xff]  ;;  %v4066_v4 = vpop.f32.mrb[111].mxu1 }
 0x1ca   : > { %3844 = vst.msk [vmem:[#allocation2 + $0x78] sm:$0xff] %vm204_vm1, %v3828_v16  ;;  %v4086_v48 = vadd.f32 %v5986_v2, %v3872_v47  ;;  %3843 = vst.msk [vmem:[#allocation2 + $0x70] sm:$0xff] %vm204_vm1, %v3827_v46  ;;  %v4085_v58 = vadd.f32 %v4046_v35, %v3871_v49  ;;  %v5997_v3 = vpop.f32.mrb[112].mxu0 }
 0x1cb   : > { %v4338_v5 = vadd.f32 %v5997_v3, %v4124_v0  ;;  %v4258_v18 = vpop.f32.mrb[113].mxu0 }
 0x1cc   : > { %4102 = vst.msk [vmem:[#allocation2 + $0x58] sm:$0xff] %vm204_vm1, %v4086_v48  ;;  %4101 = vst.msk [vmem:[#allocation2 + $0x50] sm:$0xff] %vm204_vm1, %v4085_v58  ;;  %v4337_v6 = vadd.f32 %v4258_v18, %v4123_v59  ;;  %v6023_v11 = vpop.f32.mrb[112].mxu1  ;;  %v4130_v32 = vld [vmem:[#allocation2 + $0x38] sm:$0xff]  ;;  %v4129_v34 = vld [vmem:[#allocation2 + $0x30] sm:$0xff] }
 0x1cd   : > { %v3874_v50 = vld [vmem:[#allocation2 + $0x68] sm:$0xff]  ;;  %4354 = vst.msk [vmem:[#allocation2 + $0x8] sm:$0xff] %vm204_vm1, %v4338_v5  ;;  %v3873_v8 = vld [vmem:[#allocation2 + $0x60] sm:$0xff]  ;;  %v4520_v14 = vpop.f32.mrb[113].mxu1 }
 0x1ce   : > { %v4088_v7 = vadd.f32 %v5989_v42, %v3874_v50  ;;  %4353 = vst.msk [vmem:[#allocation2] sm:$0xff] %vm204_vm1, %v4337_v6  ;;  %v4087_v12 = vadd.f32 %v4056_v57, %v3873_v8  ;;  %v6000_v13 = vpop.f32.mrb[114].mxu0 }
 0x1cf   : > { %v4340_v51 = vadd.f32 %v6000_v13, %v4126_v60  ;;  %v4268_v15 = vpop.f32.mrb[115].mxu0 }
 0x1d0   : > { %4104 = vst.msk [vmem:[#allocation2 + $0x68] sm:$0xff] %vm204_vm1, %v4088_v7  ;;  %4103 = vst.msk [vmem:[#allocation2 + $0x60] sm:$0xff] %vm204_vm1, %v4087_v12  ;;  %v4339_v19 = vadd.f32 %v4268_v15, %v4125_v61  ;;  %v6026_v22 = vpop.f32.mrb[114].mxu1  ;;  %v4132_v43 = vld [vmem:[#allocation2 + $0x48] sm:$0xff]  ;;  %v4131_v16 = vld [vmem:[#allocation2 + $0x40] sm:$0xff] }
 0x1d1   : > { %v3876_v17 = vld [vmem:[#allocation2 + $0x78] sm:$0xff]  ;;  %4356 = vst.msk [vmem:[#allocation2 + $0x18] sm:$0xff] %vm204_vm1, %v4340_v51  ;;  %v3875_v21 = vld [vmem:[#allocation2 + $0x70] sm:$0xff]  ;;  %v2405_v52 = vpop.permute.xlu0 %2404  ;;  %v4530_v25 = vpop.f32.mrb[115].mxu1 }
 0x1d2   : > { %v4090_v20 = vadd.f32 %v5992_v63, %v3876_v17  ;;  %4355 = vst.msk [vmem:[#allocation2 + $0x10] sm:$0xff] %vm204_vm1, %v4339_v19  ;;  %v4089_v23 = vadd.f32 %v4066_v4, %v3875_v21  ;;  %v6003_v24 = vpop.f32.mrb[116].mxu0 }
 0x1d3   : > { %2452 = vst.msk [vmem:[%s7052_s25 + $0x8] sm:$0xff] %vm2450_vm2, %v2405_v52  ;;  %v4342_v1 = vadd.f32 %v6003_v24, %v4128_v62  ;;  %v4278_v27 = vpop.f32.mrb[117].mxu0  ;;  %v4134_v5 = vld [vmem:[#allocation2 + $0x58] sm:$0xff]  ;;  %v4133_v6 = vld [vmem:[#allocation2 + $0x50] sm:$0xff] }
 0x1d4   : > { %4106 = vst.msk [vmem:[#allocation2 + $0x78] sm:$0xff] %vm204_vm1, %v4090_v20  ;;  %4105 = vst.msk [vmem:[#allocation2 + $0x70] sm:$0xff] %vm204_vm1, %v4089_v23  ;;  %v4341_v28 = vadd.f32 %v4278_v27, %v4127_v26  ;;  %v4386_v54 = vld [vmem:[#allocation2 + $0x8] sm:$0xff]  ;;  %v6029_v2 = vpop.f32.mrb[116].mxu1 }
 0x1d5   : > { %4358 = vst.msk [vmem:[#allocation2 + $0x28] sm:$0xff] %vm204_vm1, %v4342_v1  ;;  %v4600_v9 = vadd.f32 %v6023_v11, %v4386_v54  ;;  %v4385_v53 = vld [vmem:[#allocation2] sm:$0xff]  ;;  %v2403_v29 = vpop.permute.xlu0 %2402  ;;  %v2409_v30 = vpop.permute.xlu1 %2408 }
 0x1d6   : > { %4357 = vst.msk [vmem:[#allocation2 + $0x20] sm:$0xff] %vm204_vm1, %v4341_v28  ;;  %v4599_v31 = vadd.f32 %v4520_v14, %v4385_v53  ;;  %v6006_v33 = vpop.f32.mrb[118].mxu0  ;;  %v4540_v36 = vpop.f32.mrb[117].mxu1 }
 0x1d7   : > { %2451 = vst.msk [vmem:[%s7052_s25] sm:$0xff] %vm2450_vm2, %v2403_v29  ;;  %2454 = vst.msk [vmem:[%s7052_s25 + $0x28] sm:$0xff] %vm2450_vm2, %v2409_v30  ;;  %v4344_v55 = vadd.f32 %v6006_v33, %v4130_v32  ;;  %v4288_v35 = vpop.f32.mrb[119].mxu0  ;;  %v4136_v19 = vld [vmem:[#allocation2 + $0x68] sm:$0xff] }
 0x1d8   : > { %4616 = vst.msk [vmem:[#allocation2 + $0x8] sm:$0xff] %vm204_vm1, %v4600_v9  ;;  %4615 = vst.msk [vmem:[#allocation2] sm:$0xff] %vm204_vm1, %v4599_v31  ;;  %v4343_v37 = vadd.f32 %v4288_v35, %v4129_v34  ;;  %v4388_v10 = vld [vmem:[#allocation2 + $0x18] sm:$0xff]  ;;  %v6032_v56 = vpop.f32.mrb[118].mxu1 }
 0x1d9   : > { %4360 = vst.msk [vmem:[#allocation2 + $0x38] sm:$0xff] %vm204_vm1, %v4344_v55  ;;  %v4602_v38 = vadd.f32 %v6026_v22, %v4388_v10  ;;  %v4387_v39 = vld [vmem:[#allocation2 + $0x10] sm:$0xff]  ;;  %v2407_v40 = vpop.permute.xlu1 %2406  ;;  %v4550_v46 = vpop.f32.mrb[119].mxu1  ;;  %v4135_v22 = vld [vmem:[#allocation2 + $0x60] sm:$0xff] }
 0x1da   : > { %4359 = vst.msk [vmem:[#allocation2 + $0x30] sm:$0xff] %vm204_vm1, %v4343_v37  ;;  %v4601_v41 = vadd.f32 %v4530_v25, %v4387_v39  ;;  %v2411_v42 = vpop.permute.xlu0 %2410  ;;  %v6009_v44 = vpop.f32.mrb[120].mxu0 }
 0x1db   : > { %2453 = vst.msk [vmem:[%s7052_s25 + $0x20] sm:$0xff] %vm2450_vm2, %v2407_v40  ;;  %2455 = vst.msk [vmem:[%s7052_s25 + $0x40] sm:$0xff] %vm2450_vm2, %v2411_v42  ;;  %v4346_v57 = vadd.f32 %v6009_v44, %v4132_v43  ;;  %v4298_v45 = vpop.f32.mrb[121].mxu0  ;;  %v4138_v29 = vld [vmem:[#allocation2 + $0x78] sm:$0xff]  ;;  %v4137_v33 = vld [vmem:[#allocation2 + $0x70] sm:$0xff] }
 0x1dc   : > { %4618 = vst.msk [vmem:[#allocation2 + $0x18] sm:$0xff] %vm204_vm1, %v4602_v38  ;;  %4617 = vst.msk [vmem:[#allocation2 + $0x10] sm:$0xff] %vm204_vm1, %v4601_v41  ;;  %v4345_v47 = vadd.f32 %v4298_v45, %v4131_v16  ;;  %v4390_v48 = vld [vmem:[#allocation2 + $0x28] sm:$0xff]  ;;  %v6035_v0 = vpop.f32.mrb[120].mxu1 }
 0x1dd   : > { %4362 = vst.msk [vmem:[#allocation2 + $0x48] sm:$0xff] %vm204_vm1, %v4346_v57  ;;  %v4604_v49 = vadd.f32 %v6029_v2, %v4390_v48  ;;  %v4389_v63 = vld [vmem:[#allocation2 + $0x20] sm:$0xff]  ;;  %v2413_v58 = vpop.permute.xlu1 %2412  ;;  %v4560_v11 = vpop.f32.mrb[121].mxu1 }
 0x1de   : > { %4361 = vst.msk [vmem:[#allocation2 + $0x40] sm:$0xff] %vm204_vm1, %v4345_v47  ;;  %v4603_v3 = vadd.f32 %v4540_v36, %v4389_v63  ;;  %v2415_v4 = vpop.permute.xlu0 %2414  ;;  %v6012_v59 = vpop.f32.mrb[122].mxu0 }
 0x1df   : > { %2456 = vst.msk [vmem:[%s7052_s25 + $0x48] sm:$0xff] %vm2450_vm2, %v2413_v58  ;;  %v4632_v18 = vld [vmem:[#allocation2 + $0x8] sm:$0xff]  ;;  %2457 = vst.msk [vmem:[%s7052_s25 + $0x60] sm:$0xff] %vm2450_vm2, %v2415_v4  ;;  %v4348_v50 = vadd.f32 %v6012_v59, %v4134_v5  ;;  %v4308_v7 = vpop.f32.mrb[123].mxu0  ;;  %v4631_v8 = vld [vmem:[#allocation2] sm:$0xff] }
 0x1e0   : > { %4620 = vst.msk [vmem:[#allocation2 + $0x28] sm:$0xff] %vm204_vm1, %v4604_v49  ;;  %4665 = vrot.lane.b32.xlu1 %v4632_v18, %s6127_s26  ;;  %4619 = vst.msk [vmem:[#allocation2 + $0x20] sm:$0xff] %vm204_vm1, %v4603_v3  ;;  %v4392_v12 = vld [vmem:[#allocation2 + $0x38] sm:$0xff]  ;;  %v4347_v60 = vadd.f32 %v4308_v7, %v4133_v6  ;;  %4663 = vrot.lane.b32.xlu0 %v4631_v8, %s6127_s26  ;;  %v6038_v61 = vpop.f32.mrb[122].mxu1 }
 0x1e1   : > { %4364 = vst.msk [vmem:[#allocation2 + $0x58] sm:$0xff] %vm204_vm1, %v4348_v50  ;;  %v4606_v13 = vadd.f32 %v6032_v56, %v4392_v12  ;;  %v4391_v14 = vld [vmem:[#allocation2 + $0x30] sm:$0xff]  ;;  %v2417_v51 = vpop.permute.xlu1 %2416  ;;  %v4570_v24 = vpop.f32.mrb[123].mxu1 }
 0x1e2   : > { %4363 = vst.msk [vmem:[#allocation2 + $0x50] sm:$0xff] %vm204_vm1, %v4347_v60  ;;  %v4605_v15 = vadd.f32 %v4550_v46, %v4391_v14  ;;  %v2419_v17 = vpop.permute.xlu0 %2418  ;;  %v6015_v20 = vpop.f32.mrb[124].mxu0 }
 0x1e3   : > { %2458 = vst.msk [vmem:[%s7052_s25 + $0x68] sm:$0xff] %vm2450_vm2, %v2417_v51  ;;  %v4634_v21 = vld [vmem:[#allocation2 + $0x18] sm:$0xff]  ;;  %2459 = vst.msk [vmem:[%s7052_s25 + $0x80] sm:$0xff] %vm2450_vm2, %v2419_v17  ;;  %v4350_v52 = vadd.f32 %v6015_v20, %v4136_v19  ;;  %v4318_v23 = vpop.f32.mrb[125].mxu0  ;;  %v4633_v62 = vld [vmem:[#allocation2 + $0x10] sm:$0xff] }
 0x1e4   : > { %4622 = vst.msk [vmem:[#allocation2 + $0x38] sm:$0xff] %vm204_vm1, %v4606_v13  ;;  %4669 = vrot.lane.b32.xlu1 %v4634_v21, %s6127_s26  ;;  %4621 = vst.msk [vmem:[#allocation2 + $0x30] sm:$0xff] %vm204_vm1, %v4605_v15  ;;  %v4394_v25 = vld [vmem:[#allocation2 + $0x48] sm:$0xff]  ;;  %v4349_v1 = vadd.f32 %v4318_v23, %v4135_v22  ;;  %4667 = vrot.lane.b32.xlu0 %v4633_v62, %s6127_s26  ;;  %v6041_v54 = vpop.f32.mrb[124].mxu1 }
 0x1e5   : > { %4366 = vst.msk [vmem:[#allocation2 + $0x68] sm:$0xff] %vm204_vm1, %v4350_v52  ;;  %v4608_v26 = vadd.f32 %v6035_v0, %v4394_v25  ;;  %v4393_v27 = vld [vmem:[#allocation2 + $0x40] sm:$0xff]  ;;  %v2421_v28 = vpop.permute.xlu1 %2420  ;;  %v4580_v34 = vpop.f32.mrb[125].mxu1 }
 0x1e6   : > { %4365 = vst.msk [vmem:[#allocation2 + $0x60] sm:$0xff] %vm204_vm1, %v4349_v1  ;;  %v4607_v9 = vadd.f32 %v4560_v11, %v4393_v27  ;;  %v2423_v53 = vpop.permute.xlu0 %2422  ;;  %v6018_v30 = vpop.f32.mrb[126].mxu0 }
 0x1e7   : > { %2460 = vst.msk [vmem:[%s7052_s25 + $0x88] sm:$0xff] %vm2450_vm2, %v2421_v28  ;;  %v4636_v31 = vld [vmem:[#allocation2 + $0x28] sm:$0xff]  ;;  %2461 = vst.msk [vmem:[%s7052_s25 + $0xa0] sm:$0xff] %vm2450_vm2, %v2423_v53  ;;  %v4352_v32 = vadd.f32 %v6018_v30, %v4138_v29  ;;  %v4328_v2 = vpop.f32.mrb[127].mxu0  ;;  %v4635_v55 = vld [vmem:[#allocation2 + $0x20] sm:$0xff] }
 0x1e8   : > { %4624 = vst.msk [vmem:[#allocation2 + $0x48] sm:$0xff] %vm204_vm1, %v4608_v26  ;;  %4673 = vrot.lane.b32.xlu1 %v4636_v31, %s6127_s26  ;;  %4623 = vst.msk [vmem:[#allocation2 + $0x40] sm:$0xff] %vm204_vm1, %v4607_v9  ;;  %v4396_v35 = vld [vmem:[#allocation2 + $0x58] sm:$0xff]  ;;  %v4351_v36 = vadd.f32 %v4328_v2, %v4137_v33  ;;  %4671 = vrot.lane.b32.xlu0 %v4635_v55, %s6127_s26  ;;  %v6044_v39 = vpop.f32.mrb[126].mxu1 }
 0x1e9   : > { %4368 = vst.msk [vmem:[#allocation2 + $0x78] sm:$0xff] %vm204_vm1, %v4352_v32  ;;  %v4610_v37 = vadd.f32 %v6038_v61, %v4396_v35  ;;  %v4395_v10 = vld [vmem:[#allocation2 + $0x50] sm:$0xff]  ;;  %v2425_v38 = vpop.permute.xlu1 %2424  ;;  %v4590_v42 = vpop.f32.mrb[127].mxu1 }
 0x1ea   : > { %4367 = vst.msk [vmem:[#allocation2 + $0x70] sm:$0xff] %vm204_vm1, %v4351_v36  ;;  %v4609_v40 = vadd.f32 %v4570_v24, %v4395_v10  ;;  %v2427_v56 = vpop.permute.xlu0 %2426 }
 0x1eb   : > { %2462 = vst.msk [vmem:[%s7052_s25 + $0xa8] sm:$0xff] %vm2450_vm2, %v2425_v38  ;;  %v4638_v41 = vld [vmem:[#allocation2 + $0x38] sm:$0xff]  ;;  %2463 = vst.msk [vmem:[%s7052_s25 + $0xc0] sm:$0xff] %vm2450_vm2, %v2427_v56  ;;  %v4637_v43 = vld [vmem:[#allocation2 + $0x30] sm:$0xff] }
 0x1ec   : > { %4626 = vst.msk [vmem:[#allocation2 + $0x58] sm:$0xff] %vm204_vm1, %v4610_v37  ;;  %4677 = vrot.lane.b32.xlu1 %v4638_v41, %s6127_s26  ;;  %4625 = vst.msk [vmem:[#allocation2 + $0x50] sm:$0xff] %vm204_vm1, %v4609_v40  ;;  %v4398_v44 = vld [vmem:[#allocation2 + $0x68] sm:$0xff]  ;;  %4675 = vrot.lane.b32.xlu0 %v4637_v43, %s6127_s26 }
 0x1ed   : > { %v4612_v57 = vadd.f32 %v6041_v54, %v4398_v44  ;;  %v4397_v16 = vld [vmem:[#allocation2 + $0x60] sm:$0xff]  ;;  %v2429_v45 = vpop.permute.xlu1 %2428 }
 0x1ee   : > { %v4611_v46 = vadd.f32 %v4580_v34, %v4397_v16  ;;  %2464 = vst.msk [vmem:[%s7052_s25 + $0xc8] sm:$0xff] %vm2450_vm2, %v2429_v45  ;;  %v2431_v47 = vpop.permute.xlu0 %2430 }
 0x1ef   : > { %v4640_v48 = vld [vmem:[#allocation2 + $0x48] sm:$0xff]  ;;  %4628 = vst.msk [vmem:[#allocation2 + $0x68] sm:$0xff] %vm204_vm1, %v4612_v57  ;;  %v4639_v49 = vld [vmem:[#allocation2 + $0x40] sm:$0xff] }
 0x1f0   : > { %2465 = vst.msk [vmem:[%s7052_s25 + $0xe0] sm:$0xff] %vm2450_vm2, %v2431_v47  ;;  %4681 = vrot.lane.b32.xlu1 %v4640_v48, %s6127_s26  ;;  %v4400_v63 = vld [vmem:[#allocation2 + $0x78] sm:$0xff]  ;;  %4679 = vrot.lane.b32.xlu0 %v4639_v49, %s6127_s26 }
 0x1f1   : > { %4627 = vst.msk [vmem:[#allocation2 + $0x60] sm:$0xff] %vm204_vm1, %v4611_v46  ;;  %v4614_v58 = vadd.f32 %v6044_v39, %v4400_v63  ;;  %v4399_v0 = vld [vmem:[#allocation2 + $0x70] sm:$0xff]  ;;  %v2433_v3 = vpop.permute.xlu1 %2432 }
 0x1f2   : > { %v4613_v4 = vadd.f32 %v4590_v42, %v4399_v0  ;;  %2466 = vst.msk [vmem:[%s7052_s25 + $0xe8] sm:$0xff] %vm2450_vm2, %v2433_v3 }
 0x1f3   : > { %v4642_v5 = vld [vmem:[#allocation2 + $0x58] sm:$0xff]  ;;  %4630 = vst.msk [vmem:[#allocation2 + $0x78] sm:$0xff] %vm204_vm1, %v4614_v58  ;;  %v4641_v59 = vld [vmem:[#allocation2 + $0x50] sm:$0xff] }
 0x1f4   : > { %4685 = vrot.lane.b32.xlu1 %v4642_v5, %s6127_s26  ;;  %4629 = vst.msk [vmem:[#allocation2 + $0x70] sm:$0xff] %vm204_vm1, %v4613_v4  ;;  %4683 = vrot.lane.b32.xlu0 %v4641_v59, %s6127_s26 }
 0x1f6   : > { %v4644_v18 = vld [vmem:[#allocation2 + $0x68] sm:$0xff] }
 0x1f8   : > { %4689 = vrot.lane.b32.xlu1 %v4644_v18, %s6127_s26  ;;  %v4643_v50 = vld [vmem:[#allocation2 + $0x60] sm:$0xff] }
 0x1f9   : > { %4687 = vrot.lane.b32.xlu0 %v4643_v50, %s6127_s26 }
 0x1fa   : > { %v4646_v6 = vld [vmem:[#allocation2 + $0x78] sm:$0xff] }
 0x1fb   : > { %v4645_v7 = vld [vmem:[#allocation2 + $0x70] sm:$0xff] }
 0x1fc   : > { %4693 = vrot.lane.b32.xlu1 %v4646_v6, %s6127_s26 }
 0x1fd   : > { %4691 = vrot.lane.b32.xlu0 %v4645_v7, %s6127_s26 }
 0x252   : > { %v4666_v8 = vpop.permute.xlu1 %4665  ;;  %v4664_v11 = vpop.permute.xlu0 %4663 }
 0x253   : > { %5340 = vst.msk [vmem:[%s7052_s25 + $0x18] sm:$0xff] %vm2450_vm2, %v4666_v8  ;;  %5339 = vst.msk [vmem:[%s7052_s25 + $0x10] sm:$0xff] %vm2450_vm2, %v4664_v11 }
 0x256   : > { %v4670_v12 = vpop.permute.xlu1 %4669  ;;  %v4668_v60 = vpop.permute.xlu0 %4667 }
 0x257   : > { %5342 = vst.msk [vmem:[%s7052_s25 + $0x38] sm:$0xff] %vm2450_vm2, %v4670_v12  ;;  %5341 = vst.msk [vmem:[%s7052_s25 + $0x30] sm:$0xff] %vm2450_vm2, %v4668_v60 }
 0x25a   : > { %v4674_v13 = vpop.permute.xlu1 %4673  ;;  %v4672_v14 = vpop.permute.xlu0 %4671 }
 0x25b   : > { %5344 = vst.msk [vmem:[%s7052_s25 + $0x58] sm:$0xff] %vm2450_vm2, %v4674_v13  ;;  %5343 = vst.msk [vmem:[%s7052_s25 + $0x50] sm:$0xff] %vm2450_vm2, %v4672_v14 }
 0x25e   : > { %v4678_v51 = vpop.permute.xlu1 %4677  ;;  %v4676_v61 = vpop.permute.xlu0 %4675 }
 0x25f   : > { %5346 = vst.msk [vmem:[%s7052_s25 + $0x78] sm:$0xff] %vm2450_vm2, %v4678_v51  ;;  %5345 = vst.msk [vmem:[%s7052_s25 + $0x70] sm:$0xff] %vm2450_vm2, %v4676_v61 }
 0x262   : > { %v4682_v15 = vpop.permute.xlu1 %4681  ;;  %v4680_v17 = vpop.permute.xlu0 %4679 }
 0x263   : > { %5348 = vst.msk [vmem:[%s7052_s25 + $0x98] sm:$0xff] %vm2450_vm2, %v4682_v15  ;;  %5347 = vst.msk [vmem:[%s7052_s25 + $0x90] sm:$0xff] %vm2450_vm2, %v4680_v17 }
 0x266   : > { %v4686_v19 = vpop.permute.xlu1 %4685  ;;  %v4684_v20 = vpop.permute.xlu0 %4683 }
 0x267   : > { %5350 = vst.msk [vmem:[%s7052_s25 + $0xb8] sm:$0xff] %vm2450_vm2, %v4686_v19  ;;  %5349 = vst.msk [vmem:[%s7052_s25 + $0xb0] sm:$0xff] %vm2450_vm2, %v4684_v20 }
 0x26a   : > { %v4690_v21 = vpop.permute.xlu1 %4689 }
 0x26b   : > { %5352 = vst.msk [vmem:[%s7052_s25 + $0xd8] sm:$0xff] %vm2450_vm2, %v4690_v21  ;;  %v4688_v52 = vpop.permute.xlu0 %4687 }
 0x26c   : > { %5351 = vst.msk [vmem:[%s7052_s25 + $0xd0] sm:$0xff] %vm2450_vm2, %v4688_v52 }
 0x26e   : > { %v4694_v22 = vpop.permute.xlu1 %4693 }
 0x26f   : > { %5354 = vst.msk [vmem:[%s7052_s25 + $0xf8] sm:$0xff] %vm2450_vm2, %v4694_v22  ;;  %v4692_v23 = vpop.permute.xlu0 %4691 }
 0x270   : > { %5353 = vst.msk [vmem:[%s7052_s25 + $0xf0] sm:$0xff] %vm2450_vm2, %v4692_v23 }
 0x271 PF: > { %s13_s16 = sadd.s32 1, %s6125_s16   ;;  %s7542_s12 = smov %s6117_s14 }
 0x272   : > { %p10_p7 = scmp.ge.s32.totalorder %s13_s16, 6   ;;  %s7543_s13 = smov %s6121_s15 }
 0x273   : > { %s7544_s14 = smov %s7547_s17  ;;  %s7545_s15 = smov %s7551_s18 }
 0x274   :  { %12 = sbr.rel (!%p10_p7) target bundleno = 3 (0x3), region = 81 }

</bundles_post_ra>
